<compile_context>
chip_gen: v7x
topology: tpu7x:2x2x1
jax: 0.10.0
libtpu: 0.0.40
codegen_flags: <defaults>
</compile_context>

<pallas_src>
import functools

import jax
import jax.numpy as jnp
from jax.experimental import pallas as pl
from jax.experimental.pallas import tpu as pltpu


# -----------------------------------------------------------------------------
# Fused kernel: from_rgb -> conv3x3 -> conv3x3 -> pool + linear, one image/step
# -----------------------------------------------------------------------------
def _disc_kernel(x_ref, w_rgb_ref, b_rgb_ref, w1_ref, b1_ref, w2_ref, b2_ref,
                 w_dec_ref, b_dec_ref, o_ref, hbuf_ref, *, W, HW, C, PAD, slope):
    """Shapes seen by the kernel (one grid step = one image):

    x_ref    : (HW, Cin)          f32   flattened NHWC image (channels on lanes)
    w_rgb    : (Cin, C)           f32   1x1 conv weight
    w1, w2   : (9, C, C)          bf16  3x3 conv weights, tap-major (ky*3+kx)
    b_*      : (1, C)             f32
    w_dec    : (1, C)             f32   == nn.Linear(C, 1).weight
    b_dec    : (1, 1)             f32
    o_ref    : (1, 1)             f32
    hbuf_ref : (PAD+HW+PAD, C)    f32   zero-padded flattened activation buffer
    """
    f32 = jnp.float32

    def lrelu(a):
        return jnp.where(a > 0, a, slope * a)

    # ---- from_rgb: 1x1 conv + LeakyReLU on the VPU (K = Cin is tiny) --------
    x = x_ref[...].astype(f32)                            # (HW, Cin)
    w_rgb = w_rgb_ref[...].astype(f32)                    # (Cin, C)
    cin = x.shape[1]
    acc = jnp.broadcast_to(b_rgb_ref[...].astype(f32), (HW, C))
    for c in range(cin):                                  # static unroll, Cin == 3
        acc = acc + x[:, c:c + 1] * w_rgb[c:c + 1, :]
    h = lrelu(acc)

    # VMEM-resident, zero-padded, flattened activation buffer.
    hbuf_ref[...] = jnp.zeros_like(hbuf_ref)
    hbuf_ref[PAD:PAD + HW, :] = h                         # sublane-aligned interior

    # Column-wrap masks for the dx = +/-1 taps (row boundaries of the flat layout).
    col = jax.lax.broadcasted_iota(jnp.int32, (HW, 1), 0) % W
    mask_r = (col != (W - 1)).astype(f32)                 # kills x+1 wrap
    mask_l = (col != 0).astype(f32)                       # kills x-1 wrap

    # ---- 3x3 conv (pad=1): 9 shifted (HW,C)x(C,C) MXU dots, f32 accumulation
    def conv3x3(w_ref, b_ref):
        acc = jnp.broadcast_to(b_ref[...].astype(f32), (HW, C))
        for t in range(9):                                # static unroll
            dy, dx = t // 3 - 1, t % 3 - 1
            off = PAD + dy * W + dx
            tap = hbuf_ref[off:off + HW, :]               # (HW, C) f32
            if dx == 1:
                tap = tap * mask_r
            elif dx == -1:
                tap = tap * mask_l
            acc = acc + jnp.dot(tap.astype(jnp.bfloat16), w_ref[t],
                                preferred_element_type=f32)
        return lrelu(acc)

    h = conv3x3(w1_ref, b1_ref)
    hbuf_ref[PAD:PAD + HW, :] = h                         # feed conv2 from VMEM
    h = conv3x3(w2_ref, b2_ref)

    # ---- decision: global average pool (f32) + Linear(C -> 1) ---------------
    pooled = jnp.mean(h, axis=0, keepdims=True)           # (1, C) f32
    val = jnp.sum(pooled * w_dec_ref[...].astype(f32), axis=1, keepdims=True)
    o_ref[...] = (val + b_dec_ref[...].astype(f32)).astype(o_ref.dtype)


# -----------------------------------------------------------------------------
# Wrapper: single pallas_call, grid over batch ("parallel" -> both v7x TCs)
# -----------------------------------------------------------------------------
def discriminator_forward(x_nchw, params, slope=0.2):
    # NCHW (PyTorch) -> flattened NHWC rows (channels on the lane axis).
    x = jnp.transpose(x_nchw, (0, 2, 3, 1)).astype(jnp.float32)
    N, H, W, Cin = x.shape
    C = params["w_rgb"].shape[1]
    HW = H * W
    assert W % 8 == 0 and HW % 8 == 0, "spatial dims must be sublane friendly"
    PAD = ((W + 1 + 7) // 8) * 8                          # >= W+1 and 8-aligned
    x_flat = x.reshape(N, HW, Cin)

    kernel = functools.partial(_disc_kernel, W=W, HW=HW, C=C, PAD=PAD, slope=slope)

    out = pl.pallas_call(
        kernel,
        out_shape=jax.ShapeDtypeStruct((N, 1, 1), jnp.float32),
        grid_spec=pltpu.PrefetchScalarGridSpec(
            num_scalar_prefetch=0,
            grid=(N,),
            in_specs=[
                pl.BlockSpec((None, HW, Cin), lambda n: (n, 0, 0)),   # x (per image)
                pl.BlockSpec((Cin, C), lambda n: (0, 0)),             # w_rgb
                pl.BlockSpec((1, C), lambda n: (0, 0)),               # b_rgb
                pl.BlockSpec((9, C, C), lambda n: (0, 0, 0)),         # w1
                pl.BlockSpec((1, C), lambda n: (0, 0)),               # b1
                pl.BlockSpec((9, C, C), lambda n: (0, 0, 0)),         # w2
                pl.BlockSpec((1, C), lambda n: (0, 0)),               # b2
                pl.BlockSpec((1, C), lambda n: (0, 0)),               # w_dec
                pl.BlockSpec((1, 1), lambda n: (0, 0)),               # b_dec
            ],
            out_specs=pl.BlockSpec((None, 1, 1), lambda n: (n, 0, 0)),
            scratch_shapes=[pltpu.VMEM((PAD + HW + PAD, C), jnp.float32)],
        ),
        compiler_params=pltpu.CompilerParams(
            dimension_semantics=("parallel",)),           # v7x: batch across both TCs
    )(x_flat, params["w_rgb"], params["b_rgb"], params["w1"], params["b1"],
      params["w2"], params["b2"], params["w_dec"], params["b_dec"])
    return out.reshape(N, 1)


# -----------------------------------------------------------------------------
# Deterministic parameter init (shapes implied by the module structure)
# -----------------------------------------------------------------------------
def init_params(key, in_channels=3, hidden=32):
    ks = jax.random.split(key, 8)

    def winit(k, shape, fan_in):
        return jax.random.normal(k, shape, jnp.float32) / jnp.sqrt(fan_in)

    return {
        "w_rgb": winit(ks[0], (in_channels, hidden), in_channels),
        "b_rgb": 0.1 * winit(ks[1], (1, hidden), 1.0),
        # 3x3 conv weights, tap-major (ky*3+kx, Cin, Cout); stored bf16 (MXU inputs).
        "w1": winit(ks[2], (9, hidden, hidden), 9 * hidden).astype(jnp.bfloat16),
        "b1": 0.1 * winit(ks[3], (1, hidden), 1.0),
        "w2": winit(ks[4], (9, hidden, hidden), 9 * hidden).astype(jnp.bfloat16),
        "b2": 0.1 * winit(ks[5], (1, hidden), 1.0),
        "w_dec": winit(ks[6], (1, hidden), hidden),       # == nn.Linear(hidden,1).weight
        "b_dec": 0.1 * winit(ks[7], (1, 1), 1.0),
    }


# -----------------------------------------------------------------------------
# Pure-JAX reference (same params, f32 math) for a numerical sanity check
# -----------------------------------------------------------------------------
def _reference_forward(x_nchw, params, slope=0.2):
    x = jnp.transpose(x_nchw, (0, 2, 3, 1)).astype(jnp.float32)
    N, H, W, Cin = x.shape
    C = params["w_rgb"].shape[1]

    def lrelu(a):
        return jnp.where(a > 0, a, slope * a)

    h = lrelu(x.reshape(-1, Cin) @ params["w_rgb"] + params["b_rgb"])
    h = h.reshape(N, H, W, C)
    for wk, bk in ((params["w1"], params["b1"]), (params["w2"], params["b2"])):
        w9 = wk.astype(jnp.float32)
        hp = jnp.pad(h, ((0, 0), (1, 1), (1, 1), (0, 0)))
        acc = jnp.zeros((N, H, W, C), jnp.float32) + bk
        for t in range(9):
            dy, dx = t // 3, t % 3
            acc = acc + hp[:, dy:dy + H, dx:dx + W, :] @ w9[t]
        h = lrelu(acc)
    pooled = h.mean(axis=(1, 2))                          # (N, C)
    return pooled @ params["w_dec"].T + params["b_dec"]


if __name__ == "__main__":
    key = jax.random.PRNGKey(0)
    k_x, k_p = jax.random.split(key)

    # Small, module-consistent shapes: batch=2, RGB channels=3, spatial=16x16.
    x = jax.random.normal(k_x, (2, 3, 16, 16), jnp.float32)
    params = init_params(k_p, in_channels=3, hidden=32)

    out = jax.block_until_ready(discriminator_forward(x, params))
    ref = jax.block_until_ready(_reference_forward(x, params))

    assert out.shape == (2, 1), out.shape
    assert bool(jnp.all(jnp.isfinite(out)))
    # bf16 MXU inputs inside the kernel -> loose tolerance vs. the f32 reference.
    assert bool(jnp.allclose(out, ref, atol=3e-2, rtol=3e-2)), (out, ref)
    print("KERNEL_OK")
</pallas_src>

<mosaic_0001>
module attributes {stable_mosaic.version = 11 : i64} {
  func.func @_disc_kernel(%arg0: i32, %arg1: memref<1x256x3xf32, #tpu.memory_space<vmem>>, %arg2: memref<3x32xf32, #tpu.memory_space<vmem>>, %arg3: memref<1x32xf32, #tpu.memory_space<vmem>>, %arg4: memref<9x32x32xbf16, #tpu.memory_space<vmem>>, %arg5: memref<1x32xf32, #tpu.memory_space<vmem>>, %arg6: memref<9x32x32xbf16, #tpu.memory_space<vmem>>, %arg7: memref<1x32xf32, #tpu.memory_space<vmem>>, %arg8: memref<1x32xf32, #tpu.memory_space<vmem>>, %arg9: memref<1x1xf32, #tpu.memory_space<vmem>>, %arg10: memref<1x1x1xf32, #tpu.memory_space<vmem>>, %arg11: memref<304x32xf32, #tpu.memory_space<vmem>>) attributes {dimension_semantics = [#tpu.dimension_semantics<parallel>], iteration_bounds = array<i64: 2>, scalar_prefetch = 0 : i64, scratch_operands = 1 : i64, tpu.core_type = #tpu.core_type<tc>, window_params = [{transform_indices = @transform_0, window_bounds = array<i64: 1, 256, 3>}, {pipeline_mode = #tpu.pipeline_mode<synchronous>, transform_indices = @transform_1, window_bounds = array<i64: 3, 32>}, {pipeline_mode = #tpu.pipeline_mode<synchronous>, transform_indices = @transform_2, window_bounds = array<i64: 1, 32>}, {pipeline_mode = #tpu.pipeline_mode<synchronous>, transform_indices = @transform_3, window_bounds = array<i64: 9, 32, 32>}, {pipeline_mode = #tpu.pipeline_mode<synchronous>, transform_indices = @transform_4, window_bounds = array<i64: 1, 32>}, {pipeline_mode = #tpu.pipeline_mode<synchronous>, transform_indices = @transform_5, window_bounds = array<i64: 9, 32, 32>}, {pipeline_mode = #tpu.pipeline_mode<synchronous>, transform_indices = @transform_6, window_bounds = array<i64: 1, 32>}, {pipeline_mode = #tpu.pipeline_mode<synchronous>, transform_indices = @transform_7, window_bounds = array<i64: 1, 32>}, {pipeline_mode = #tpu.pipeline_mode<synchronous>, transform_indices = @transform_8, window_bounds = array<i64: 1, 1>}, {transform_indices = @transform_9, window_bounds = array<i64: 1, 1, 1>}]} {
    %c0 = arith.constant 0 : index
    %c0_0 = arith.constant 0 : index
    %c0_1 = arith.constant 0 : index
    %0 = vector.load %arg1[%c0, %c0_0, %c0_1] : memref<1x256x3xf32, #tpu.memory_space<vmem>>, vector<1x256x3xf32>
    %1 = vector.shape_cast %0 : vector<1x256x3xf32> to vector<256x3xf32>
    %c0_2 = arith.constant 0 : index
    %c0_3 = arith.constant 0 : index
    %2 = vector.load %arg2[%c0_2, %c0_3] : memref<3x32xf32, #tpu.memory_space<vmem>>, vector<3x32xf32>
    %c0_4 = arith.constant 0 : index
    %c0_5 = arith.constant 0 : index
    %3 = vector.load %arg3[%c0_4, %c0_5] : memref<1x32xf32, #tpu.memory_space<vmem>>, vector<1x32xf32>
    %4 = vector.shape_cast %3 : vector<1x32xf32> to vector<1x32xf32>
    %5 = vector.broadcast %4 : vector<1x32xf32> to vector<256x32xf32>
    %6 = vector.extract_strided_slice %1 {offsets = [0, 0], sizes = [256, 1], strides = [1, 1]} : vector<256x3xf32> to vector<256x1xf32>
    %7 = vector.extract_strided_slice %2 {offsets = [0, 0], sizes = [1, 32], strides = [1, 1]} : vector<3x32xf32> to vector<1x32xf32>
    %8 = vector.broadcast %6 : vector<256x1xf32> to vector<256x32xf32>
    %9 = vector.broadcast %7 : vector<1x32xf32> to vector<256x32xf32>
    %10 = arith.mulf %8, %9 : vector<256x32xf32>
    %11 = arith.addf %5, %10 : vector<256x32xf32>
    %12 = vector.extract_strided_slice %1 {offsets = [0, 1], sizes = [256, 1], strides = [1, 1]} : vector<256x3xf32> to vector<256x1xf32>
    %13 = vector.extract_strided_slice %2 {offsets = [1, 0], sizes = [1, 32], strides = [1, 1]} : vector<3x32xf32> to vector<1x32xf32>
    %14 = vector.broadcast %12 : vector<256x1xf32> to vector<256x32xf32>
    %15 = vector.broadcast %13 : vector<1x32xf32> to vector<256x32xf32>
    %16 = arith.mulf %14, %15 : vector<256x32xf32>
    %17 = arith.addf %11, %16 : vector<256x32xf32>
    %18 = vector.extract_strided_slice %1 {offsets = [0, 2], sizes = [256, 1], strides = [1, 1]} : vector<256x3xf32> to vector<256x1xf32>
    %19 = vector.extract_strided_slice %2 {offsets = [2, 0], sizes = [1, 32], strides = [1, 1]} : vector<3x32xf32> to vector<1x32xf32>
    %20 = vector.broadcast %18 : vector<256x1xf32> to vector<256x32xf32>
    %21 = vector.broadcast %19 : vector<1x32xf32> to vector<256x32xf32>
    %22 = arith.mulf %20, %21 : vector<256x32xf32>
    %23 = arith.addf %17, %22 : vector<256x32xf32>
    %cst = arith.constant 0.000000e+00 : f32
    %24 = vector.broadcast %cst : f32 to vector<256x32xf32>
    %25 = arith.cmpf ogt, %23, %24 : vector<256x32xf32>
    %cst_6 = arith.constant 2.000000e-01 : f32
    %26 = vector.broadcast %cst_6 : f32 to vector<256x32xf32>
    %27 = arith.mulf %26, %23 : vector<256x32xf32>
    %28 = arith.select %25, %23, %27 : vector<256x32xi1>, vector<256x32xf32>
    %cst_7 = arith.constant 0.000000e+00 : f32
    %29 = vector.broadcast %cst_7 : f32 to vector<304x32xf32>
    %c0_8 = arith.constant 0 : index
    %c0_9 = arith.constant 0 : index
    %30 = vector.load %arg11[%c0_8, %c0_9] : memref<304x32xf32, #tpu.memory_space<vmem>>, vector<304x32xf32>
    tpu.vector_store %arg11[%c0_8, %c0_9], %29 {strides = array<i32>} : memref<304x32xf32, #tpu.memory_space<vmem>>, vector<304x32xf32>,
    %c24 = arith.constant 24 : index
    %c0_10 = arith.constant 0 : index
    %31 = vector.load %arg11[%c24, %c0_10] : memref<304x32xf32, #tpu.memory_space<vmem>>, vector<256x32xf32>
    tpu.vector_store %arg11[%c24, %c0_10], %28 {strides = array<i32>} : memref<304x32xf32, #tpu.memory_space<vmem>>, vector<256x32xf32>,
    %32 = tpu.iota {dimensions = array<i32: 0>} : vector<256x1xi32>
    %c16_i32 = arith.constant 16 : i32
    %c0_i32 = arith.constant 0 : i32
    %33 = arith.cmpi eq, %c16_i32, %c0_i32 : i32
    %c1_i32 = arith.constant 1 : i32
    %34 = arith.select %33, %c1_i32, %c16_i32 : i32
    %35 = vector.broadcast %34 : i32 to vector<256x1xi32>
    %36 = arith.remsi %32, %35 : vector<256x1xi32>
    %c0_i32_11 = arith.constant 0 : i32
    %37 = vector.broadcast %c0_i32_11 : i32 to vector<256x1xi32>
    %38 = arith.cmpi ne, %36, %37 : vector<256x1xi32>
    %c0_i32_12 = arith.constant 0 : i32
    %39 = vector.broadcast %c0_i32_12 : i32 to vector<256x1xi32>
    %40 = arith.cmpi slt, %36, %39 : vector<256x1xi32>
    %c0_i32_13 = arith.constant 0 : i32
    %41 = arith.cmpi slt, %34, %c0_i32_13 : i32
    %42 = vector.broadcast %41 : i1 to vector<256x1xi1>
    %43 = vector.broadcast %42 : vector<256x1xi1> to vector<256x1xi1>
    %44 = arith.xori %40, %43 : vector<256x1xi1>
    %45 = arith.andi %44, %38 : vector<256x1xi1>
    %46 = vector.broadcast %34 : i32 to vector<256x1xi32>
    %47 = arith.addi %36, %46 : vector<256x1xi32>
    %48 = arith.select %45, %47, %36 : vector<256x1xi1>, vector<256x1xi32>
    %c15_i32 = arith.constant 15 : i32
    %49 = vector.broadcast %c15_i32 : i32 to vector<256x1xi32>
    %50 = arith.cmpi ne, %48, %49 : vector<256x1xi32>
    %51 = arith.extui %50 : vector<256x1xi1> to vector<256x1xi32>
    %52 = arith.sitofp %51 : vector<256x1xi32> to vector<256x1xf32>
    %c0_i32_14 = arith.constant 0 : i32
    %53 = vector.broadcast %c0_i32_14 : i32 to vector<256x1xi32>
    %54 = arith.cmpi ne, %48, %53 : vector<256x1xi32>
    %55 = arith.extui %54 : vector<256x1xi1> to vector<256x1xi32>
    %56 = arith.sitofp %55 : vector<256x1xi32> to vector<256x1xf32>
    %c0_15 = arith.constant 0 : index
    %c0_16 = arith.constant 0 : index
    %57 = vector.load %arg5[%c0_15, %c0_16] : memref<1x32xf32, #tpu.memory_space<vmem>>, vector<1x32xf32>
    %58 = vector.shape_cast %57 : vector<1x32xf32> to vector<1x32xf32>
    %59 = vector.broadcast %58 : vector<1x32xf32> to vector<256x32xf32>
    %c7 = arith.constant 7 : index
    %c0_17 = arith.constant 0 : index
    %60 = vector.load %arg11[%c7, %c0_17] : memref<304x32xf32, #tpu.memory_space<vmem>>, vector<256x32xf32>
    %61 = vector.broadcast %56 : vector<256x1xf32> to vector<256x32xf32>
    %62 = arith.mulf %60, %61 : vector<256x32xf32>
    %63 = arith.truncf %62 : vector<256x32xf32> to vector<256x32xbf16>
    %c0_18 = arith.constant 0 : index
    %c0_19 = arith.constant 0 : index
    %c0_20 = arith.constant 0 : index
    %64 = vector.load %arg4[%c0_18, %c0_19, %c0_20] : memref<9x32x32xbf16, #tpu.memory_space<vmem>>, vector<1x32x32xbf16>
    %65 = vector.shape_cast %64 : vector<1x32x32xbf16> to vector<32x32xbf16>
    %cst_21 = arith.constant dense<0.000000e+00> : vector<256x32xf32>
    %66 = tpu.matmul %63, %65, %cst_21 {dimension_numbers = #tpu.dot_dimension_numbers<[1], [0], [0], [1], [0, 0, 1, 1], [], []>} : vector<256x32xbf16>, vector<32x32xbf16>, vector<256x32xf32> -> vector<256x32xf32>
    %67 = arith.addf %59, %66 : vector<256x32xf32>
    %c8 = arith.constant 8 : index
    %c0_22 = arith.constant 0 : index
    %68 = vector.load %arg11[%c8, %c0_22] : memref<304x32xf32, #tpu.memory_space<vmem>>, vector<256x32xf32>
    %69 = arith.truncf %68 : vector<256x32xf32> to vector<256x32xbf16>
    %c1 = arith.constant 1 : index
    %c0_23 = arith.constant 0 : index
    %c0_24 = arith.constant 0 : index
    %70 = vector.load %arg4[%c1, %c0_23, %c0_24] : memref<9x32x32xbf16, #tpu.memory_space<vmem>>, vector<1x32x32xbf16>
    %71 = vector.shape_cast %70 : vector<1x32x32xbf16> to vector<32x32xbf16>
    %cst_25 = arith.constant dense<0.000000e+00> : vector<256x32xf32>
    %72 = tpu.matmul %69, %71, %cst_25 {dimension_numbers = #tpu.dot_dimension_numbers<[1], [0], [0], [1], [0, 0, 1, 1], [], []>} : vector<256x32xbf16>, vector<32x32xbf16>, vector<256x32xf32> -> vector<256x32xf32>
    %73 = arith.addf %67, %72 : vector<256x32xf32>
    %c9 = arith.constant 9 : index
    %c0_26 = arith.constant 0 : index
    %74 = vector.load %arg11[%c9, %c0_26] : memref<304x32xf32, #tpu.memory_space<vmem>>, vector<256x32xf32>
    %75 = vector.broadcast %52 : vector<256x1xf32> to vector<256x32xf32>
    %76 = arith.mulf %74, %75 : vector<256x32xf32>
    %77 = arith.truncf %76 : vector<256x32xf32> to vector<256x32xbf16>
    %c2 = arith.constant 2 : index
    %c0_27 = arith.constant 0 : index
    %c0_28 = arith.constant 0 : index
    %78 = vector.load %arg4[%c2, %c0_27, %c0_28] : memref<9x32x32xbf16, #tpu.memory_space<vmem>>, vector<1x32x32xbf16>
    %79 = vector.shape_cast %78 : vector<1x32x32xbf16> to vector<32x32xbf16>
    %cst_29 = arith.constant dense<0.000000e+00> : vector<256x32xf32>
    %80 = tpu.matmul %77, %79, %cst_29 {dimension_numbers = #tpu.dot_dimension_numbers<[1], [0], [0], [1], [0, 0, 1, 1], [], []>} : vector<256x32xbf16>, vector<32x32xbf16>, vector<256x32xf32> -> vector<256x32xf32>
    %81 = arith.addf %73, %80 : vector<256x32xf32>
    %c23 = arith.constant 23 : index
    %c0_30 = arith.constant 0 : index
    %82 = vector.load %arg11[%c23, %c0_30] : memref<304x32xf32, #tpu.memory_space<vmem>>, vector<256x32xf32>
    %83 = vector.broadcast %56 : vector<256x1xf32> to vector<256x32xf32>
    %84 = arith.mulf %82, %83 : vector<256x32xf32>
    %85 = arith.truncf %84 : vector<256x32xf32> to vector<256x32xbf16>
    %c3 = arith.constant 3 : index
    %c0_31 = arith.constant 0 : index
    %c0_32 = arith.constant 0 : index
    %86 = vector.load %arg4[%c3, %c0_31, %c0_32] : memref<9x32x32xbf16, #tpu.memory_space<vmem>>, vector<1x32x32xbf16>
    %87 = vector.shape_cast %86 : vector<1x32x32xbf16> to vector<32x32xbf16>
    %cst_33 = arith.constant dense<0.000000e+00> : vector<256x32xf32>
    %88 = tpu.matmul %85, %87, %cst_33 {dimension_numbers = #tpu.dot_dimension_numbers<[1], [0], [0], [1], [0, 0, 1, 1], [], []>} : vector<256x32xbf16>, vector<32x32xbf16>, vector<256x32xf32> -> vector<256x32xf32>
    %89 = arith.addf %81, %88 : vector<256x32xf32>
    %c24_34 = arith.constant 24 : index
    %c0_35 = arith.constant 0 : index
    %90 = vector.load %arg11[%c24_34, %c0_35] : memref<304x32xf32, #tpu.memory_space<vmem>>, vector<256x32xf32>
    %91 = arith.truncf %90 : vector<256x32xf32> to vector<256x32xbf16>
    %c4 = arith.constant 4 : index
    %c0_36 = arith.constant 0 : index
    %c0_37 = arith.constant 0 : index
    %92 = vector.load %arg4[%c4, %c0_36, %c0_37] : memref<9x32x32xbf16, #tpu.memory_space<vmem>>, vector<1x32x32xbf16>
    %93 = vector.shape_cast %92 : vector<1x32x32xbf16> to vector<32x32xbf16>
    %cst_38 = arith.constant dense<0.000000e+00> : vector<256x32xf32>
    %94 = tpu.matmul %91, %93, %cst_38 {dimension_numbers = #tpu.dot_dimension_numbers<[1], [0], [0], [1], [0, 0, 1, 1], [], []>} : vector<256x32xbf16>, vector<32x32xbf16>, vector<256x32xf32> -> vector<256x32xf32>
    %95 = arith.addf %89, %94 : vector<256x32xf32>
    %c25 = arith.constant 25 : index
    %c0_39 = arith.constant 0 : index
    %96 = vector.load %arg11[%c25, %c0_39] : memref<304x32xf32, #tpu.memory_space<vmem>>, vector<256x32xf32>
    %97 = vector.broadcast %52 : vector<256x1xf32> to vector<256x32xf32>
    %98 = arith.mulf %96, %97 : vector<256x32xf32>
    %99 = arith.truncf %98 : vector<256x32xf32> to vector<256x32xbf16>
    %c5 = arith.constant 5 : index
    %c0_40 = arith.constant 0 : index
    %c0_41 = arith.constant 0 : index
    %100 = vector.load %arg4[%c5, %c0_40, %c0_41] : memref<9x32x32xbf16, #tpu.memory_space<vmem>>, vector<1x32x32xbf16>
    %101 = vector.shape_cast %100 : vector<1x32x32xbf16> to vector<32x32xbf16>
    %cst_42 = arith.constant dense<0.000000e+00> : vector<256x32xf32>
    %102 = tpu.matmul %99, %101, %cst_42 {dimension_numbers = #tpu.dot_dimension_numbers<[1], [0], [0], [1], [0, 0, 1, 1], [], []>} : vector<256x32xbf16>, vector<32x32xbf16>, vector<256x32xf32> -> vector<256x32xf32>
    %103 = arith.addf %95, %102 : vector<256x32xf32>
    %c39 = arith.constant 39 : index
    %c0_43 = arith.constant 0 : index
    %104 = vector.load %arg11[%c39, %c0_43] : memref<304x32xf32, #tpu.memory_space<vmem>>, vector<256x32xf32>
    %105 = vector.broadcast %56 : vector<256x1xf32> to vector<256x32xf32>
    %106 = arith.mulf %104, %105 : vector<256x32xf32>
    %107 = arith.truncf %106 : vector<256x32xf32> to vector<256x32xbf16>
    %c6 = arith.constant 6 : index
    %c0_44 = arith.constant 0 : index
    %c0_45 = arith.constant 0 : index
    %108 = vector.load %arg4[%c6, %c0_44, %c0_45] : memref<9x32x32xbf16, #tpu.memory_space<vmem>>, vector<1x32x32xbf16>
    %109 = vector.shape_cast %108 : vector<1x32x32xbf16> to vector<32x32xbf16>
    %cst_46 = arith.constant dense<0.000000e+00> : vector<256x32xf32>
    %110 = tpu.matmul %107, %109, %cst_46 {dimension_numbers = #tpu.dot_dimension_numbers<[1], [0], [0], [1], [0, 0, 1, 1], [], []>} : vector<256x32xbf16>, vector<32x32xbf16>, vector<256x32xf32> -> vector<256x32xf32>
    %111 = arith.addf %103, %110 : vector<256x32xf32>
    %c40 = arith.constant 40 : index
    %c0_47 = arith.constant 0 : index
    %112 = vector.load %arg11[%c40, %c0_47] : memref<304x32xf32, #tpu.memory_space<vmem>>, vector<256x32xf32>
    %113 = arith.truncf %112 : vector<256x32xf32> to vector<256x32xbf16>
    %c7_48 = arith.constant 7 : index
    %c0_49 = arith.constant 0 : index
    %c0_50 = arith.constant 0 : index
    %114 = vector.load %arg4[%c7_48, %c0_49, %c0_50] : memref<9x32x32xbf16, #tpu.memory_space<vmem>>, vector<1x32x32xbf16>
    %115 = vector.shape_cast %114 : vector<1x32x32xbf16> to vector<32x32xbf16>
    %cst_51 = arith.constant dense<0.000000e+00> : vector<256x32xf32>
    %116 = tpu.matmul %113, %115, %cst_51 {dimension_numbers = #tpu.dot_dimension_numbers<[1], [0], [0], [1], [0, 0, 1, 1], [], []>} : vector<256x32xbf16>, vector<32x32xbf16>, vector<256x32xf32> -> vector<256x32xf32>
    %117 = arith.addf %111, %116 : vector<256x32xf32>
    %c41 = arith.constant 41 : index
    %c0_52 = arith.constant 0 : index
    %118 = vector.load %arg11[%c41, %c0_52] : memref<304x32xf32, #tpu.memory_space<vmem>>, vector<256x32xf32>
    %119 = vector.broadcast %52 : vector<256x1xf32> to vector<256x32xf32>
    %120 = arith.mulf %118, %119 : vector<256x32xf32>
    %121 = arith.truncf %120 : vector<256x32xf32> to vector<256x32xbf16>
    %c8_53 = arith.constant 8 : index
    %c0_54 = arith.constant 0 : index
    %c0_55 = arith.constant 0 : index
    %122 = vector.load %arg4[%c8_53, %c0_54, %c0_55] : memref<9x32x32xbf16, #tpu.memory_space<vmem>>, vector<1x32x32xbf16>
    %123 = vector.shape_cast %122 : vector<1x32x32xbf16> to vector<32x32xbf16>
    %cst_56 = arith.constant dense<0.000000e+00> : vector<256x32xf32>
    %124 = tpu.matmul %121, %123, %cst_56 {dimension_numbers = #tpu.dot_dimension_numbers<[1], [0], [0], [1], [0, 0, 1, 1], [], []>} : vector<256x32xbf16>, vector<32x32xbf16>, vector<256x32xf32> -> vector<256x32xf32>
    %125 = arith.addf %117, %124 : vector<256x32xf32>
    %cst_57 = arith.constant 0.000000e+00 : f32
    %126 = vector.broadcast %cst_57 : f32 to vector<256x32xf32>
    %127 = arith.cmpf ogt, %125, %126 : vector<256x32xf32>
    %cst_58 = arith.constant 2.000000e-01 : f32
    %128 = vector.broadcast %cst_58 : f32 to vector<256x32xf32>
    %129 = arith.mulf %128, %125 : vector<256x32xf32>
    %130 = arith.select %127, %125, %129 : vector<256x32xi1>, vector<256x32xf32>
    %c24_59 = arith.constant 24 : index
    %c0_60 = arith.constant 0 : index
    %131 = vector.load %arg11[%c24_59, %c0_60] : memref<304x32xf32, #tpu.memory_space<vmem>>, vector<256x32xf32>
    tpu.vector_store %arg11[%c24_59, %c0_60], %130 {strides = array<i32>} : memref<304x32xf32, #tpu.memory_space<vmem>>, vector<256x32xf32>,
    %c0_61 = arith.constant 0 : index
    %c0_62 = arith.constant 0 : index
    %132 = vector.load %arg7[%c0_61, %c0_62] : memref<1x32xf32, #tpu.memory_space<vmem>>, vector<1x32xf32>
    %133 = vector.shape_cast %132 : vector<1x32xf32> to vector<1x32xf32>
    %134 = vector.broadcast %133 : vector<1x32xf32> to vector<256x32xf32>
    %c7_63 = arith.constant 7 : index
    %c0_64 = arith.constant 0 : index
    %135 = vector.load %arg11[%c7_63, %c0_64] : memref<304x32xf32, #tpu.memory_space<vmem>>, vector<256x32xf32>
    %136 = vector.broadcast %56 : vector<256x1xf32> to vector<256x32xf32>
    %137 = arith.mulf %135, %136 : vector<256x32xf32>
    %138 = arith.truncf %137 : vector<256x32xf32> to vector<256x32xbf16>
    %c0_65 = arith.constant 0 : index
    %c0_66 = arith.constant 0 : index
    %c0_67 = arith.constant 0 : index
    %139 = vector.load %arg6[%c0_65, %c0_66, %c0_67] : memref<9x32x32xbf16, #tpu.memory_space<vmem>>, vector<1x32x32xbf16>
    %140 = vector.shape_cast %139 : vector<1x32x32xbf16> to vector<32x32xbf16>
    %cst_68 = arith.constant dense<0.000000e+00> : vector<256x32xf32>
    %141 = tpu.matmul %138, %140, %cst_68 {dimension_numbers = #tpu.dot_dimension_numbers<[1], [0], [0], [1], [0, 0, 1, 1], [], []>} : vector<256x32xbf16>, vector<32x32xbf16>, vector<256x32xf32> -> vector<256x32xf32>
    %142 = arith.addf %134, %141 : vector<256x32xf32>
    %c8_69 = arith.constant 8 : index
    %c0_70 = arith.constant 0 : index
    %143 = vector.load %arg11[%c8_69, %c0_70] : memref<304x32xf32, #tpu.memory_space<vmem>>, vector<256x32xf32>
    %144 = arith.truncf %143 : vector<256x32xf32> to vector<256x32xbf16>
    %c1_71 = arith.constant 1 : index
    %c0_72 = arith.constant 0 : index
    %c0_73 = arith.constant 0 : index
    %145 = vector.load %arg6[%c1_71, %c0_72, %c0_73] : memref<9x32x32xbf16, #tpu.memory_space<vmem>>, vector<1x32x32xbf16>
    %146 = vector.shape_cast %145 : vector<1x32x32xbf16> to vector<32x32xbf16>
    %cst_74 = arith.constant dense<0.000000e+00> : vector<256x32xf32>
    %147 = tpu.matmul %144, %146, %cst_74 {dimension_numbers = #tpu.dot_dimension_numbers<[1], [0], [0], [1], [0, 0, 1, 1], [], []>} : vector<256x32xbf16>, vector<32x32xbf16>, vector<256x32xf32> -> vector<256x32xf32>
    %148 = arith.addf %142, %147 : vector<256x32xf32>
    %c9_75 = arith.constant 9 : index
    %c0_76 = arith.constant 0 : index
    %149 = vector.load %arg11[%c9_75, %c0_76] : memref<304x32xf32, #tpu.memory_space<vmem>>, vector<256x32xf32>
    %150 = vector.broadcast %52 : vector<256x1xf32> to vector<256x32xf32>
    %151 = arith.mulf %149, %150 : vector<256x32xf32>
    %152 = arith.truncf %151 : vector<256x32xf32> to vector<256x32xbf16>
    %c2_77 = arith.constant 2 : index
    %c0_78 = arith.constant 0 : index
    %c0_79 = arith.constant 0 : index
    %153 = vector.load %arg6[%c2_77, %c0_78, %c0_79] : memref<9x32x32xbf16, #tpu.memory_space<vmem>>, vector<1x32x32xbf16>
    %154 = vector.shape_cast %153 : vector<1x32x32xbf16> to vector<32x32xbf16>
    %cst_80 = arith.constant dense<0.000000e+00> : vector<256x32xf32>
    %155 = tpu.matmul %152, %154, %cst_80 {dimension_numbers = #tpu.dot_dimension_numbers<[1], [0], [0], [1], [0, 0, 1, 1], [], []>} : vector<256x32xbf16>, vector<32x32xbf16>, vector<256x32xf32> -> vector<256x32xf32>
    %156 = arith.addf %148, %155 : vector<256x32xf32>
    %c23_81 = arith.constant 23 : index
    %c0_82 = arith.constant 0 : index
    %157 = vector.load %arg11[%c23_81, %c0_82] : memref<304x32xf32, #tpu.memory_space<vmem>>, vector<256x32xf32>
    %158 = vector.broadcast %56 : vector<256x1xf32> to vector<256x32xf32>
    %159 = arith.mulf %157, %158 : vector<256x32xf32>
    %160 = arith.truncf %159 : vector<256x32xf32> to vector<256x32xbf16>
    %c3_83 = arith.constant 3 : index
    %c0_84 = arith.constant 0 : index
    %c0_85 = arith.constant 0 : index
    %161 = vector.load %arg6[%c3_83, %c0_84, %c0_85] : memref<9x32x32xbf16, #tpu.memory_space<vmem>>, vector<1x32x32xbf16>
    %162 = vector.shape_cast %161 : vector<1x32x32xbf16> to vector<32x32xbf16>
    %cst_86 = arith.constant dense<0.000000e+00> : vector<256x32xf32>
    %163 = tpu.matmul %160, %162, %cst_86 {dimension_numbers = #tpu.dot_dimension_numbers<[1], [0], [0], [1], [0, 0, 1, 1], [], []>} : vector<256x32xbf16>, vector<32x32xbf16>, vector<256x32xf32> -> vector<256x32xf32>
    %164 = arith.addf %156, %163 : vector<256x32xf32>
    %c24_87 = arith.constant 24 : index
    %c0_88 = arith.constant 0 : index
    %165 = vector.load %arg11[%c24_87, %c0_88] : memref<304x32xf32, #tpu.memory_space<vmem>>, vector<256x32xf32>
    %166 = arith.truncf %165 : vector<256x32xf32> to vector<256x32xbf16>
    %c4_89 = arith.constant 4 : index
    %c0_90 = arith.constant 0 : index
    %c0_91 = arith.constant 0 : index
    %167 = vector.load %arg6[%c4_89, %c0_90, %c0_91] : memref<9x32x32xbf16, #tpu.memory_space<vmem>>, vector<1x32x32xbf16>
    %168 = vector.shape_cast %167 : vector<1x32x32xbf16> to vector<32x32xbf16>
    %cst_92 = arith.constant dense<0.000000e+00> : vector<256x32xf32>
    %169 = tpu.matmul %166, %168, %cst_92 {dimension_numbers = #tpu.dot_dimension_numbers<[1], [0], [0], [1], [0, 0, 1, 1], [], []>} : vector<256x32xbf16>, vector<32x32xbf16>, vector<256x32xf32> -> vector<256x32xf32>
    %170 = arith.addf %164, %169 : vector<256x32xf32>
    %c25_93 = arith.constant 25 : index
    %c0_94 = arith.constant 0 : index
    %171 = vector.load %arg11[%c25_93, %c0_94] : memref<304x32xf32, #tpu.memory_space<vmem>>, vector<256x32xf32>
    %172 = vector.broadcast %52 : vector<256x1xf32> to vector<256x32xf32>
    %173 = arith.mulf %171, %172 : vector<256x32xf32>
    %174 = arith.truncf %173 : vector<256x32xf32> to vector<256x32xbf16>
    %c5_95 = arith.constant 5 : index
    %c0_96 = arith.constant 0 : index
    %c0_97 = arith.constant 0 : index
    %175 = vector.load %arg6[%c5_95, %c0_96, %c0_97] : memref<9x32x32xbf16, #tpu.memory_space<vmem>>, vector<1x32x32xbf16>
    %176 = vector.shape_cast %175 : vector<1x32x32xbf16> to vector<32x32xbf16>
    %cst_98 = arith.constant dense<0.000000e+00> : vector<256x32xf32>
    %177 = tpu.matmul %174, %176, %cst_98 {dimension_numbers = #tpu.dot_dimension_numbers<[1], [0], [0], [1], [0, 0, 1, 1], [], []>} : vector<256x32xbf16>, vector<32x32xbf16>, vector<256x32xf32> -> vector<256x32xf32>
    %178 = arith.addf %170, %177 : vector<256x32xf32>
    %c39_99 = arith.constant 39 : index
    %c0_100 = arith.constant 0 : index
    %179 = vector.load %arg11[%c39_99, %c0_100] : memref<304x32xf32, #tpu.memory_space<vmem>>, vector<256x32xf32>
    %180 = vector.broadcast %56 : vector<256x1xf32> to vector<256x32xf32>
    %181 = arith.mulf %179, %180 : vector<256x32xf32>
    %182 = arith.truncf %181 : vector<256x32xf32> to vector<256x32xbf16>
    %c6_101 = arith.constant 6 : index
    %c0_102 = arith.constant 0 : index
    %c0_103 = arith.constant 0 : index
    %183 = vector.load %arg6[%c6_101, %c0_102, %c0_103] : memref<9x32x32xbf16, #tpu.memory_space<vmem>>, vector<1x32x32xbf16>
    %184 = vector.shape_cast %183 : vector<1x32x32xbf16> to vector<32x32xbf16>
    %cst_104 = arith.constant dense<0.000000e+00> : vector<256x32xf32>
    %185 = tpu.matmul %182, %184, %cst_104 {dimension_numbers = #tpu.dot_dimension_numbers<[1], [0], [0], [1], [0, 0, 1, 1], [], []>} : vector<256x32xbf16>, vector<32x32xbf16>, vector<256x32xf32> -> vector<256x32xf32>
    %186 = arith.addf %178, %185 : vector<256x32xf32>
    %c40_105 = arith.constant 40 : index
    %c0_106 = arith.constant 0 : index
    %187 = vector.load %arg11[%c40_105, %c0_106] : memref<304x32xf32, #tpu.memory_space<vmem>>, vector<256x32xf32>
    %188 = arith.truncf %187 : vector<256x32xf32> to vector<256x32xbf16>
    %c7_107 = arith.constant 7 : index
    %c0_108 = arith.constant 0 : index
    %c0_109 = arith.constant 0 : index
    %189 = vector.load %arg6[%c7_107, %c0_108, %c0_109] : memref<9x32x32xbf16, #tpu.memory_space<vmem>>, vector<1x32x32xbf16>
    %190 = vector.shape_cast %189 : vector<1x32x32xbf16> to vector<32x32xbf16>
    %cst_110 = arith.constant dense<0.000000e+00> : vector<256x32xf32>
    %191 = tpu.matmul %188, %190, %cst_110 {dimension_numbers = #tpu.dot_dimension_numbers<[1], [0], [0], [1], [0, 0, 1, 1], [], []>} : vector<256x32xbf16>, vector<32x32xbf16>, vector<256x32xf32> -> vector<256x32xf32>
    %192 = arith.addf %186, %191 : vector<256x32xf32>
    %c41_111 = arith.constant 41 : index
    %c0_112 = arith.constant 0 : index
    %193 = vector.load %arg11[%c41_111, %c0_112] : memref<304x32xf32, #tpu.memory_space<vmem>>, vector<256x32xf32>
    %194 = vector.broadcast %52 : vector<256x1xf32> to vector<256x32xf32>
    %195 = arith.mulf %193, %194 : vector<256x32xf32>
    %196 = arith.truncf %195 : vector<256x32xf32> to vector<256x32xbf16>
    %c8_113 = arith.constant 8 : index
    %c0_114 = arith.constant 0 : index
    %c0_115 = arith.constant 0 : index
    %197 = vector.load %arg6[%c8_113, %c0_114, %c0_115] : memref<9x32x32xbf16, #tpu.memory_space<vmem>>, vector<1x32x32xbf16>
    %198 = vector.shape_cast %197 : vector<1x32x32xbf16> to vector<32x32xbf16>
    %cst_116 = arith.constant dense<0.000000e+00> : vector<256x32xf32>
    %199 = tpu.matmul %196, %198, %cst_116 {dimension_numbers = #tpu.dot_dimension_numbers<[1], [0], [0], [1], [0, 0, 1, 1], [], []>} : vector<256x32xbf16>, vector<32x32xbf16>, vector<256x32xf32> -> vector<256x32xf32>
    %200 = arith.addf %192, %199 : vector<256x32xf32>
    %cst_117 = arith.constant 0.000000e+00 : f32
    %201 = vector.broadcast %cst_117 : f32 to vector<256x32xf32>
    %202 = arith.cmpf ogt, %200, %201 : vector<256x32xf32>
    %cst_118 = arith.constant 2.000000e-01 : f32
    %203 = vector.broadcast %cst_118 : f32 to vector<256x32xf32>
    %204 = arith.mulf %203, %200 : vector<256x32xf32>
    %205 = arith.select %202, %200, %204 : vector<256x32xi1>, vector<256x32xf32>
    %cst_119 = arith.constant dense<0.000000e+00> : vector<32xf32>
    %206 = vector.multi_reduction <add>, %205, %cst_119 [0] : vector<256x32xf32> to vector<32xf32>
    %207 = vector.shape_cast %206 : vector<32xf32> to vector<1x32xf32>
    %cst_120 = arith.constant 2.560000e+02 : f32
    %208 = vector.broadcast %cst_120 : f32 to vector<1x32xf32>
    %209 = arith.divf %207, %208 : vector<1x32xf32>
    %c0_121 = arith.constant 0 : index
    %c0_122 = arith.constant 0 : index
    %210 = vector.load %arg8[%c0_121, %c0_122] : memref<1x32xf32, #tpu.memory_space<vmem>>, vector<1x32xf32>
    %211 = arith.mulf %209, %210 : vector<1x32xf32>
    %cst_123 = arith.constant dense<0.000000e+00> : vector<1xf32>
    %212 = vector.multi_reduction <add>, %211, %cst_123 [1] : vector<1x32xf32> to vector<1xf32>
    %213 = vector.shape_cast %212 : vector<1xf32> to vector<1x1xf32>
    %c0_124 = arith.constant 0 : index
    %c0_125 = arith.constant 0 : index
    %214 = vector.load %arg9[%c0_124, %c0_125] : memref<1x1xf32, #tpu.memory_space<vmem>>, vector<1x1xf32>
    %215 = arith.addf %213, %214 : vector<1x1xf32>
    %c0_126 = arith.constant 0 : index
    %c0_127 = arith.constant 0 : index
    %c0_128 = arith.constant 0 : index
    %216 = vector.load %arg10[%c0_126, %c0_127, %c0_128] : memref<1x1x1xf32, #tpu.memory_space<vmem>>, vector<1x1x1xf32>
    %217 = vector.shape_cast %216 : vector<1x1x1xf32> to vector<1x1xf32>
    %218 = vector.shape_cast %215 : vector<1x1xf32> to vector<1x1x1xf32>
    tpu.vector_store %arg10[%c0_126, %c0_127, %c0_128], %218 {strides = array<i32>} : memref<1x1x1xf32, #tpu.memory_space<vmem>>, vector<1x1x1xf32>,
    return
  }
  func.func @transform_0(%arg0: i32) -> (i32, i32, i32) {
    %c0_i32 = arith.constant 0 : i32
    %c0_i32_0 = arith.constant 0 : i32
    %c0_i32_1 = arith.constant 0 : i32
    return %arg0, %c0_i32, %c0_i32_0 : i32, i32, i32
  }
  func.func @transform_1(%arg0: i32) -> (i32, i32) {
    %c0_i32 = arith.constant 0 : i32
    %c0_i32_0 = arith.constant 0 : i32
    %c0_i32_1 = arith.constant 0 : i32
    return %c0_i32, %c0_i32_0 : i32, i32
  }
  func.func @transform_2(%arg0: i32) -> (i32, i32) {
    %c0_i32 = arith.constant 0 : i32
    %c0_i32_0 = arith.constant 0 : i32
    %c0_i32_1 = arith.constant 0 : i32
    return %c0_i32, %c0_i32_0 : i32, i32
  }
  func.func @transform_3(%arg0: i32) -> (i32, i32, i32) {
    %c0_i32 = arith.constant 0 : i32
    %c0_i32_0 = arith.constant 0 : i32
    %c0_i32_1 = arith.constant 0 : i32
    %c0_i32_2 = arith.constant 0 : i32
    return %c0_i32, %c0_i32_0, %c0_i32_1 : i32, i32, i32
  }
  func.func @transform_4(%arg0: i32) -> (i32, i32) {
    %c0_i32 = arith.constant 0 : i32
    %c0_i32_0 = arith.constant 0 : i32
    %c0_i32_1 = arith.constant 0 : i32
    return %c0_i32, %c0_i32_0 : i32, i32
  }
  func.func @transform_5(%arg0: i32) -> (i32, i32, i32) {
    %c0_i32 = arith.constant 0 : i32
    %c0_i32_0 = arith.constant 0 : i32
    %c0_i32_1 = arith.constant 0 : i32
    %c0_i32_2 = arith.constant 0 : i32
    return %c0_i32, %c0_i32_0, %c0_i32_1 : i32, i32, i32
  }
  func.func @transform_6(%arg0: i32) -> (i32, i32) {
    %c0_i32 = arith.constant 0 : i32
    %c0_i32_0 = arith.constant 0 : i32
    %c0_i32_1 = arith.constant 0 : i32
    return %c0_i32, %c0_i32_0 : i32, i32
  }
  func.func @transform_7(%arg0: i32) -> (i32, i32) {
    %c0_i32 = arith.constant 0 : i32
    %c0_i32_0 = arith.constant 0 : i32
    %c0_i32_1 = arith.constant 0 : i32
    return %c0_i32, %c0_i32_0 : i32, i32
  }
  func.func @transform_8(%arg0: i32) -> (i32, i32) {
    %c0_i32 = arith.constant 0 : i32
    %c0_i32_0 = arith.constant 0 : i32
    %c0_i32_1 = arith.constant 0 : i32
    return %c0_i32, %c0_i32_0 : i32, i32
  }
  func.func @transform_9(%arg0: i32) -> (i32, i32, i32) {
    %c0_i32 = arith.constant 0 : i32
    %c0_i32_0 = arith.constant 0 : i32
    %c0_i32_1 = arith.constant 0 : i32
    return %arg0, %c0_i32, %c0_i32_0 : i32, i32, i32
  }
}

</mosaic_0001>

<bundles_post_ra>
// kernel: tpu_custom_call.1
= control target key start
LH: loop header
LB: loop body
LE: loop exit
PB: predicated region body
PF: predicated region fallthrough
CT: control target
= control target key end

     0   :  { %s10159_s11 = smov 0   ;;  %s12513_s0 = inlined_call_operand.vmem [shape: f32[2,256,3], index: 0, kind: input, shape index: {}]   ;;  %s12514_s1 = inlined_call_operand.vmem [shape: f32[3,32], index: 1, kind: input, shape index: {}]   ;;  %s12515_s2 = inlined_call_operand.vmem [shape: f32[1,32], index: 2, kind: input, shape index: {}]   ;;  %s12516_s3 = inlined_call_operand.vmem [shape: bf16[9,32,32], index: 3, kind: input, shape index: {}]   ;;  %s12517_s4 = inlined_call_operand.vmem [shape: f32[1,32], index: 4, kind: input, shape index: {}]   ;;  %s12518_s5 = inlined_call_operand.vmem [shape: bf16[9,32,32], index: 5, kind: input, shape index: {}]   ;;  %s12519_s6 = inlined_call_operand.vmem [shape: f32[1,32], index: 6, kind: input, shape index: {}]   ;;  %s12520_s7 = inlined_call_operand.vmem [shape: f32[1,32], index: 7, kind: input, shape index: {}]   ;;  %s12521_s8 = inlined_call_operand.<no memory space> [shape: f32[1,1], index: 8, kind: input, shape index: {}]   ;;  %s12522_s9 = inlined_call_operand.vmem [shape: f32[2,1,1], index: 9, kind: output, shape index: {}]  }
   0x1   :  { %v14_v0 = vstv %s12521_s8 }
   0x2   :  { %15 = vst [vmem:[#allocation3] sm:$0x1] %v14_v0 }
   0x3 LB: > { %s8024_s12 = sadd.s32 4294967295, %s10100_s11   ;;  %p8028_p0 = scmp.ge.s32.totalorder %s10100_s11, 1  ;;  %s10100_s11 = sphi %s10159_s11, %s21_s11  }
   0x4   : > { %p289_p1 = scmp.lt.s32.totalorder %s10100_s11, 3 }
   0x6   : > { %p290_p2 = pnand %p8028_p0, %p289_p1 }
   0x8   : > { %293 = sbr.rel (%p290_p2) target bundleno = 2060 (0x80c), region = 56 }
   0xf   : > { %p323_p3 = scmp.lt.s32.totalorder %s8024_s12, 1  ;;  %v10102_v1 = vmov 2   ;;  %v10103_v2 = vmov 1   ;;  %v10104_v10 = vmov 0   ;;  %vm1088_vm0 = vcmask 261120   ;;  %v10057_v19 = vld [vmem:[%s12516_s3] sm:$0xff]  }
  0x10   : > { %10018 = vset.pattern.permute.xlu0 %v10102_v1  ;;  %10017 = vset.pattern.permute.xlu1 %v10103_v2  ;;  %v12523_v14 = vmov 0.0   ;;  %v532_v16 = vlaneseq  ;;  %v10058_v23 = vld [vmem:[%s12516_s3 + $0x8] sm:$0xff]   ;;  %v364_v57 = vld [vmem:[%s12514_s1] sm:$0x7] }
  0x11   : > { %s13059_s12 = smov (!%p323_p3, %s8024_s12), 1  ;;  %1092 = vst.msk [vmem:[#allocation2 + $0x18] sm:$0xff] %vm1088_vm0, %v12523_v14  ;;  %1089 = vst.msk [vmem:[#allocation2] sm:$0xff] %vm1088_vm0, %v12523_v14  ;;  %8781 = vmatprep.subr.bf16.mxu0 %v10057_v19 }
  0x12   : > { %s8456_s8 = sshll.u32 %s13059_s12, 8  ;;  %1090 = vst.msk [vmem:[#allocation2 + $0x8] sm:$0xff] %vm1088_vm0, %v12523_v14  ;;  %1091 = vst.msk [vmem:[#allocation2 + $0x10] sm:$0xff] %vm1088_vm0, %v12523_v14  ;;  %v10306_v18 = vshrl.u32 %v532_v16, 7  ;;  %8782 = vmatpush3.bf16.msra.mxu0 %v10057_v19  ;;  %s330_s22 = scalar_lea.vmem %s12522_s9, %s13059_s12 }
  0x13   : > { %s10175_s15 = scalar_lea.vmem %s12513_s0, %s8456_s8  ;;  %1093 = vst.msk [vmem:[#allocation2 + $0x20] sm:$0xff] %vm1088_vm0, %v12523_v14  ;;  %1094 = vst.msk [vmem:[#allocation2 + $0x28] sm:$0xff] %vm1088_vm0, %v12523_v14  ;;  %8783 = vmatprep.subr.bf16.mxu0 %v10058_v23 }
  0x14   : > { %v10178_v3 = vld [vmem:[%s10175_s15] sm:$0xff]  ;;  %v10183_v4 = vld [vmem:[%s10175_s15 + $0x18] sm:$0xff]  ;;  %v10186_v5 = vld [vmem:[%s10175_s15 + $0x8] sm:$0xff]  ;;  %1095 = vst.msk [vmem:[#allocation2 + $0x30] sm:$0xff] %vm1088_vm0, %v12523_v14  ;;  %v1196_v20 = vand.u32 15, %v10306_v18  ;;  %v534_v54 = vsub.s32 0, %v10306_v18 }
  0x15   : > { %797 = vperm.xlu0 %10018, %v10178_v3   ;;  %601 = vperm.xlu1 %10017, %v10178_v3   ;;  %v10191_v6 = vld [vmem:[%s10175_s15 + $0x40] sm:$0xff]  ;;  %v10197_v7 = vld [vmem:[%s10175_s15 + $0x58] sm:$0xff]  ;;  %v334_v8 = vld [vmem:[%s10175_s15 + $0x10] sm:$0xff]  ;;  %1096 = vst.msk [vmem:[#allocation2 + $0x38] sm:$0xff] %vm1088_vm0, %v12523_v14  ;;  %v730_v58 = vsub.s32 1, %v10306_v18  ;;  %v926_v62 = vsub.s32 2, %v10306_v18 }
  0x16   : > { %v10201_v9 = vld [vmem:[%s10175_s15 + $0x80] sm:$0xff]  ;;  %v10209_v12 = vld [vmem:[%s10175_s15 + $0x98] sm:$0xff]  ;;  %1097 = vst.msk [vmem:[#allocation2 + $0x40] sm:$0xff] %vm1088_vm0, %v12523_v14  ;;  %1098 = vst.msk [vmem:[#allocation2 + $0x48] sm:$0xff] %vm1088_vm0, %v12523_v14  ;;  %vm1672_vm1 = vcmp.ne.s32.totalorder %v1196_v20, 0  ;;  %8784 = vmatpush3.bf16.msra.mxu0 %v10058_v23  ;;  %v10415_v59 = vrot.slane %v364_v57, %v534_v54 }
  0x17   : > { %v10206_v11 = vld [vmem:[%s10175_s15 + $0x20] sm:$0xff]  ;;  %1099 = vst.msk [vmem:[#allocation2 + $0x50] sm:$0xff] %vm1088_vm0, %v12523_v14  ;;  %1100 = vst.msk [vmem:[#allocation2 + $0x58] sm:$0xff] %vm1088_vm0, %v12523_v14  ;;  %v337_v15 = vld [vmem:[%s10175_s15 + $0x28] sm:$0xff]  ;;  %v10314_v22 = vsel %vm1672_vm1, 1.0, %v12523_v14  ;;  %v10420_v63 = vrot.slane %v364_v57, %v730_v58 }
  0x18   : > { %v10215_v13 = vld [vmem:[%s10175_s15 + $0xc0] sm:$0xff]  ;;  %1101 = vst.msk [vmem:[#allocation2 + $0x60] sm:$0xff] %vm1088_vm0, %v12523_v14  ;;  %1102 = vst.msk [vmem:[#allocation2 + $0x68] sm:$0xff] %vm1088_vm0, %v12523_v14  ;;  %v338_v17 = vld [vmem:[%s10175_s15 + $0x30] sm:$0xff] }
  0x19   : > { %809 = vperm.xlu0 %10018, %v10183_v4   ;;  %605 = vperm.xlu1 %10017, %v10186_v5   ;;  %1103 = vst.msk [vmem:[#allocation2 + $0x70] sm:$0xff] %vm1088_vm0, %v12523_v14  ;;  %1104 = vst.msk [vmem:[#allocation2 + $0x78] sm:$0xff] %vm1088_vm0, %v12523_v14  ;;  %v339_v21 = vld [vmem:[%s10175_s15 + $0x38] sm:$0xff]  ;;  %v1775_v24 = vld [vmem:[#allocation2 + $0x7] sm:$0xff] }
  0x1a   : > { %1105 = vst.msk [vmem:[#allocation2 + $0x80] sm:$0xff] %vm1088_vm0, %v12523_v14  ;;  %1106 = vst.msk [vmem:[#allocation2 + $0x88] sm:$0xff] %vm1088_vm0, %v12523_v14  ;;  %v345_v25 = vld [vmem:[%s10175_s15 + $0x68] sm:$0xff]  ;;  %v1807_v26 = vmul.f32 %v10314_v22, %v1775_v24  ;;  %v10324_v29 = vld [vmem:[%s10175_s15 + $0x70] sm:$0xff] }
  0x1b   : > { %1107 = vst.msk [vmem:[#allocation2 + $0x90] sm:$0xff] %vm1088_vm0, %v12523_v14  ;;  %1108 = vst.msk [vmem:[#allocation2 + $0x98] sm:$0xff] %vm1088_vm0, %v12523_v14  ;;  %v1776_v27 = vld [vmem:[#allocation2 + $0xf] sm:$0xff]  ;;  %v10342_v33 = vld [vmem:[%s10175_s15 + $0xd8] sm:$0xff] }
  0x1c   : > { %1109 = vst.msk [vmem:[#allocation2 + $0xa0] sm:$0xff] %vm1088_vm0, %v12523_v14  ;;  %1110 = vst.msk [vmem:[#allocation2 + $0xa8] sm:$0xff] %vm1088_vm0, %v12523_v14  ;;  %v1839_v28 = vpack.c.bf16 %v1776_v27, %v1807_v26  ;;  %v341_v30 = vld [vmem:[%s10175_s15 + $0x48] sm:$0xff]  ;;  %v10337_v32 = vld [vmem:[%s10175_s15 + $0xb0] sm:$0xff] }
  0x1d   : > { %829 = vperm.xlu0 %10018, %v10191_v6   ;;  %10019 = vset.pattern.permute.xlu1 %v10102_v1  ;;  %1111 = vst.msk [vmem:[#allocation2 + $0xb0] sm:$0xff] %vm1088_vm0, %v12523_v14  ;;  %1112 = vst.msk [vmem:[#allocation2 + $0xb8] sm:$0xff] %vm1088_vm0, %v12523_v14  ;;  %v10332_v31 = vld [vmem:[%s10175_s15 + $0xa8] sm:$0xff]  ;;  %v342_v35 = vld [vmem:[%s10175_s15 + $0x50] sm:$0xff] }
  0x1e   : > { %801 = vperm.xlu1 %10019, %v10186_v5   ;;  %1113 = vst.msk [vmem:[#allocation2 + $0xc0] sm:$0xff] %vm1088_vm0, %v12523_v14  ;;  %1114 = vst.msk [vmem:[#allocation2 + $0xc8] sm:$0xff] %vm1088_vm0, %v12523_v14  ;;  %8785 = vmatprep.mubr.msk.bf16.mxu0 %vm1088_vm0, %v1839_v28  ;;  %v10346_v34 = vld [vmem:[%s10175_s15 + $0xe8] sm:$0xff]  ;;  %v344_v36 = vld [vmem:[%s10175_s15 + $0x60] sm:$0xff] }
  0x1f   : > { %1115 = vst.msk [vmem:[#allocation2 + $0xd0] sm:$0xff] %vm1088_vm0, %v12523_v14  ;;  %1116 = vst.msk [vmem:[#allocation2 + $0xd8] sm:$0xff] %vm1088_vm0, %v12523_v14  ;;  %v349_v37 = vld [vmem:[%s10175_s15 + $0x88] sm:$0xff]  ;;  %v10364_v38 = vld [vmem:[%s10175_s15 + $0xa0] sm:$0xff] }
  0x20   : > { %1117 = vst.msk [vmem:[#allocation2 + $0xe0] sm:$0xff] %vm1088_vm0, %v12523_v14  ;;  %1118 = vst.msk [vmem:[#allocation2 + $0xe8] sm:$0xff] %vm1088_vm0, %v12523_v14  ;;  %v347_v39 = vld [vmem:[%s10175_s15 + $0x78] sm:$0xff]  ;;  %v10373_v40 = vld [vmem:[%s10175_s15 + $0xc8] sm:$0xff] }
  0x21   : > { %841 = vperm.xlu0 %10018, %v10197_v7   ;;  %1119 = vst.msk [vmem:[#allocation2 + $0xf0] sm:$0xff] %vm1088_vm0, %v12523_v14  ;;  %1120 = vst.msk [vmem:[#allocation2 + $0xf8] sm:$0xff] %vm1088_vm0, %v12523_v14  ;;  %v10377_v43 = vld [vmem:[%s10175_s15 + $0xe0] sm:$0xff]  ;;  %v10390_v48 = vld [vmem:[%s10175_s15 + $0xf0] sm:$0xff] }
  0x22   : > { %10020 = vset.pattern.permute.xlu1 %v10104_v10  ;;  %1121 = vst.msk [vmem:[#allocation2 + $0x100] sm:$0xff] %vm1088_vm0, %v12523_v14  ;;  %1122 = vst.msk [vmem:[#allocation2 + $0x108] sm:$0xff] %vm1088_vm0, %v12523_v14  ;;  %v10397_v51 = vld [vmem:[%s10175_s15 + $0xf8] sm:$0xff]  ;;  %v350_v56 = vld [vmem:[%s10175_s15 + $0x90] sm:$0xff] }
  0x23   : > { %384 = vperm.xlu1 %10020, %v334_v8   ;;  %1123 = vst.msk [vmem:[#allocation2 + $0x110] sm:$0xff] %vm1088_vm0, %v12523_v14  ;;  %1124 = vst.msk [vmem:[#allocation2 + $0x118] sm:$0xff] %vm1088_vm0, %v12523_v14 }
  0x24   : > { %1125 = vst.msk [vmem:[#allocation2 + $0x120] sm:$0xff] %vm1088_vm0, %v12523_v14  ;;  %1126 = vst.msk [vmem:[#allocation2 + $0x128] sm:$0xff] %vm1088_vm0, %v12523_v14 }
  0x25   : > { %861 = vperm.xlu0 %10018, %v10201_v9   ;;  %12717 = vst [vmem:[#allocation4_spill] sm:$0xff] %v10314_v22 }
  0x27   : > { %394 = vperm.xlu1 %10020, %v10206_v11  }
  0x29   : > { %873 = vperm.xlu0 %10018, %v10209_v12  }
  0x2b   : > { %10021 = vset.pattern.permute.xlu1 %v10103_v2 }
  0x2c   : > { %609 = vperm.xlu1 %10021, %v334_v8  }
  0x2d   : > { %893 = vperm.xlu0 %10018, %v10215_v13  }
  0x30   : > { %613 = vperm.xlu1 %10021, %v10183_v4  }
  0x31   : > { %10044 = vset.pattern.permute.xlu0 %v10104_v10 }
  0x32   : > { %374 = vperm.xlu0 %10044, %v10178_v3  }
  0x34   : > { %10022 = vset.pattern.permute.xlu1 %v10102_v1 }
  0x35   : > { %805 = vperm.xlu1 %10022, %v334_v8  }
  0x36   : > { %379 = vperm.xlu0 %10044, %v10186_v5  }
  0x39   : > { %10023 = vset.pattern.permute.xlu1 %v10103_v2 }
  0x3a   : > { %389 = vperm.xlu0 %10044, %v10183_v4   ;;  %621 = vperm.xlu1 %10023, %v337_v15   ;;  %v10427_v4 = vld [vmem:[%s12515_s2] ss:$0 sm:$0xff] }
  0x3e   : > { %399 = vperm.xlu0 %10044, %v337_v15   ;;  %10024 = vset.pattern.permute.xlu1 %v10102_v1 }
  0x3f   : > { %813 = vperm.xlu1 %10024, %v10206_v11  }
  0x42   : > { %404 = vperm.xlu0 %10044, %v338_v17  }
  0x43   : > { %817 = vperm.xlu1 %10024, %v337_v15  }
  0x46   : > { %429 = vperm.xlu0 %10044, %v10197_v7  }
  0x47   : > { %10025 = vset.pattern.permute.xlu1 %v10104_v10 }
  0x48   : > { %409 = vperm.xlu1 %10025, %v339_v21  }
  0x4a   : > { %439 = vperm.xlu0 %10044, %v345_v25  }
  0x4c   : > { %414 = vperm.xlu1 %10025, %v10191_v6  }
  0x4e   : > { %444 = vperm.xlu0 %10044, %v10324_v29  }
  0x50   : > { %419 = vperm.xlu1 %10025, %v341_v30  }
  0x52   : > { %469 = vperm.xlu0 %10044, %v10209_v12  }
  0x54   : > { %10026 = vset.pattern.permute.xlu1 %v10103_v2 }
  0x55   : > { %629 = vperm.xlu1 %10026, %v339_v21  }
  0x56   : > { %479 = vperm.xlu0 %10044, %v10332_v31  }
  0x59   : > { %10027 = vset.pattern.permute.xlu1 %v10102_v1 }
  0x5a   : > { %484 = vperm.xlu0 %10044, %v10337_v32   ;;  %821 = vperm.xlu1 %10027, %v338_v17  }
  0x5e   : > { %509 = vperm.xlu0 %10044, %v10342_v33   ;;  %825 = vperm.xlu1 %10027, %v339_v21  }
  0x62   : > { %519 = vperm.xlu0 %10044, %v10346_v34   ;;  %833 = vperm.xlu1 %10027, %v341_v30  }
  0x66   : > { %10047 = vset.pattern.permute.xlu0 %v10103_v2  ;;  %10028 = vset.pattern.permute.xlu1 %v10104_v10 }
  0x67   : > { %617 = vperm.xlu0 %10047, %v10206_v11   ;;  %424 = vperm.xlu1 %10028, %v342_v35  }
  0x6b   : > { %625 = vperm.xlu0 %10047, %v338_v17   ;;  %434 = vperm.xlu1 %10028, %v344_v36  }
  0x6f   : > { %633 = vperm.xlu0 %10047, %v10191_v6   ;;  %10029 = vset.pattern.permute.xlu1 %v10103_v2 }
  0x70   : > { %641 = vperm.xlu1 %10029, %v342_v35  }
  0x73   : > { %637 = vperm.xlu0 %10047, %v341_v30  }
  0x74   : > { %645 = vperm.xlu1 %10029, %v10197_v7   ;;  %v10430_v7 = vrot.slane %v364_v57, %v926_v62  ;;  %v1164_v62 = vadd.s32 32, %v10306_v18 }
  0x77   : > { %649 = vperm.xlu0 %10047, %v344_v36  }
  0x78   : > { %10030 = vset.pattern.permute.xlu1 %v10102_v1 }
  0x79   : > { %837 = vperm.xlu1 %10030, %v342_v35  }
  0x7b   : > { %657 = vperm.xlu0 %10047, %v10324_v29  }
  0x7d   : > { %10031 = vset.pattern.permute.xlu1 %v10103_v2 }
  0x7e   : > { %653 = vperm.xlu1 %10031, %v345_v25  }
  0x7f   : > { %665 = vperm.xlu0 %10047, %v10201_v9  }
  0x82   : > { %10032 = vset.pattern.permute.xlu1 %v10102_v1 }
  0x83   : > { %845 = vperm.xlu1 %10032, %v344_v36   ;;  %669 = vperm.xlu0 %10047, %v349_v37  }
  0x87   : > { %849 = vperm.xlu1 %10032, %v345_v25   ;;  %681 = vperm.xlu0 %10047, %v10364_v38  }
  0x8b   : > { %10033 = vset.pattern.permute.xlu1 %v10104_v10  ;;  %689 = vperm.xlu0 %10047, %v10337_v32  }
  0x8c   : > { %449 = vperm.xlu1 %10033, %v347_v39  }
  0x8f   : > { %697 = vperm.xlu0 %10047, %v10215_v13  }
  0x90   : > { %454 = vperm.xlu1 %10033, %v10201_v9  }
  0x93   : > { %701 = vperm.xlu0 %10047, %v10373_v40  }
  0x94   : > { %459 = vperm.xlu1 %10033, %v349_v37   ;;  %v602_v41 = vpop.permute.xlu1 %601  ;;  %v798_v42 = vpop.permute.xlu0 %797 }
  0x95   : > { %v732_v11 = vmul.f32 %v10420_v63, %v602_v41  ;;  %v928_v15 = vmul.f32 %v10430_v7, %v798_v42 }
  0x97   : > { %713 = vperm.xlu0 %10047, %v10377_v43  }
  0x98   : > { %10034 = vset.pattern.permute.xlu1 %v10103_v2  ;;  %v606_v44 = vpop.permute.xlu1 %605  ;;  %v10381_v45 = vpop.permute.xlu0 %809 }
  0x99   : > { %661 = vperm.xlu1 %10034, %v347_v39   ;;  %v733_v26 = vmul.f32 %v10420_v63, %v606_v44  ;;  %v931_v44 = vmul.f32 %v10430_v7, %v10381_v45 }
  0x9b   : > { %10050 = vset.pattern.permute.xlu0 %v10102_v1 }
  0x9c   : > { %v10384_v46 = vpop.permute.xlu0 %829  ;;  %905 = vperm.xlu0 %10050, %v10342_v33  }
  0x9d   : > { %10035 = vset.pattern.permute.xlu1 %v10102_v1  ;;  %v802_v47 = vpop.permute.xlu1 %801 }
  0x9e   : > { %853 = vperm.xlu1 %10035, %v10324_v29   ;;  %v929_v29 = vmul.f32 %v10430_v7, %v802_v47 }
  0xa0   : > { %v10392_v49 = vpop.permute.xlu0 %841  ;;  %10052 = vset.pattern.permute.xlu0 %v10104_v10 }
  0xa1   : > { %524 = vperm.xlu0 %10052, %v10390_v48  }
  0xa2   : > { %857 = vperm.xlu1 %10035, %v347_v39   ;;  %v385_v50 = vpop.permute.xlu1 %384 }
  0xa3   : > { %v538_v0 = vmul.f32 %v10415_v59, %v385_v50 }
  0xa4   : > { %v10399_v52 = vpop.permute.xlu0 %861 }
  0xa5   : > { %529 = vperm.xlu0 %10052, %v10397_v51   ;;  %v570_v9 = vadd.f32 %v10427_v4, %v538_v0 }
  0xa6   : > { %865 = vperm.xlu1 %10035, %v349_v37   ;;  %v10402_v53 = vpop.permute.xlu1 %394  ;;  %v1162_v37 = vadd.s32 16, %v10306_v18 }
  0xa8   : > { %v10405_v55 = vpop.permute.xlu0 %873 }
  0xa9   : > { %10056 = vset.pattern.permute.xlu0 %v10102_v1 }
  0xaa   : > { %10036 = vset.pattern.permute.xlu1 %v10104_v10  ;;  %921 = vperm.xlu0 %10056, %v10397_v51  }
  0xab   : > { %464 = vperm.xlu1 %10036, %v350_v56   ;;  %v610_v60 = vpop.permute.xlu1 %609 }
  0xac   : > { %v10417_v61 = vpop.permute.xlu0 %893  ;;  %v734_v5 = vmul.f32 %v10420_v63, %v610_v60  ;;  %v1210_v60 = vand.u32 15, %v1162_v37 }
  0xae   : > { %v766_v19 = vadd.f32 %v734_v5, %v570_v9  ;;  %vm1674_vm5 = vcmp.ne.s32.totalorder %v1210_v60, 0 }
  0xaf   : > { %474 = vperm.xlu1 %10036, %v10364_v38   ;;  %v614_v3 = vpop.permute.xlu1 %613 }
  0xb0   : > { %v735_v54 = vmul.f32 %v10420_v63, %v614_v3 }
  0xb1   : > { %v375_v6 = vpop.permute.xlu0 %374 }
  0xb2   : > { %v536_v8 = vmul.f32 %v10415_v59, %v375_v6 }
  0xb3   : > { %10037 = vset.pattern.permute.xlu1 %v10103_v2 }
  0xb4   : > { %v568_v16 = vadd.f32 %v10427_v4, %v536_v8  ;;  %673 = vperm.xlu1 %10037, %v350_v56   ;;  %v806_v17 = vpop.permute.xlu1 %805 }
  0xb5   : > { %v930_v20 = vmul.f32 %v10430_v7, %v806_v17  ;;  %v380_v21 = vpop.permute.xlu0 %379 }
  0xb6   : > { %v764_v23 = vadd.f32 %v732_v11, %v568_v16  ;;  %v537_v24 = vmul.f32 %v10415_v59, %v380_v21 }
  0xb7   : > { %v962_v25 = vadd.f32 %v930_v20, %v766_v19 }
  0xb8   : > { %v960_v27 = vadd.f32 %v928_v15, %v764_v23  ;;  %v569_v28 = vadd.f32 %v10427_v4, %v537_v24  ;;  %677 = vperm.xlu1 %10037, %v10209_v12   ;;  %v1224_v15 = vand.u32 15, %v1164_v62  ;;  %v10466_v23 = vsel %vm1674_vm5, 1.0, %v12523_v14 }
  0xb9   : > { %vm994_vm2 = vcmp.gt.f32.partialorder %v962_v25, 0.0  ;;  %v1026_v30 = vmul.f32 0.2, %v962_v25  ;;  %v390_v35 = vpop.permute.xlu0 %389  ;;  %v622_v36 = vpop.permute.xlu1 %621  ;;  %12718 = vst [vmem:[#allocation5_spill] sm:$0xff] %v10466_v23 }
  0xba   : > { %vm992_vm3 = vcmp.gt.f32.partialorder %v960_v27, 0.0  ;;  %v1024_v39 = vmul.f32 0.2, %v960_v27  ;;  %v765_v41 = vadd.f32 %v733_v26, %v569_v28  ;;  %v539_v42 = vmul.f32 %v10415_v59, %v390_v35 }
  0xbb   : > { %v1058_v50 = vsel %vm994_vm2, %v962_v25, %v1026_v30  ;;  %v737_v9 = vmul.f32 %v10420_v63, %v622_v36  ;;  %vm1676_vm7 = vcmp.ne.s32.totalorder %v1224_v15, 0 }
  0xbc   : > { %v1056_v12 = vsel %vm992_vm3, %v960_v27, %v1024_v39  ;;  %1129 = vst.msk [vmem:[#allocation2 + $0x28] sm:$0xff] %vm1088_vm0, %v1058_v50  ;;  %v961_v47 = vadd.f32 %v929_v29, %v765_v41  ;;  %v571_v57 = vadd.f32 %v10427_v4, %v539_v42  ;;  %10038 = vset.pattern.permute.xlu1 %v10102_v1  ;;  %v10475_v35 = vsel %vm1676_vm7, 1.0, %v12523_v14 }
  0xbd   : > { %1127 = vst.msk [vmem:[#allocation2 + $0x18] sm:$0xff] %vm1088_vm0, %v1056_v12  ;;  %v400_v58 = vpop.permute.xlu0 %399  ;;  %869 = vperm.xlu1 %10038, %v350_v56   ;;  %12719 = vst [vmem:[#allocation6_spill] sm:$0xff] %v10475_v35  ;;  %v355_v12 = vld [vmem:[%s10175_s15 + $0xb8] sm:$0xff] }
  0xbe   : > { %vm993_vm4 = vcmp.gt.f32.partialorder %v961_v47, 0.0  ;;  %v1025_v45 = vmul.f32 0.2, %v961_v47  ;;  %v767_v0 = vadd.f32 %v735_v54, %v571_v57  ;;  %v541_v3 = vmul.f32 %v10415_v59, %v400_v58  ;;  %v10455_v5 = vpop.permute.xlu1 %813 }
  0xc0   : > { %v1057_v6 = vsel %vm993_vm4, %v961_v47, %v1025_v45  ;;  %v963_v8 = vadd.f32 %v931_v44, %v767_v0  ;;  %v573_v11 = vadd.f32 %v10427_v4, %v541_v3 }
  0xc1   : > { %1128 = vst.msk [vmem:[#allocation2 + $0x20] sm:$0xff] %vm1088_vm0, %v1057_v6  ;;  %10039 = vset.pattern.permute.xlu1 %v10103_v2  ;;  %v10461_v56 = vpop.permute.xlu0 %404 }
  0xc2   : > { %vm995_vm6 = vcmp.gt.f32.partialorder %v963_v8, 0.0  ;;  %v1027_v16 = vmul.f32 0.2, %v963_v8  ;;  %v769_v17 = vadd.f32 %v737_v9, %v573_v11  ;;  %685 = vperm.xlu1 %10039, %v10332_v31   ;;  %v818_v19 = vpop.permute.xlu1 %817 }
  0xc3   : > { %v933_v20 = vmul.f32 %v10430_v7, %v818_v19  ;;  %v540_v19 = vmul.f32 %v10415_v59, %v10402_v53  ;;  %v932_v53 = vmul.f32 %v10430_v7, %v10455_v5 }
  0xc4   : > { %v1059_v21 = vsel %vm995_vm6, %v963_v8, %v1027_v16  ;;  %v1777_v24 = vld [vmem:[#allocation2 + $0x17] sm:$0xff] }
  0xc5   : > { %1130 = vst.msk [vmem:[#allocation2 + $0x30] sm:$0xff] %vm1088_vm0, %v1059_v21  ;;  %v965_v25 = vadd.f32 %v933_v20, %v769_v17  ;;  %v10469_v26 = vpop.permute.xlu0 %429  ;;  %v1809_v29 = vmul.f32 %v10466_v23, %v1777_v24  ;;  %v542_v21 = vmul.f32 %v10415_v59, %v10461_v56 }
  0xc6   : > { %10040 = vset.pattern.permute.xlu1 %v10102_v1 }
  0xc7   : > { %vm997_vm8 = vcmp.gt.f32.partialorder %v965_v25, 0.0  ;;  %v1029_v27 = vmul.f32 0.2, %v965_v25  ;;  %877 = vperm.xlu1 %10040, %v10364_v38   ;;  %v410_v28 = vpop.permute.xlu1 %409 }
  0xc8   : > { %v1778_v30 = vld [vmem:[#allocation2 + $0x1f] sm:$0xff]  ;;  %v1779_v36 = vld [vmem:[#allocation2 + $0x27] sm:$0xff]  ;;  %v543_v60 = vmul.f32 %v10415_v59, %v410_v28 }
  0xc9   : > { %v1061_v37 = vsel %vm997_vm8, %v965_v25, %v1029_v27  ;;  %v10477_v39 = vpop.permute.xlu0 %439  ;;  %v1840_v41 = vpack.c.bf16 %v1778_v30, %v1809_v29  ;;  %v1811_v42 = vmul.f32 %v10475_v35, %v1779_v36  ;;  %v572_v27 = vadd.f32 %v10427_v4, %v540_v19 }
  0xca   : > { %1132 = vst.msk [vmem:[#allocation2 + $0x40] sm:$0xff] %vm1088_vm0, %v1061_v37  ;;  %v575_v3 = vadd.f32 %v10427_v4, %v543_v60  ;;  %v1166_v29 = vadd.s32 48, %v10306_v18  ;;  %v574_v30 = vadd.f32 %v10427_v4, %v542_v21 }
  0xcb   : > { %881 = vperm.xlu1 %10040, %v10332_v31   ;;  %8786 = vmatmul.mubr.msk.bf16.vlgmr.msra.gmra.mrb[0].mxu0 %vm1088_vm0, %v1840_v41  ;;  %v415_v38 = vpop.permute.xlu1 %414 }
  0xcc   : > { %v1780_v44 = vld [vmem:[#allocation2 + $0x2f] sm:$0xff]  ;;  %v544_v36 = vmul.f32 %v10415_v59, %v415_v38 }
  0xcd   : > { %v10483_v50 = vpop.permute.xlu0 %444  ;;  %v1841_v54 = vpack.c.bf16 %v1780_v44, %v1811_v42  ;;  %v10059_v38 = vld [vmem:[%s12516_s3 + $0x10] sm:$0xff]  }
  0xce   : > { %8817 = vmatprep.subr.bf16.mxu0 %v10059_v38 }
  0xcf   : > { %10041 = vset.pattern.permute.xlu1 %v10104_v10  ;;  %8789 = vmatprep.mubr.msk.bf16.mxu0 %vm1088_vm0, %v1841_v54  ;;  %v420_v47 = vpop.permute.xlu1 %419  ;;  %v1238_v54 = vand.u32 15, %v1166_v29 }
  0xd0   : > { %489 = vperm.xlu1 %10041, %v355_v12   ;;  %8818 = vmatpush3.bf16.msra.mxu0 %v10059_v38 }
  0xd1   : > { %v10488_v57 = vpop.permute.xlu0 %469  ;;  %vm1678_vm11 = vcmp.ne.s32.totalorder %v1238_v54, 0 }
  0xd2   : > { %v10546_v21 = vsel %vm1678_vm11, 1.0, %v12523_v14 }
  0xd3   : > { %12720 = vst [vmem:[#allocation7_spill] sm:$0xff] %v10546_v21 }
  0xd4   : > { %494 = vperm.xlu1 %10041, %v10215_v13   ;;  %v630_v31 = vpop.permute.xlu1 %629 }
  0xd5   : > { %v10491_v58 = vpop.permute.xlu0 %479  ;;  %v739_v0 = vmul.f32 %v10420_v63, %v630_v31 }
  0xd7   : > { %v771_v13 = vadd.f32 %v739_v0, %v575_v3  ;;  %v547_v3 = vmul.f32 %v10415_v59, %v10469_v26 }
  0xd8   : > { %499 = vperm.xlu1 %10041, %v10373_v40  }
  0xd9   : > { %v822_v62 = vpop.permute.xlu1 %821  ;;  %v10495_v45 = vpop.permute.xlu0 %484 }
  0xda   : > { %v934_v60 = vmul.f32 %v10430_v7, %v822_v62 }
  0xdc   : > { %10042 = vset.pattern.permute.xlu1 %v10103_v2 }
  0xdd   : > { %693 = vperm.xlu1 %10042, %v355_v12   ;;  %v826_v6 = vpop.permute.xlu1 %825  ;;  %v10500_v8 = vpop.permute.xlu0 %509 }
  0xde   : > { %v935_v9 = vmul.f32 %v10430_v7, %v826_v6  ;;  %v576_v6 = vadd.f32 %v10427_v4, %v544_v36 }
  0xe0   : > { %v967_v11 = vadd.f32 %v935_v9, %v771_v13  ;;  %v545_v13 = vmul.f32 %v10415_v59, %v420_v47  ;;  %v579_v47 = vadd.f32 %v10427_v4, %v547_v3 }
  0xe1   : > { %10043 = vset.pattern.permute.xlu1 %v10102_v1  ;;  %v10504_v15 = vpop.permute.xlu1 %833  ;;  %v10506_v16 = vpop.permute.xlu0 %519 }
  0xe2   : > { %vm999_vm9 = vcmp.gt.f32.partialorder %v967_v11, 0.0  ;;  %v1031_v17 = vmul.f32 0.2, %v967_v11  ;;  %885 = vperm.xlu1 %10043, %v10337_v32   ;;  %v1168_v32 = vadd.s32 64, %v10306_v18 }
  0xe4   : > { %v1063_v20 = vsel %vm999_vm9, %v967_v11, %v1031_v17  ;;  %v1252_v31 = vand.u32 15, %v1168_v32 }
  0xe5   : > { %1134 = vst.msk [vmem:[#allocation2 + $0x50] sm:$0xff] %vm1088_vm0, %v1063_v20  ;;  %v577_v20 = vadd.f32 %v10427_v4, %v545_v13 }
  0xe6   : > { %v618_v24 = vpop.permute.xlu0 %617  ;;  %889 = vperm.xlu1 %10043, %v355_v12   ;;  %v425_v25 = vpop.permute.xlu1 %424  ;;  %v10527_v12 = vld [vmem:[%s10175_s15 + $0xd0] sm:$0xff]  ;;  %vm10548_vm13 = vcmp.ne.s32.totalorder %v1252_v31, 0 }
  0xe7   : > { %v736_v28 = vmul.f32 %v10420_v63, %v618_v24 }
  0xe9   : > { %v768_v56 = vadd.f32 %v736_v28, %v572_v27  ;;  %v546_v27 = vmul.f32 %v10415_v59, %v425_v25 }
  0xea   : > { %v626_v37 = vpop.permute.xlu0 %625  ;;  %897 = vperm.xlu1 %10043, %v10373_v40   ;;  %v10523_v41 = vpop.permute.xlu1 %434  ;;  %v936_v40 = vmul.f32 %v10430_v7, %v10384_v46 }
  0xeb   : > { %v964_v42 = vadd.f32 %v932_v53, %v768_v56  ;;  %v738_v44 = vmul.f32 %v10420_v63, %v626_v37  ;;  %v937_v56 = vmul.f32 %v10430_v7, %v10504_v15  ;;  %v1170_v37 = vadd.s32 80, %v10306_v18 }
  0xec   : > { %v578_v31 = vadd.f32 %v10427_v4, %v546_v27  ;;  %v548_v27 = vmul.f32 %v10415_v59, %v10523_v41 }
  0xed   : > { %vm996_vm10 = vcmp.gt.f32.partialorder %v964_v42, 0.0  ;;  %v1028_v5 = vmul.f32 0.2, %v964_v42  ;;  %v770_v0 = vadd.f32 %v738_v44, %v574_v30  ;;  %v939_v30 = vmul.f32 %v10430_v7, %v10392_v49 }
  0xee   : > { %v634_v9 = vpop.permute.xlu0 %633  ;;  %10045 = vset.pattern.permute.xlu1 %v10104_v10  ;;  %v1266_v3 = vand.u32 15, %v1170_v37  ;;  %v580_v41 = vadd.f32 %v10427_v4, %v548_v27 }
  0xef   : > { %v1060_v62 = vsel %vm996_vm10, %v964_v42, %v1028_v5  ;;  %v966_v11 = vadd.f32 %v934_v60, %v770_v0  ;;  %v740_v17 = vmul.f32 %v10420_v63, %v634_v9  ;;  %504 = vperm.xlu1 %10045, %v10527_v12   ;;  %v642_v19 = vpop.permute.xlu1 %641 }
  0xf0   : > { %1131 = vst.msk [vmem:[#allocation2 + $0x38] sm:$0xff] %vm1088_vm0, %v1060_v62  ;;  %v742_v42 = vmul.f32 %v10420_v63, %v642_v19  ;;  %v1172_v19 = vadd.s32 96, %v10306_v18  ;;  %vm1682_vm2 = vcmp.ne.s32.totalorder %v1266_v3, 0 }
  0xf1   : > { %vm998_vm12 = vcmp.gt.f32.partialorder %v966_v11, 0.0  ;;  %v1030_v46 = vmul.f32 0.2, %v966_v11  ;;  %v772_v26 = vadd.f32 %v740_v17, %v576_v6  ;;  %v10586_v37 = vsel %vm1682_vm2, 1.0, %v12523_v14 }
  0xf2   : > { %v638_v10 = vpop.permute.xlu0 %637  ;;  %v774_v6 = vadd.f32 %v742_v42, %v578_v31  ;;  %12724 = vst [vmem:[#allocation9_spill] sm:$0xff] %v10586_v37 }
  0xf3   : > { %v1062_v28 = vsel %vm998_vm12, %v966_v11, %v1030_v46  ;;  %v968_v29 = vadd.f32 %v936_v40, %v772_v26  ;;  %v741_v32 = vmul.f32 %v10420_v63, %v638_v10  ;;  %514 = vperm.xlu1 %10045, %v10377_v43   ;;  %v646_v53 = vpop.permute.xlu1 %645  ;;  %v10571_v40 = vsel %vm10548_vm13, 1.0, %v12523_v14 }
  0xf4   : > { %1133 = vst.msk [vmem:[#allocation2 + $0x48] sm:$0xff] %vm1088_vm0, %v1062_v28  ;;  %v743_v36 = vmul.f32 %v10420_v63, %v646_v53  ;;  %12723 = vst [vmem:[#allocation8_spill] sm:$0xff] %v10571_v40 }
  0xf5   : > { %vm1000_vm14 = vcmp.gt.f32.partialorder %v968_v29, 0.0  ;;  %v1032_v25 = vmul.f32 0.2, %v968_v29  ;;  %v773_v44 = vadd.f32 %v741_v32, %v577_v20 }
  0xf6   : > { %v775_v54 = vadd.f32 %v743_v36, %v579_v47  ;;  %v650_v10 = vpop.permute.xlu0 %649 }
  0xf7   : > { %v1064_v60 = vsel %vm1000_vm14, %v968_v29, %v1032_v25  ;;  %v969_v5 = vadd.f32 %v937_v56, %v773_v44  ;;  %10046 = vset.pattern.permute.xlu1 %v10103_v2  ;;  %v1781_v49 = vld [vmem:[#allocation2 + $0x37] sm:$0xff]  ;;  %v1782_v62 = vld [vmem:[#allocation2 + $0x3f] sm:$0xff]  ;;  %v549_v56 = vmul.f32 %v10415_v59, %v10477_v39 }
  0xf8   : > { %1135 = vst.msk [vmem:[#allocation2 + $0x58] sm:$0xff] %vm1088_vm0, %v1064_v60  ;;  %v971_v15 = vadd.f32 %v939_v30, %v775_v54  ;;  %705 = vperm.xlu1 %10046, %v10527_v12   ;;  %v838_v0 = vpop.permute.xlu1 %837  ;;  %v1813_v38 = vmul.f32 %v10546_v21, %v1781_v49  ;;  %v1280_v30 = vand.u32 15, %v1172_v19 }
  0xf9   : > { %vm1001_vm15 = vcmp.gt.f32.partialorder %v969_v5, 0.0  ;;  %v1033_v13 = vmul.f32 0.2, %v969_v5  ;;  %v938_v9 = vmul.f32 %v10430_v7, %v838_v0  ;;  %v581_v44 = vadd.f32 %v10427_v4, %v549_v56 }
  0xfa   : > { %vm1003_vm1 = vcmp.gt.f32.partialorder %v971_v15, 0.0  ;;  %v1035_v11 = vmul.f32 0.2, %v971_v15  ;;  %v1842_v17 = vpack.c.bf16 %v1782_v62, %v1813_v38  ;;  %vm1684_vm4 = vcmp.ne.s32.totalorder %v1280_v30, 0  ;;  %v658_v62 = vpop.permute.xlu0 %657 }
  0xfb   : > { %v1065_v46 = vsel %vm1001_vm15, %v969_v5, %v1033_v13  ;;  %v970_v26 = vadd.f32 %v938_v9, %v774_v6  ;;  %v1783_v47 = vld [vmem:[#allocation2 + $0x47] sm:$0xff]  ;;  %v1784_v32 = vld [vmem:[#allocation2 + $0x4f] sm:$0xff]  ;;  %v10599_v0 = vsel %vm1684_vm4, 1.0, %v12523_v14  ;;  %v1174_v38 = vadd.s32 112, %v10306_v18 }
  0xfc   : > { %1136 = vst.msk [vmem:[#allocation2 + $0x60] sm:$0xff] %vm1088_vm0, %v1065_v46  ;;  %v1067_v20 = vsel %vm1003_vm1, %v971_v15, %v1035_v11  ;;  %709 = vperm.xlu1 %10046, %v10342_v33   ;;  %8790 = vmatmul.mubr.msk.bf16.gmra.mrb[4].mxu0 %vm1088_vm0, %v1842_v17  ;;  %v1815_v24 = vmul.f32 %v10571_v40, %v1783_v47  ;;  %12725 = vst [vmem:[#allocation10_spill] sm:$0xff] %v10599_v0  ;;  %v10060_v17 = vld [vmem:[%s12516_s3 + $0x18] sm:$0xff]  }
  0xfd   : > { %1138 = vst.msk [vmem:[#allocation2 + $0x70] sm:$0xff] %vm1088_vm0, %v1067_v20  ;;  %vm1002_vm3 = vcmp.gt.f32.partialorder %v970_v26, 0.0  ;;  %v1034_v28 = vmul.f32 0.2, %v970_v26  ;;  %v654_v29 = vpop.permute.xlu1 %653  ;;  %v744_v33 = vmul.f32 %v10420_v63, %v650_v10  ;;  %v1294_v20 = vand.u32 15, %v1174_v38  ;;  %8819 = vmatprep.subr.bf16.mxu0 %v10060_v17 }
  0xfe   : > { %v1843_v53 = vpack.c.bf16 %v1784_v32, %v1815_v24  ;;  %v745_v31 = vmul.f32 %v10420_v63, %v654_v29  ;;  %8820 = vmatpush3.bf16.msra.mxu0 %v10060_v17 }
  0xff   : > { %v1066_v36 = vsel %vm1002_vm3, %v970_v26, %v1034_v28  ;;  %v1785_v25 = vld [vmem:[#allocation2 + $0x57] sm:$0xff]  ;;  %v776_v54 = vadd.f32 %v744_v33, %v580_v41  ;;  %v666_v28 = vpop.permute.xlu0 %665  ;;  %vm1686_vm7 = vcmp.ne.s32.totalorder %v1294_v20, 0  ;;  %v1178_v20 = vadd.s32 144, %v10306_v18 }
 0x100   : > { %1137 = vst.msk [vmem:[#allocation2 + $0x68] sm:$0xff] %vm1088_vm0, %v1066_v36  ;;  %10048 = vset.pattern.permute.xlu1 %v10102_v1  ;;  %8793 = vmatprep.mubr.msk.bf16.mxu0 %vm1088_vm0, %v1843_v53  ;;  %v1817_v39 = vmul.f32 %v10586_v37, %v1785_v25  ;;  %v777_v3 = vadd.f32 %v745_v31, %v581_v44  ;;  %v10618_v30 = vsel %vm1686_vm7, 1.0, %v12523_v14 }
 0x101   : > { %901 = vperm.xlu1 %10048, %v10527_v12   ;;  %v748_v53 = vmul.f32 %v10420_v63, %v666_v28  ;;  %12726 = vst [vmem:[#allocation11_spill] sm:$0xff] %v10618_v30  ;;  %v944_v36 = vmul.f32 %v10430_v7, %v10399_v52  ;;  %v746_v31 = vmul.f32 %v10420_v63, %v658_v62  ;;  %v10651_v28 = vld [vmem:[%s12516_s3 + $0x20] sm:$0xff]  }
 0x102   : > { %v846_v42 = vpop.permute.xlu1 %845  ;;  %8853 = vmatprep.subr.bf16.mxu0 %v10651_v28 }
 0x103   : > { %v940_v60 = vmul.f32 %v10430_v7, %v846_v42  ;;  %v1786_v5 = vld [vmem:[#allocation2 + $0x5f] sm:$0xff]  ;;  %v670_v38 = vpop.permute.xlu0 %669 }
 0x104   : > { %v1844_v49 = vpack.c.bf16 %v1786_v5, %v1817_v39 }
 0x105   : > { %v972_v15 = vadd.f32 %v940_v60, %v776_v54  ;;  %10049 = vset.pattern.permute.xlu1 %v10103_v2 }
 0x106   : > { %717 = vperm.xlu1 %10049, %v10346_v34   ;;  %8794 = vmatmul.mubr.msk.bf16.gmra.mrb[8].mxu0 %vm1088_vm0, %v1844_v49  ;;  %v850_v12 = vpop.permute.xlu1 %849 }
 0x107   : > { %vm1004_vm5 = vcmp.gt.f32.partialorder %v972_v15, 0.0  ;;  %v1036_v6 = vmul.f32 0.2, %v972_v15  ;;  %v941_v13 = vmul.f32 %v10430_v7, %v850_v12  ;;  %v1787_v9 = vld [vmem:[#allocation2 + $0x67] sm:$0xff]  ;;  %v1788_v26 = vld [vmem:[#allocation2 + $0x6f] sm:$0xff] }
 0x108   : > { %v1819_v11 = vmul.f32 %v10599_v0, %v1787_v9  ;;  %v749_v9 = vmul.f32 %v10420_v63, %v670_v38 }
 0x109   : > { %v1068_v19 = vsel %vm1004_vm5, %v972_v15, %v1036_v6  ;;  %v973_v46 = vadd.f32 %v941_v13, %v777_v3 }
 0x10a   : > { %1139 = vst.msk [vmem:[#allocation2 + $0x78] sm:$0xff] %vm1088_vm0, %v1068_v19  ;;  %10051 = vset.pattern.permute.xlu1 %v10102_v1  ;;  %v1845_v47 = vpack.c.bf16 %v1788_v26, %v1819_v11  ;;  %v1176_v11 = vadd.s32 128, %v10306_v18 }
 0x10b   : > { %vm1005_vm6 = vcmp.gt.f32.partialorder %v973_v46, 0.0  ;;  %v1037_v10 = vmul.f32 0.2, %v973_v46  ;;  %909 = vperm.xlu1 %10051, %v10377_v43   ;;  %v450_v24 = vpop.permute.xlu1 %449 }
 0x10c   : > { %8797 = vmatprep.mubr.msk.bf16.mxu0 %vm1088_vm0, %v1845_v47  ;;  %v551_v5 = vmul.f32 %v10415_v59, %v450_v24  ;;  %v1308_v47 = vand.u32 15, %v1176_v11 }
 0x10d   : > { %v1069_v27 = vsel %vm1005_vm6, %v973_v46, %v1037_v10 }
 0x10e   : > { %1140 = vst.msk [vmem:[#allocation2 + $0x80] sm:$0xff] %vm1088_vm0, %v1069_v27  ;;  %vm1688_vm11 = vcmp.ne.s32.totalorder %v1308_v47, 0 }
 0x10f   : > { %913 = vperm.xlu1 %10051, %v10346_v34   ;;  %v455_v29 = vpop.permute.xlu1 %454  ;;  %v550_v34 = vmul.f32 %v10415_v59, %v10483_v50 }
 0x110   : > { %v552_v32 = vmul.f32 %v10415_v59, %v455_v29 }
 0x111   : > { %v1789_v43 = vld [vmem:[#allocation2 + $0x77] sm:$0xff]  ;;  %v582_v54 = vadd.f32 %v10427_v4, %v550_v34 }
 0x112   : > { %v584_v56 = vadd.f32 %v10427_v4, %v552_v32  ;;  %v1821_v41 = vmul.f32 %v10618_v30, %v1789_v43 }
 0x113   : > { %10053 = vset.pattern.permute.xlu1 %v10103_v2  ;;  %v460_v33 = vpop.permute.xlu1 %459  ;;  %v778_v49 = vadd.f32 %v746_v31, %v582_v54 }
 0x114   : > { %v780_v25 = vadd.f32 %v748_v53, %v584_v56  ;;  %721 = vperm.xlu1 %10053, %v10390_v48   ;;  %v553_v15 = vmul.f32 %v10415_v59, %v460_v33  ;;  %v1322_v53 = vand.u32 15, %v1178_v20 }
 0x115   : > { %v1790_v42 = vld [vmem:[#allocation2 + $0x7f] sm:$0xff] }
 0x116   : > { %v976_v39 = vadd.f32 %v944_v36, %v780_v25  ;;  %v1846_v44 = vpack.c.bf16 %v1790_v42, %v1821_v41  ;;  %v585_v13 = vadd.f32 %v10427_v4, %v553_v15  ;;  %v10656_v36 = vsel %vm1688_vm11, 1.0, %v12523_v14 }
 0x117   : > { %12727 = vst [vmem:[#allocation12_spill] sm:$0xff] %v10656_v36  ;;  %vm1690_vm13 = vcmp.ne.s32.totalorder %v1322_v53, 0 }
 0x118   : > { %vm1008_vm8 = vcmp.gt.f32.partialorder %v976_v39, 0.0  ;;  %v1040_v60 = vmul.f32 0.2, %v976_v39  ;;  %10054 = vset.pattern.permute.xlu1 %v10102_v1  ;;  %8798 = vmatmul.mubr.msk.bf16.gmra.mrb[12].mxu0 %vm1088_vm0, %v1846_v44  ;;  %v662_v52 = vpop.permute.xlu1 %661  ;;  %v781_v10 = vadd.f32 %v749_v9, %v585_v13 }
 0x119   : > { %917 = vperm.xlu1 %10054, %v10390_v48   ;;  %v747_v3 = vmul.f32 %v10420_v63, %v662_v52  ;;  %v583_v48 = vadd.f32 %v10427_v4, %v551_v5  ;;  %v555_v52 = vmul.f32 %v10415_v59, %v10488_v57 }
 0x11a   : > { %v1072_v50 = vsel %vm1008_vm8, %v976_v39, %v1040_v60  ;;  %v10666_v39 = vsel %vm1690_vm13, 1.0, %v12523_v14 }
 0x11b   : > { %1143 = vst.msk [vmem:[#allocation2 + $0x98] sm:$0xff] %vm1088_vm0, %v1072_v50  ;;  %v779_v17 = vadd.f32 %v747_v3, %v583_v48 }
 0x11d   : > { %10055 = vset.pattern.permute.xlu1 %v10103_v2  ;;  %v854_v12 = vpop.permute.xlu1 %853 }
 0x11e   : > { %v942_v1 = vmul.f32 %v10430_v7, %v854_v12  ;;  %725 = vperm.xlu1 %10055, %v10397_v51   ;;  %v587_v12 = vadd.f32 %v10427_v4, %v555_v52 }
 0x120   : > { %v974_v6 = vadd.f32 %v942_v1, %v778_v49  ;;  %v947_v1 = vmul.f32 %v10430_v7, %v10405_v55 }
 0x121   : > { %v858_v62 = vpop.permute.xlu1 %857 }
 0x122   : > { %vm1006_vm9 = vcmp.gt.f32.partialorder %v974_v6, 0.0  ;;  %v1038_v2 = vmul.f32 0.2, %v974_v6  ;;  %v943_v19 = vmul.f32 %v10430_v7, %v858_v62 }
 0x124   : > { %v1070_v46 = vsel %vm1006_vm9, %v974_v6, %v1038_v2  ;;  %v975_v26 = vadd.f32 %v943_v19, %v779_v17  ;;  %v1180_v17 = vadd.s32 160, %v10306_v18 }
 0x125   : > { %1141 = vst.msk [vmem:[#allocation2 + $0x88] sm:$0xff] %vm1088_vm0, %v1070_v46  ;;  %v866_v51 = vpop.permute.xlu1 %865 }
 0x126   : > { %vm1007_vm10 = vcmp.gt.f32.partialorder %v975_v26, 0.0  ;;  %v1039_v24 = vmul.f32 0.2, %v975_v26  ;;  %v945_v27 = vmul.f32 %v10430_v7, %v866_v51  ;;  %v682_v51 = vpop.permute.xlu0 %681  ;;  %v1336_v47 = vand.u32 15, %v1180_v17 }
 0x127   : > { %v752_v20 = vmul.f32 %v10420_v63, %v682_v51 }
 0x128   : > { %v1071_v29 = vsel %vm1007_vm10, %v975_v26, %v1039_v24  ;;  %v977_v32 = vadd.f32 %v945_v27, %v781_v10  ;;  %v557_v27 = vmul.f32 %v10415_v59, %v10491_v58  ;;  %vm1692_vm1 = vcmp.ne.s32.totalorder %v1336_v47, 0 }
 0x129   : > { %1142 = vst.msk [vmem:[#allocation2 + $0x90] sm:$0xff] %vm1088_vm0, %v1071_v29 }
 0x12a   : > { %vm1009_vm12 = vcmp.gt.f32.partialorder %v977_v32, 0.0  ;;  %v1041_v43 = vmul.f32 0.2, %v977_v32  ;;  %v465_v56 = vpop.permute.xlu1 %464 }
 0x12b   : > { %v554_v49 = vmul.f32 %v10415_v59, %v465_v56  ;;  %v589_v56 = vadd.f32 %v10427_v4, %v557_v27 }
 0x12c   : > { %v1073_v33 = vsel %vm1009_vm12, %v977_v32, %v1041_v43  ;;  %v10658_v34 = vld [vmem:[#allocation2 + $0x87] sm:$0xff] }
 0x12d   : > { %1144 = vst.msk [vmem:[#allocation2 + $0xa0] sm:$0xff] %vm1088_vm0, %v1073_v33  ;;  %v1823_v41 = vmul.f32 %v10656_v36, %v10658_v34  ;;  %v586_v57 = vadd.f32 %v10427_v4, %v554_v49 }
 0x12e   : > { %v475_v25 = vpop.permute.xlu1 %474 }
 0x12f   : > { %v556_v2 = vmul.f32 %v10415_v59, %v475_v25  ;;  %v10700_v25 = vsel %vm1692_vm1, 1.0, %v12523_v14 }
 0x130   : > { %v10663_v42 = vld [vmem:[#allocation2 + $0x8f] sm:$0xff]  ;;  %v10668_v44 = vld [vmem:[#allocation2 + $0x97] sm:$0xff] }
 0x131   : > { %v1847_v54 = vpack.c.bf16 %v10663_v42, %v1823_v41  ;;  %v1825_v60 = vmul.f32 %v10666_v39, %v10668_v44  ;;  %v588_v10 = vadd.f32 %v10427_v4, %v556_v2 }
 0x133   : > { %8801 = vmatprep.mubr.msk.bf16.mxu0 %vm1088_vm0, %v1847_v54  ;;  %v674_v31 = vpop.permute.xlu1 %673  ;;  %v784_v53 = vadd.f32 %v752_v20, %v588_v10  ;;  %v1182_v54 = vadd.s32 176, %v10306_v18  ;;  %v558_v20 = vmul.f32 %v10415_v59, %v10495_v45 }
 0x134   : > { %v10676_v50 = vld [vmem:[#allocation2 + $0x9f] sm:$0xff]  ;;  %v750_v3 = vmul.f32 %v10420_v63, %v674_v31 }
 0x135   : > { %v1848_v5 = vpack.c.bf16 %v10676_v50, %v1825_v60 }
 0x136   : > { %v782_v9 = vadd.f32 %v750_v3, %v586_v57  ;;  %v1350_v3 = vand.u32 15, %v1182_v54 }
 0x137   : > { %8802 = vmatmul.mubr.msk.bf16.gmra.mrb[16].mxu0 %vm1088_vm0, %v1848_v5  ;;  %v678_v15 = vpop.permute.xlu1 %677 }
 0x138   : > { %v751_v38 = vmul.f32 %v10420_v63, %v678_v15  ;;  %vm1694_vm4 = vcmp.ne.s32.totalorder %v1350_v3, 0 }
 0x139   : > { %v10717_v17 = vsel %vm1694_vm4, 1.0, %v12523_v14 }
 0x13a   : > { %v783_v48 = vadd.f32 %v751_v38, %v587_v12 }
 0x13c   : > { %v979_v6 = vadd.f32 %v947_v1, %v783_v48  ;;  %v870_v13 = vpop.permute.xlu1 %869  ;;  %v690_v1 = vpop.permute.xlu0 %689 }
 0x13d   : > { %v946_v62 = vmul.f32 %v10430_v7, %v870_v13 }
 0x13e   : > { %vm1011_vm14 = vcmp.gt.f32.partialorder %v979_v6, 0.0  ;;  %v1043_v11 = vmul.f32 0.2, %v979_v6 }
 0x13f   : > { %v978_v19 = vadd.f32 %v946_v62, %v782_v9 }
 0x140   : > { %v1075_v46 = vsel %vm1011_vm14, %v979_v6, %v1043_v11  ;;  %v698_v13 = vpop.permute.xlu0 %697 }
 0x141   : > { %1146 = vst.msk [vmem:[#allocation2 + $0xb0] sm:$0xff] %vm1088_vm0, %v1075_v46  ;;  %vm1010_vm15 = vcmp.gt.f32.partialorder %v978_v19, 0.0  ;;  %v1042_v55 = vmul.f32 0.2, %v978_v19  ;;  %v686_v26 = vpop.permute.xlu1 %685  ;;  %v756_v62 = vmul.f32 %v10420_v63, %v698_v13 }
 0x142   : > { %v753_v32 = vmul.f32 %v10420_v63, %v686_v26 }
 0x143   : > { %v1074_v24 = vsel %vm1010_vm15, %v978_v19, %v1042_v55  ;;  %v952_v55 = vmul.f32 %v10430_v7, %v10417_v61  ;;  %v754_v61 = vmul.f32 %v10420_v63, %v690_v1 }
 0x144   : > { %1145 = vst.msk [vmem:[#allocation2 + $0xa8] sm:$0xff] %vm1088_vm0, %v1074_v24  ;;  %v785_v31 = vadd.f32 %v753_v32, %v589_v56  ;;  %v590_v32 = vadd.f32 %v10427_v4, %v558_v20  ;;  %v702_v1 = vpop.permute.xlu0 %701 }
 0x146   : > { %v878_v29 = vpop.permute.xlu1 %877 }
 0x147   : > { %v948_v43 = vmul.f32 %v10430_v7, %v878_v29 }
 0x149   : > { %v980_v33 = vadd.f32 %v948_v43, %v784_v53 }
 0x14a   : > { %v882_v41 = vpop.permute.xlu1 %881 }
 0x14b   : > { %vm1012_vm2 = vcmp.gt.f32.partialorder %v980_v33, 0.0  ;;  %v1044_v60 = vmul.f32 0.2, %v980_v33  ;;  %v949_v58 = vmul.f32 %v10430_v7, %v882_v41  ;;  %v10704_v52 = vld [vmem:[#allocation2 + $0xa7] sm:$0xff]  ;;  %v10708_v12 = vld [vmem:[#allocation2 + $0xaf] sm:$0xff] }
 0x14c   : > { %v1827_v5 = vmul.f32 %v10700_v25, %v10704_v52 }
 0x14d   : > { %v1076_v49 = vsel %vm1012_vm2, %v980_v33, %v1044_v60  ;;  %v981_v15 = vadd.f32 %v949_v58, %v785_v31  ;;  %v786_v33 = vadd.f32 %v754_v61, %v590_v32 }
 0x14e   : > { %1147 = vst.msk [vmem:[#allocation2 + $0xb8] sm:$0xff] %vm1088_vm0, %v1076_v49  ;;  %v1849_v38 = vpack.c.bf16 %v10708_v12, %v1827_v5  ;;  %v1184_v49 = vadd.s32 192, %v10306_v18 }
 0x14f   : > { %vm1013_vm3 = vcmp.gt.f32.partialorder %v981_v15, 0.0  ;;  %v1045_v48 = vmul.f32 0.2, %v981_v15  ;;  %v490_v57 = vpop.permute.xlu1 %489 }
 0x150   : > { %8805 = vmatprep.mubr.msk.bf16.mxu0 %vm1088_vm0, %v1849_v38  ;;  %v559_v43 = vmul.f32 %v10415_v59, %v490_v57 }
 0x151   : > { %v1077_v6 = vsel %vm1013_vm3, %v981_v15, %v1045_v48  ;;  %v757_v48 = vmul.f32 %v10420_v63, %v702_v1 }
 0x152   : > { %1148 = vst.msk [vmem:[#allocation2 + $0xc0] sm:$0xff] %vm1088_vm0, %v1077_v6  ;;  %v591_v31 = vadd.f32 %v10427_v4, %v559_v43 }
 0x153   : > { %v495_v9 = vpop.permute.xlu1 %494 }
 0x154   : > { %v560_v11 = vmul.f32 %v10415_v59, %v495_v9  ;;  %v1364_v9 = vand.u32 15, %v1184_v49 }
 0x155   : > { %v10719_v2 = vld [vmem:[#allocation2 + $0xb7] sm:$0xff] }
 0x156   : > { %v592_v19 = vadd.f32 %v10427_v4, %v560_v11  ;;  %v1829_v51 = vmul.f32 %v10717_v17, %v10719_v2  ;;  %vm1696_vm8 = vcmp.ne.s32.totalorder %v1364_v9, 0 }
 0x157   : > { %v500_v46 = vpop.permute.xlu1 %499 }
 0x158   : > { %v788_v26 = vadd.f32 %v756_v62, %v592_v19  ;;  %v561_v56 = vmul.f32 %v10415_v59, %v500_v46  ;;  %v1186_v62 = vadd.s32 208, %v10306_v18 }
 0x159   : > { %v10726_v47 = vld [vmem:[#allocation2 + $0xbf] sm:$0xff] }
 0x15a   : > { %v984_v10 = vadd.f32 %v952_v55, %v788_v26  ;;  %v1850_v24 = vpack.c.bf16 %v10726_v47, %v1829_v51  ;;  %v593_v58 = vadd.f32 %v10427_v4, %v561_v56  ;;  %v1378_v51 = vand.u32 15, %v1186_v62 }
 0x15c   : > { %vm1016_vm5 = vcmp.gt.f32.partialorder %v984_v10, 0.0  ;;  %v1048_v27 = vmul.f32 0.2, %v984_v10  ;;  %8806 = vmatmul.mubr.msk.bf16.gmra.mrb[20].mxu0 %vm1088_vm0, %v1850_v24  ;;  %v694_v29 = vpop.permute.xlu1 %693  ;;  %v789_v19 = vadd.f32 %v757_v48, %v593_v58  ;;  %vm1698_vm10 = vcmp.ne.s32.totalorder %v1378_v51, 0 }
 0x15d   : > { %v755_v41 = vmul.f32 %v10420_v63, %v694_v29  ;;  %v10759_v43 = vsel %vm1698_vm10, 1.0, %v12523_v14 }
 0x15e   : > { %v1080_v53 = vsel %vm1016_vm5, %v984_v10, %v1048_v27  ;;  %v10749_v27 = vsel %vm1696_vm8, 1.0, %v12523_v14 }
 0x15f   : > { %1151 = vst.msk [vmem:[#allocation2 + $0xd8] sm:$0xff] %vm1088_vm0, %v1080_v53  ;;  %v787_v15 = vadd.f32 %v755_v41, %v591_v31  ;;  %v563_v31 = vmul.f32 %v10415_v59, %v10500_v8 }
 0x161   : > { %v886_v45 = vpop.permute.xlu1 %885 }
 0x162   : > { %v950_v54 = vmul.f32 %v10430_v7, %v886_v45  ;;  %v714_v45 = vpop.permute.xlu0 %713 }
 0x164   : > { %v982_v60 = vadd.f32 %v950_v54, %v786_v33 }
 0x165   : > { %v890_v5 = vpop.permute.xlu1 %889 }
 0x166   : > { %vm1014_vm6 = vcmp.gt.f32.partialorder %v982_v60, 0.0  ;;  %v1046_v38 = vmul.f32 0.2, %v982_v60  ;;  %v951_v3 = vmul.f32 %v10430_v7, %v890_v5  ;;  %v906_v5 = vpop.permute.xlu0 %905 }
 0x167   : > { %v955_v1 = vmul.f32 %v10430_v7, %v906_v5 }
 0x168   : > { %v1078_v57 = vsel %vm1014_vm6, %v982_v60, %v1046_v38  ;;  %v983_v6 = vadd.f32 %v951_v3, %v787_v15  ;;  %v595_v38 = vadd.f32 %v10427_v4, %v563_v31 }
 0x169   : > { %1149 = vst.msk [vmem:[#allocation2 + $0xc8] sm:$0xff] %vm1088_vm0, %v1078_v57  ;;  %v898_v13 = vpop.permute.xlu1 %897 }
 0x16a   : > { %vm1015_vm7 = vcmp.gt.f32.partialorder %v983_v6, 0.0  ;;  %v1047_v11 = vmul.f32 0.2, %v983_v6  ;;  %v953_v46 = vmul.f32 %v10430_v7, %v898_v13  ;;  %v525_v5 = vpop.permute.xlu0 %524 }
 0x16c   : > { %v1079_v55 = vsel %vm1015_vm7, %v983_v6, %v1047_v11  ;;  %v985_v26 = vadd.f32 %v953_v46, %v789_v19  ;;  %v1188_v19 = vadd.s32 224, %v10306_v18 }
 0x16d   : > { %1150 = vst.msk [vmem:[#allocation2 + $0xd0] sm:$0xff] %vm1088_vm0, %v1079_v55 }
 0x16e   : > { %vm1017_vm9 = vcmp.gt.f32.partialorder %v985_v26, 0.0  ;;  %v1049_v20 = vmul.f32 0.2, %v985_v26  ;;  %v505_v10 = vpop.permute.xlu1 %504 }
 0x16f   : > { %v562_v49 = vmul.f32 %v10415_v59, %v505_v10  ;;  %v1392_v10 = vand.u32 15, %v1188_v19 }
 0x170   : > { %v1081_v24 = vsel %vm1017_vm9, %v985_v26, %v1049_v20  ;;  %v10751_v29 = vld [vmem:[#allocation2 + $0xc7] sm:$0xff] }
 0x171   : > { %1152 = vst.msk [vmem:[#allocation2 + $0xe0] sm:$0xff] %vm1088_vm0, %v1081_v24  ;;  %v1831_v61 = vmul.f32 %v10749_v27, %v10751_v29  ;;  %v594_v8 = vadd.f32 %v10427_v4, %v562_v49  ;;  %v10093_v4 = vld [vmem:[%s12515_s2] ss:$0 sm:$0xff]  ;;  %vm1700_vm13 = vcmp.ne.s32.totalorder %v1392_v10, 0  ;;  %v530_v10 = vpop.permute.xlu0 %529 }
 0x172   : > { %v515_v32 = vpop.permute.xlu1 %514 }
 0x173   : > { %v564_v46 = vmul.f32 %v10415_v59, %v515_v32  ;;  %v760_v32 = vmul.f32 %v10420_v63, %v714_v45 }
 0x174   : > { %v10756_v53 = vld [vmem:[#allocation2 + $0xcf] sm:$0xff]  ;;  %v10761_v56 = vld [vmem:[#allocation2 + $0xd7] sm:$0xff] }
 0x175   : > { %v1851_v33 = vpack.c.bf16 %v10756_v53, %v1831_v61  ;;  %v1833_v54 = vmul.f32 %v10759_v43, %v10761_v56  ;;  %v596_v24 = vadd.f32 %v10093_v4, %v564_v46 }
 0x177   : > { %8809 = vmatprep.mubr.msk.bf16.mxu0 %vm1088_vm0, %v1851_v33  ;;  %v706_v41 = vpop.permute.xlu1 %705  ;;  %v565_v33 = vmul.f32 %v10415_v59, %v10506_v16  ;;  %v792_v31 = vadd.f32 %v760_v32, %v596_v24  ;;  %v1190_v16 = vadd.s32 240, %v10306_v18 }
 0x178   : > { %v10769_v60 = vld [vmem:[#allocation2 + $0xdf] sm:$0xff]  ;;  %v758_v48 = vmul.f32 %v10420_v63, %v706_v41 }
 0x179   : > { %v1852_v58 = vpack.c.bf16 %v10769_v60, %v1833_v54  ;;  %v597_v49 = vadd.f32 %v10093_v4, %v565_v33  ;;  %v1406_v19 = vand.u32 15, %v1190_v16  ;;  %v567_v33 = vmul.f32 %v10415_v59, %v530_v10  ;;  %v10842_v10 = vld [vmem:[%s12516_s3 + $0x30] sm:$0xff]  }
 0x17a   : > { %v790_v9 = vadd.f32 %v758_v48, %v594_v8 }
 0x17b   : > { %8810 = vmatmul.mubr.msk.bf16.gmra.mrb[24].mxu0 %vm1088_vm0, %v1852_v58  ;;  %v710_v15 = vpop.permute.xlu1 %709  ;;  %vm1702_vm1 = vcmp.ne.s32.totalorder %v1406_v19, 0 }
 0x17c   : > { %v759_v3 = vmul.f32 %v10420_v63, %v710_v15 }
 0x17e   : > { %v791_v57 = vadd.f32 %v759_v3, %v595_v38  ;;  %v10793_v38 = vsel %vm1700_vm13, 1.0, %v12523_v14 }
 0x180   : > { %v987_v6 = vadd.f32 %v955_v1, %v791_v57  ;;  %v902_v13 = vpop.permute.xlu1 %901  ;;  %v566_v1 = vmul.f32 %v10415_v59, %v525_v5 }
 0x181   : > { %v954_v62 = vmul.f32 %v10430_v7, %v902_v13 }
 0x182   : > { %vm1019_vm11 = vcmp.gt.f32.partialorder %v987_v6, 0.0  ;;  %v1051_v11 = vmul.f32 0.2, %v987_v6 }
 0x183   : > { %v986_v55 = vadd.f32 %v954_v62, %v790_v9 }
 0x184   : > { %v1083_v26 = vsel %vm1019_vm11, %v987_v6, %v1051_v11 }
 0x185   : > { %1154 = vst.msk [vmem:[#allocation2 + $0xf0] sm:$0xff] %vm1088_vm0, %v1083_v26  ;;  %vm1018_vm12 = vcmp.gt.f32.partialorder %v986_v55, 0.0  ;;  %v1050_v51 = vmul.f32 0.2, %v986_v55  ;;  %v718_v20 = vpop.permute.xlu1 %717 }
 0x186   : > { %v761_v54 = vmul.f32 %v10420_v63, %v718_v20 }
 0x187   : > { %v1082_v61 = vsel %vm1018_vm12, %v986_v55, %v1050_v51  ;;  %v598_v55 = vadd.f32 %v10093_v4, %v566_v1 }
 0x188   : > { %1153 = vst.msk [vmem:[#allocation2 + $0xe8] sm:$0xff] %vm1088_vm0, %v1082_v61  ;;  %v793_v48 = vadd.f32 %v761_v54, %v597_v49  ;;  %v922_v49 = vpop.permute.xlu0 %921 }
 0x18a   : > { %v910_v41 = vpop.permute.xlu1 %909 }
 0x18b   : > { %v956_v58 = vmul.f32 %v10430_v7, %v910_v41  ;;  %v10812_v41 = vsel %vm1702_vm1, 1.0, %v12523_v14 }
 0x18c   : > { %12728 = vst [vmem:[#allocation13_spill] sm:$0xff] %v10812_v41 }
 0x18d   : > { %v988_v15 = vadd.f32 %v956_v58, %v792_v31  ;;  %v2112_v31 = vld [vmem:[#allocation2 + $0x8] sm:$0xff]  ;;  %v2113_v58 = vld [vmem:[#allocation2 + $0x10] sm:$0xff] }
 0x18e   : > { %v914_v3 = vpop.permute.xlu1 %913  ;;  %v2144_v59 = vpack.c.bf16 %v2113_v58, %v2112_v31  ;;  %v2121_v31 = vld [vmem:[#allocation2 + $0x50] sm:$0xff] }
 0x18f   : > { %vm1020_vm14 = vcmp.gt.f32.partialorder %v988_v15, 0.0  ;;  %v1052_v45 = vmul.f32 0.2, %v988_v15  ;;  %v957_v57 = vmul.f32 %v10430_v7, %v914_v3  ;;  %v10798_v8 = vld [vmem:[#allocation2 + $0xe7] sm:$0xff]  ;;  %v10802_v62 = vld [vmem:[#allocation2 + $0xef] sm:$0xff] }
 0x190   : > { %v1835_v6 = vmul.f32 %v10793_v38, %v10798_v8 }
 0x191   : > { %v1084_v13 = vsel %vm1020_vm14, %v988_v15, %v1052_v45  ;;  %v989_v9 = vadd.f32 %v957_v57, %v793_v48  ;;  %v599_v15 = vadd.f32 %v10093_v4, %v567_v33  ;;  %v959_v57 = vmul.f32 %v10430_v7, %v922_v49  ;;  %v2119_v33 = vld [vmem:[#allocation2 + $0x40] sm:$0xff]  ;;  %v2122_v49 = vld [vmem:[#allocation2 + $0x58] sm:$0xff] }
 0x192   : > { %1155 = vst.msk [vmem:[#allocation2 + $0xf8] sm:$0xff] %vm1088_vm0, %v1084_v13  ;;  %v1853_v11 = vpack.c.bf16 %v10802_v62, %v1835_v6 }
 0x193   : > { %vm1021_vm15 = vcmp.gt.f32.partialorder %v989_v9, 0.0  ;;  %v1053_v46 = vmul.f32 0.2, %v989_v9  ;;  %v722_v26 = vpop.permute.xlu1 %721 }
 0x194   : > { %8813 = vmatprep.mubr.msk.bf16.mxu0 %vm1088_vm0, %v1853_v11  ;;  %v762_v51 = vmul.f32 %v10420_v63, %v722_v26  ;;  %v2115_v11 = vld [vmem:[#allocation2 + $0x20] sm:$0xff] }
 0x195   : > { %v1085_v20 = vsel %vm1021_vm15, %v989_v9, %v1053_v46  ;;  %v2117_v46 = vld [vmem:[#allocation2 + $0x30] sm:$0xff] }
 0x196   : > { %1156 = vst.msk [vmem:[#allocation2 + $0x100] sm:$0xff] %vm1088_vm0, %v1085_v20  ;;  %v794_v24 = vadd.f32 %v762_v51, %v598_v55  ;;  %v2114_v55 = vld [vmem:[#allocation2 + $0x18] sm:$0xff]  ;;  %v10062_v51 = vld [vmem:[%s12516_s3 + $0x28] sm:$0xff]  }
 0x198   : > { %v918_v61 = vpop.permute.xlu1 %917 }
 0x199   : > { %v958_v32 = vmul.f32 %v10430_v7, %v918_v61  ;;  %v10814_v54 = vld [vmem:[#allocation2 + $0xf7] sm:$0xff]  ;;  %v2116_v7 = vld [vmem:[#allocation2 + $0x28] sm:$0xff] }
 0x19a   : > { %v1837_v3 = vmul.f32 %v10812_v41, %v10814_v54  ;;  %v10832_v20 = vpack.c.bf16 %v2117_v46, %v2116_v7  ;;  %v2120_v61 = vld [vmem:[#allocation2 + $0x48] sm:$0xff]  ;;  %v2133_v46 = vld [vmem:[#allocation2 + $0xb0] sm:$0xff] }
 0x19b   : > { %v990_v5 = vadd.f32 %v958_v32, %v794_v24  ;;  %v2118_v24 = vld [vmem:[#allocation2 + $0x38] sm:$0xff]  ;;  %v10847_v58 = vpack.c.bf16 %v2121_v31, %v2120_v61  ;;  %v2137_v7 = vld [vmem:[#allocation2 + $0xd0] sm:$0xff] }
 0x19c   : > { %v10844_v32 = vpack.c.bf16 %v2119_v33, %v2118_v24  ;;  %v1161_v24 = vadd.s32 8, %v10306_v18  ;;  %v2136_v33 = vld [vmem:[#allocation2 + $0xc8] sm:$0xff] }
 0x19d   : > { %vm1022_vm2 = vcmp.gt.f32.partialorder %v990_v5, 0.0  ;;  %v1054_v1 = vmul.f32 0.2, %v990_v5  ;;  %v726_v16 = vpop.permute.xlu1 %725  ;;  %v10818_v48 = vld [vmem:[#allocation2 + $0xff] sm:$0xff]  ;;  %v10880_v31 = vpack.c.bf16 %v2137_v7, %v2136_v33  ;;  %v1167_v33 = vadd.s32 56, %v10306_v18 }
 0x19e   : > { %v763_v45 = vmul.f32 %v10420_v63, %v726_v16  ;;  %v1854_v6 = vpack.c.bf16 %v10818_v48, %v1837_v3  ;;  %v10826_v63 = vpack.c.bf16 %v2115_v11, %v2114_v55  ;;  %v2125_v3 = vld [vmem:[#allocation2 + $0x70] sm:$0xff]  ;;  %v2127_v16 = vld [vmem:[#allocation2 + $0x80] sm:$0xff]  ;;  %v2130_v11 = vld [vmem:[#allocation2 + $0x98] sm:$0xff] }
 0x19f   : > { %v1086_v13 = vsel %vm1022_vm2, %v990_v5, %v1054_v1  ;;  %v2124_v5 = vld [vmem:[#allocation2 + $0x68] sm:$0xff]  ;;  %v2143_v7 = vld [vmem:[#allocation2 + $0x100] sm:$0xff] }
 0x1a0   : > { %1157 = vst.msk [vmem:[#allocation2 + $0x108] sm:$0xff] %vm1088_vm0, %v1086_v13  ;;  %v795_v9 = vadd.f32 %v763_v45, %v599_v15  ;;  %8814 = vmatmul.mubr.msk.bf16.gmra.mrb[28].mxu0 %vm1088_vm0, %v1854_v6  ;;  %v10855_v1 = vpack.c.bf16 %v2125_v3, %v2124_v5  ;;  %v2126_v45 = vld [vmem:[#allocation2 + $0x78] sm:$0xff]  ;;  %v2128_v6 = vld [vmem:[#allocation2 + $0x88] sm:$0xff]  ;;  %v2139_v5 = vld [vmem:[#allocation2 + $0xe0] sm:$0xff]  ;;  %v1163_v3 = vadd.s32 24, %v10306_v18 }
 0x1a1   : > { %8821 = vmatprep.mubr.msk.bf16.mxu0 %vm1088_vm0, %v2144_v59  ;;  %v2129_v59 = vld [vmem:[#allocation2 + $0x90] sm:$0xff] }
 0x1a2   : > { %v991_v4 = vadd.f32 %v959_v57, %v795_v9  ;;  %v10861_v57 = vpack.c.bf16 %v2127_v16, %v2126_v45  ;;  %v10863_v13 = vpack.c.bf16 %v2129_v59, %v2128_v6  ;;  %v2131_v9 = vld [vmem:[#allocation2 + $0xa0] sm:$0xff]  ;;  %v2138_v16 = vld [vmem:[#allocation2 + $0xd8] sm:$0xff]  ;;  %v1165_v59 = vadd.s32 40, %v10306_v18  ;;  %v2141_v6 = vld [vmem:[#allocation2 + $0xf0] sm:$0xff] }
 0x1a3   : > { %v10888_v45 = vpack.c.bf16 %v2139_v5, %v2138_v16  ;;  %v1169_v5 = vadd.s32 72, %v10306_v18 }
 0x1a4   : > { %vm1023_vm3 = vcmp.gt.f32.partialorder %v991_v4, 0.0  ;;  %v1055_v19 = vmul.f32 0.2, %v991_v4 }
 0x1a6   : > { %v1087_v26 = vsel %vm1023_vm3, %v991_v4, %v1055_v19  ;;  %v2132_v4 = vld [vmem:[#allocation2 + $0xa8] sm:$0xff]  ;;  %v10869_v19 = vpack.c.bf16 %v2131_v9, %v2130_v11  ;;  %v2419_v11 = vld [vmem:[#allocation2 + $0x11] sm:$0xff] }
 0x1a7   : > { %1158 = vst.msk [vmem:[#allocation2 + $0x110] sm:$0xff] %vm1088_vm0, %v1087_v26  ;;  %v10871_v55 = vpack.c.bf16 %v2133_v46, %v2132_v4  ;;  %v2135_v26 = vld [vmem:[#allocation2 + $0xc0] sm:$0xff]  ;;  %v1217_v46 = vand.u32 15, %v1163_v3 }
 0x1a8   : > { %8822 = vmatmul.mubr.msk.bf16.vlgmr.msra.gmra.mrb[0].mxu0 %vm1088_vm0, %v10826_v63 }
 0x1a9   : > { %8854 = vmatpush3.bf16.msra.mxu0 %v10651_v28  ;;  %8825 = vmatprep.mubr.msk.bf16.mxu0 %vm1088_vm0, %v10832_v20  ;;  %v2123_v28 = vld [vmem:[#allocation2 + $0x60] sm:$0xff]  ;;  %vm1579_vm5 = vcmp.ne.s32.totalorder %v1217_v46, 15  ;;  %v1245_v46 = vand.u32 15, %v1167_v33  ;;  %v10926_v33 = vld [vmem:[#allocation2 + $0x29] sm:$0xff] }
 0x1aa   : > { %8855 = vmatprep.subr.bf16.mxu0 %v10062_v51  ;;  %v10853_v15 = vpack.c.bf16 %v2123_v28, %v2122_v49  ;;  %v1203_v28 = vand.u32 15, %v1161_v24  ;;  %v2140_v49 = vld [vmem:[#allocation2 + $0xe8] sm:$0xff]  ;;  %v10905_v3 = vsel %vm1579_vm5, 1.0, %v12523_v14  ;;  %12736 = vst [vmem:[#allocation21_spill] sm:$0xff] %v10926_v33 }
 0x1ab   : > { %v10890_v9 = vpack.c.bf16 %v2141_v6, %v2140_v49  ;;  %v2418_v24 = vld [vmem:[#allocation2 + $0x9] sm:$0xff]  ;;  %12731 = vst [vmem:[#allocation16_spill] sm:$0xff] %v10905_v3  ;;  %v10907_v6 = vld [vmem:[#allocation2 + $0x21] sm:$0xff]  ;;  %vm1583_vm7 = vcmp.ne.s32.totalorder %v1245_v46, 15 }
 0x1ac   : > { %vm1577_vm4 = vcmp.ne.s32.totalorder %v1203_v28, 15  ;;  %v2142_v28 = vld [vmem:[#allocation2 + $0xf8] sm:$0xff]  ;;  %12732 = vst [vmem:[#allocation17_spill] sm:$0xff] %v10907_v6  ;;  %v10935_v46 = vld [vmem:[#allocation2 + $0x41] sm:$0xff] }
 0x1ad   : > { %8856 = vmatpush3.bf16.msra.mxu0 %v10062_v51  ;;  %v2134_v51 = vld [vmem:[#allocation2 + $0xb8] sm:$0xff]  ;;  %v10895_v4 = vsel %vm1577_vm4, 1.0, %v12523_v14  ;;  %v10902_v49 = vpack.c.bf16 %v2143_v7, %v2142_v28  ;;  %v2453_v7 = vmul.f32 %v10905_v3, %v10907_v6  ;;  %v12737_v3 = vmov 0.0   ;;  %12739 = vst [vmem:[#allocation23_spill] sm:$0xff] %v10935_v46 }
 0x1ae   : > { %8889 = vmatprep.subr.bf16.mxu0 %v10842_v10  ;;  %v10878_v61 = vpack.c.bf16 %v2135_v26, %v2134_v51  ;;  %12729 = vst [vmem:[#allocation14_spill] sm:$0xff] %v10895_v4  ;;  %v1231_v26 = vand.u32 15, %v1165_v59  ;;  %v2451_v51 = vmul.f32 %v10895_v4, %v2419_v11  ;;  %v10914_v11 = vld [vmem:[#allocation2 + $0x31] sm:$0xff]  ;;  %v10922_v28 = vld [vmem:[#allocation2 + $0x19] sm:$0xff] }
 0x1af   : > { %12730 = vst [vmem:[#allocation15_spill] sm:$0xff] %v10902_v49  ;;  %12734 = vst [vmem:[#allocation19_spill] sm:$0xff] %v10914_v11  ;;  %v2483_v4 = vpack.c.bf16 %v2453_v7, %v10922_v28  ;;  %v10955_v6 = vld [vmem:[#allocation2 + $0x39] sm:$0xff] }
 0x1b0   : > { %8826 = vmatmul.mubr.msk.bf16.gmra.mrb[4].mxu0 %vm1088_vm0, %v10844_v32  ;;  %vm1581_vm6 = vcmp.ne.s32.totalorder %v1231_v26, 15  ;;  %v2482_v16 = vpack.c.bf16 %v2451_v51, %v2418_v24  ;;  %v1259_v26 = vand.u32 15, %v1169_v5  ;;  %v1171_v24 = vadd.s32 88, %v10306_v18  ;;  %12735 = vst [vmem:[#allocation20_spill] sm:$0xff] %v10922_v28  ;;  %v10064_v5 = vld [vmem:[%s12516_s3 + $0x38] sm:$0xff]   ;;  %12742 = vst [vmem:[#allocation26_spill] sm:$0xff] %v10955_v6 }
 0x1b1   : > { %8829 = vmatprep.mubr.msk.bf16.mxu0 %vm1088_vm0, %v10847_v58  ;;  %v10912_v59 = vsel %vm1581_vm6, 1.0, %v12523_v14  ;;  %v1173_v14 = vadd.s32 104, %v10306_v18 }
 0x1b2   : > { %12733 = vst [vmem:[#allocation18_spill] sm:$0xff] %v10912_v59  ;;  %v2455_v51 = vmul.f32 %v10912_v59, %v10914_v11  ;;  %vm1585_vm8 = vcmp.ne.s32.totalorder %v1259_v26, 15  ;;  %v10933_v59 = vsel %vm1583_vm7, 1.0, %v12737_v3  ;;  %v10941_v11 = vld [vmem:[#allocation2 + $0x51] sm:$0xff]  ;;  %v1273_v7 = vand.u32 15, %v1171_v24 }
 0x1b3   : > { %12738 = vst [vmem:[#allocation22_spill] sm:$0xff] %v10933_v59  ;;  %v10939_v26 = vsel %vm1585_vm8, 1.0, %v12737_v3  ;;  %12741 = vst [vmem:[#allocation25_spill] sm:$0xff] %v10941_v11  ;;  %v1287_v28 = vand.u32 15, %v1173_v14  ;;  %v1175_v24 = vadd.s32 120, %v10306_v18  ;;  %v1177_v14 = vadd.s32 136, %v10306_v18 }
 0x1b4   : > { %12740 = vst [vmem:[#allocation24_spill] sm:$0xff] %v10939_v26  ;;  %vm1587_vm9 = vcmp.ne.s32.totalorder %v1273_v7, 15  ;;  %v10966_v7 = vld [vmem:[#allocation2 + $0x61] sm:$0xff] }
 0x1b5   : > { %vm1589_vm10 = vcmp.ne.s32.totalorder %v1287_v28, 15  ;;  %12745 = vst [vmem:[#allocation29_spill] sm:$0xff] %v10966_v7 }
 0x1b6   : > { %v10970_v28 = vsel %vm1589_vm10, 1.0, %v12737_v3 }
 0x1b7   : > { %12746 = vst [vmem:[#allocation30_spill] sm:$0xff] %v10970_v28 }
 0x1b8   : > { %8830 = vmatmul.mubr.msk.bf16.gmra.mrb[8].mxu0 %vm1088_vm0, %v10853_v15 }
 0x1b9   : > { %8833 = vmatprep.mubr.msk.bf16.mxu0 %vm1088_vm0, %v10855_v1 }
 0x1c0   : > { %8834 = vmatmul.mubr.msk.bf16.gmra.mrb[12].mxu0 %vm1088_vm0, %v10861_v57 }
 0x1c1   : > { %8837 = vmatprep.mubr.msk.bf16.mxu0 %vm1088_vm0, %v10863_v13 }
 0x1c8   : > { %8838 = vmatmul.mubr.msk.bf16.gmra.mrb[16].mxu0 %vm1088_vm0, %v10869_v19 }
 0x1c9   : > { %8841 = vmatprep.mubr.msk.bf16.mxu0 %vm1088_vm0, %v10871_v55 }
 0x1d0   : > { %8842 = vmatmul.mubr.msk.bf16.gmra.mrb[20].mxu0 %vm1088_vm0, %v10878_v61 }
 0x1d1   : > { %8845 = vmatprep.mubr.msk.bf16.mxu0 %vm1088_vm0, %v10880_v31 }
 0x1d8   : > { %8846 = vmatmul.mubr.msk.bf16.gmra.mrb[24].mxu0 %vm1088_vm0, %v10888_v45 }
 0x1d9   : > { %8849 = vmatprep.mubr.msk.bf16.mxu0 %vm1088_vm0, %v10890_v9 }
 0x1e0   : > { %8850 = vmatmul.mubr.msk.bf16.gmra.mrb[28].mxu0 %vm1088_vm0, %v10902_v49 }
 0x1e1   : > { %8857 = vmatprep.mubr.msk.bf16.mxu0 %vm1088_vm0, %v2482_v16  ;;  %v2484_v16 = vpack.c.bf16 %v2455_v51, %v10926_v33  ;;  %v2457_v51 = vmul.f32 %v10933_v59, %v10935_v46  ;;  %v10950_v33 = vld [vmem:[%s12516_s3 + $0x40] sm:$0xff]   ;;  %v10964_v46 = vsel %vm1587_vm9, 1.0, %v12737_v3 }
 0x1e2   : > { %12744 = vst [vmem:[#allocation28_spill] sm:$0xff] %v10964_v46 }
 0x1e8   : > { %8858 = vmatmul.mubr.msk.bf16.vlgmr.msra.gmra.mrb[0].mxu0 %vm1088_vm0, %v2483_v4  ;;  %v2459_v4 = vmul.f32 %v10939_v26, %v10941_v11  ;;  %v10972_v26 = vld [vmem:[#allocation2 + $0x71] sm:$0xff]  ;;  %v2461_v11 = vmul.f32 %v10964_v46, %v10966_v7  ;;  %v10990_v46 = vld [vmem:[#allocation2 + $0x81] sm:$0xff] }
 0x1e9   : > { %8890 = vmatpush3.bf16.msra.mxu0 %v10842_v10  ;;  %8861 = vmatprep.mubr.msk.bf16.mxu0 %vm1088_vm0, %v2484_v16  ;;  %v2485_v10 = vpack.c.bf16 %v2457_v51, %v10955_v6  ;;  %v10959_v16 = vld [vmem:[#allocation2 + $0x49] sm:$0xff]  ;;  %12747 = vst [vmem:[#allocation31_spill] sm:$0xff] %v10972_v26  ;;  %v1315_v51 = vand.u32 15, %v1177_v14  ;;  %v10980_v6 = vld [vmem:[#allocation2 + $0x59] sm:$0xff]  ;;  %12751 = vst [vmem:[#allocation35_spill] sm:$0xff] %v10990_v46 }
 0x1ea   : > { %8891 = vmatprep.subr.bf16.mxu0 %v10064_v5  ;;  %12743 = vst [vmem:[#allocation27_spill] sm:$0xff] %v10959_v16  ;;  %v2486_v59 = vpack.c.bf16 %v2459_v4, %v10959_v16  ;;  %v2463_v4 = vmul.f32 %v10970_v28, %v10972_v26  ;;  %v1179_v16 = vadd.s32 152, %v10306_v18  ;;  %12748 = vst [vmem:[#allocation32_spill] sm:$0xff] %v10980_v6  ;;  %v10996_v28 = vld [vmem:[#allocation2 + $0x91] sm:$0xff] }
 0x1eb   : > { %vm1593_vm12 = vcmp.ne.s32.totalorder %v1315_v51, 15  ;;  %v2487_v49 = vpack.c.bf16 %v2461_v11, %v10980_v6  ;;  %12753 = vst [vmem:[#allocation37_spill] sm:$0xff] %v10996_v28  ;;  %v11004_v6 = vld [vmem:[#allocation2 + $0x79] sm:$0xff] }
 0x1ec   : > { %v1329_v51 = vand.u32 15, %v1179_v16  ;;  %12754 = vst [vmem:[#allocation38_spill] sm:$0xff] %v11004_v6  ;;  %v11008_v16 = vld [vmem:[#allocation2 + $0x89] sm:$0xff] }
 0x1ed   : > { %8892 = vmatpush3.bf16.msra.mxu0 %v10064_v5  ;;  %v1301_v5 = vand.u32 15, %v1175_v24  ;;  %v10984_v24 = vld [vmem:[#allocation2 + $0x69] sm:$0xff]  ;;  %12755 = vst [vmem:[#allocation39_spill] sm:$0xff] %v11008_v16 }
 0x1ee   : > { %8925 = vmatprep.subr.bf16.mxu0 %v10950_v33  ;;  %12749 = vst [vmem:[#allocation33_spill] sm:$0xff] %v10984_v24  ;;  %vm1595_vm13 = vcmp.ne.s32.totalorder %v1329_v51, 15 }
 0x1ef   : > { %vm1591_vm11 = vcmp.ne.s32.totalorder %v1301_v5, 15  ;;  %v10994_v5 = vsel %vm1593_vm12, 1.0, %v12737_v3 }
 0x1f0   : > { %8862 = vmatmul.mubr.msk.bf16.gmra.mrb[4].mxu0 %vm1088_vm0, %v2485_v10  ;;  %v1181_v10 = vadd.s32 168, %v10306_v18  ;;  %v10988_v14 = vsel %vm1591_vm11, 1.0, %v12737_v3  ;;  %12752 = vst [vmem:[#allocation36_spill] sm:$0xff] %v10994_v5 }
 0x1f1   : > { %8865 = vmatprep.mubr.msk.bf16.mxu0 %vm1088_vm0, %v2486_v59  ;;  %v2488_v59 = vpack.c.bf16 %v2463_v4, %v10984_v24  ;;  %12750 = vst [vmem:[#allocation34_spill] sm:$0xff] %v10988_v14  ;;  %v2465_v26 = vmul.f32 %v10988_v14, %v10990_v46  ;;  %v2467_v4 = vmul.f32 %v10994_v5, %v10996_v28  ;;  %v1183_v24 = vadd.s32 184, %v10306_v18  ;;  %v11014_v14 = vld [vmem:[#allocation2 + $0xa1] sm:$0xff]  ;;  %v11020_v5 = vld [vmem:[#allocation2 + $0xb1] sm:$0xff] }
 0x1f2   : > { %v1343_v11 = vand.u32 15, %v1181_v10  ;;  %12757 = vst [vmem:[#allocation41_spill] sm:$0xff] %v11014_v14  ;;  %12759 = vst [vmem:[#allocation43_spill] sm:$0xff] %v11020_v5 }
 0x1f3   : > { %v2489_v7 = vpack.c.bf16 %v2465_v26, %v11004_v6  ;;  %v2490_v10 = vpack.c.bf16 %v2467_v4, %v11008_v16  ;;  %v1187_v16 = vadd.s32 216, %v10306_v18  ;;  %v11028_v6 = vld [vmem:[#allocation2 + $0x99] sm:$0xff] }
 0x1f4   : > { %vm1597_vm14 = vcmp.ne.s32.totalorder %v1343_v11, 15  ;;  %v1357_v11 = vand.u32 15, %v1183_v24  ;;  %12760 = vst [vmem:[#allocation44_spill] sm:$0xff] %v11028_v6  ;;  %v11032_v24 = vld [vmem:[#allocation2 + $0xa9] sm:$0xff] }
 0x1f5   : > { %v11018_v51 = vsel %vm1597_vm14, 1.0, %v12737_v3  ;;  %12761 = vst [vmem:[#allocation45_spill] sm:$0xff] %v11032_v24 }
 0x1f6   : > { %12758 = vst [vmem:[#allocation42_spill] sm:$0xff] %v11018_v51  ;;  %v2471_v4 = vmul.f32 %v11018_v51, %v11020_v5  ;;  %vm1599_vm15 = vcmp.ne.s32.totalorder %v1357_v11, 15  ;;  %v11044_v51 = vld [vmem:[#allocation2 + $0xd1] sm:$0xff] }
 0x1f7   : > { %12764 = vst [vmem:[#allocation48_spill] sm:$0xff] %v11044_v51 }
 0x1f8   : > { %8866 = vmatmul.mubr.msk.bf16.gmra.mrb[8].mxu0 %vm1088_vm0, %v2487_v49  ;;  %v1185_v49 = vadd.s32 200, %v10306_v18 }
 0x1f9   : > { %8869 = vmatprep.mubr.msk.bf16.mxu0 %vm1088_vm0, %v2488_v59  ;;  %v11012_v59 = vsel %vm1595_vm13, 1.0, %v12737_v3 }
 0x1fa   : > { %12756 = vst [vmem:[#allocation40_spill] sm:$0xff] %v11012_v59  ;;  %v1371_v26 = vand.u32 15, %v1185_v49  ;;  %v2469_v28 = vmul.f32 %v11012_v59, %v11014_v14  ;;  %v2492_v49 = vpack.c.bf16 %v2471_v4, %v11032_v24  ;;  %v11038_v59 = vld [vmem:[#allocation2 + $0xc1] sm:$0xff]  ;;  %v1191_v24 = vadd.s32 248, %v10306_v18  ;;  %v11055_v14 = vld [vmem:[#allocation2 + $0xc9] sm:$0xff] }
 0x1fb   : > { %12765 = vst [vmem:[#allocation49_spill] sm:$0xff] %v11055_v14 }
 0x1fc   : > { %vm1601_vm1 = vcmp.ne.s32.totalorder %v1371_v26, 15  ;;  %v2491_v46 = vpack.c.bf16 %v2469_v28, %v11028_v6  ;;  %v1385_v26 = vand.u32 15, %v1187_v16  ;;  %v11052_v6 = vld [vmem:[#allocation2 + $0xb9] sm:$0xff] }
 0x1fd   : > { %v11042_v11 = vsel %vm1601_vm1, 1.0, %v12737_v3 }
 0x1fe   : > { %12763 = vst [vmem:[#allocation47_spill] sm:$0xff] %v11042_v11  ;;  %v2475_v4 = vmul.f32 %v11042_v11, %v11044_v51  ;;  %vm1603_vm2 = vcmp.ne.s32.totalorder %v1385_v26, 15  ;;  %v1413_v11 = vand.u32 15, %v1191_v24  ;;  %v11083_v24 = vld [vmem:[#allocation2 + $0x101] sm:$0xff] }
 0x1ff   : > { %12770 = vst [vmem:[#allocation54_spill] sm:$0xff] %v11083_v24 }
 0x200   : > { %8870 = vmatmul.mubr.msk.bf16.gmra.mrb[12].mxu0 %vm1088_vm0, %v2489_v7  ;;  %v1189_v7 = vadd.s32 232, %v10306_v18  ;;  %v2494_v16 = vpack.c.bf16 %v2475_v4, %v11055_v14  ;;  %v11067_v18 = vld [vmem:[#allocation2 + $0xf1] sm:$0xff]  ;;  %vm1607_vm4 = vcmp.ne.s32.totalorder %v1413_v11, 15  ;;  %v11074_v4 = vld [vmem:[#allocation2 + $0xd9] sm:$0xff] }
 0x201   : > { %8873 = vmatprep.mubr.msk.bf16.mxu0 %vm1088_vm0, %v2490_v10  ;;  %v11036_v10 = vsel %vm1599_vm15, 1.0, %v12737_v3  ;;  %v11081_v51 = vsel %vm1607_vm4, 1.0, %v12737_v3 }
 0x202   : > { %12762 = vst [vmem:[#allocation46_spill] sm:$0xff] %v11036_v10  ;;  %v1399_v28 = vand.u32 15, %v1189_v7  ;;  %v2473_v5 = vmul.f32 %v11036_v10, %v11038_v59  ;;  %v11059_v7 = vsel %vm1603_vm2, 1.0, %v12737_v3  ;;  %12769 = vst [vmem:[#allocation53_spill] sm:$0xff] %v11081_v51  ;;  %v2481_v11 = vmul.f32 %v11081_v51, %v11083_v24 }
 0x203   : > { %12766 = vst [vmem:[#allocation50_spill] sm:$0xff] %v11059_v7 }
 0x204   : > { %vm1605_vm3 = vcmp.ne.s32.totalorder %v1399_v28, 15 }
 0x205   : > { %v11065_v26 = vsel %vm1605_vm3, 1.0, %v12737_v3  ;;  %v11094_v3 = vld [vmem:[#allocation2 + $0x37] sm:$0xff] }
 0x206   : > { %12767 = vst [vmem:[#allocation51_spill] sm:$0xff] %v11065_v26  ;;  %v2479_v28 = vmul.f32 %v11065_v26, %v11067_v18  ;;  %v2757_v26 = vld [vmem:[#allocation2 + $0x1f] sm:$0xff]  ;;  %12771 = vst [vmem:[#allocation55_spill] sm:$0xff] %v11094_v3  ;;  %v2792_v51 = vmul.f32 %v10475_v35, %v11094_v3  ;;  %v10067_v35 = vld [vmem:[%s12516_s3 + $0x50] sm:$0xff]  }
 0x207   : > { %v11140_v3 = vld [vmem:[#allocation2 + $0x7f] sm:$0xff] }
 0x208   : > { %8874 = vmatmul.mubr.msk.bf16.gmra.mrb[16].mxu0 %vm1088_vm0, %v2491_v46  ;;  %v2493_v46 = vpack.c.bf16 %v2473_v5, %v11052_v6 }
 0x209   : > { %8877 = vmatprep.mubr.msk.bf16.mxu0 %vm1088_vm0, %v2492_v49  ;;  %v11061_v49 = vld [vmem:[#allocation2 + $0xe1] sm:$0xff] }
 0x20a   : > { %v2477_v5 = vmul.f32 %v11059_v7, %v11061_v49  ;;  %v11089_v7 = vld [vmem:[#allocation2 + $0xf9] sm:$0xff] }
 0x20c   : > { %v2495_v14 = vpack.c.bf16 %v2477_v5, %v11074_v4 }
 0x210   : > { %8878 = vmatmul.mubr.msk.bf16.gmra.mrb[20].mxu0 %vm1088_vm0, %v2493_v46  ;;  %v11077_v46 = vld [vmem:[#allocation2 + $0xe9] sm:$0xff] }
 0x211   : > { %8881 = vmatprep.mubr.msk.bf16.mxu0 %vm1088_vm0, %v2494_v16  ;;  %12768 = vst [vmem:[#allocation52_spill] sm:$0xff] %v11077_v46  ;;  %v2496_v10 = vpack.c.bf16 %v2479_v28, %v11077_v46  ;;  %v2756_v16 = vld [vmem:[#allocation2 + $0x17] sm:$0xff]  ;;  %v2497_v28 = vpack.c.bf16 %v2481_v11, %v11089_v7  ;;  %v11106_v11 = vld [vmem:[#allocation2 + $0x3f] sm:$0xff] }
 0x212   : > { %v2788_v5 = vmul.f32 %v10314_v22, %v2756_v16  ;;  %12772 = vst [vmem:[#allocation56_spill] sm:$0xff] %v11106_v11 }
 0x214   : > { %v2820_v46 = vpack.c.bf16 %v2757_v26, %v2788_v5  ;;  %v10066_v26 = vld [vmem:[%s12516_s3 + $0x48] sm:$0xff]  }
 0x215   : > { %v11112_v5 = vld [vmem:[#allocation2 + $0x47] sm:$0xff] }
 0x216   : > { %12773 = vst [vmem:[#allocation57_spill] sm:$0xff] %v11112_v5 }
 0x218   : > { %8882 = vmatmul.mubr.msk.bf16.gmra.mrb[24].mxu0 %vm1088_vm0, %v2495_v14  ;;  %v11097_v14 = vld [vmem:[#allocation2 + $0x27] sm:$0xff] }
 0x219   : > { %8885 = vmatprep.mubr.msk.bf16.mxu0 %vm1088_vm0, %v2496_v10  ;;  %v11099_v10 = vld [vmem:[#allocation2 + $0x2f] sm:$0xff]  ;;  %v2790_v24 = vmul.f32 %v10466_v23, %v11097_v14  ;;  %v11124_v23 = vld [vmem:[#allocation2 + $0x5f] sm:$0xff] }
 0x21a   : > { %12775 = vst [vmem:[#allocation59_spill] sm:$0xff] %v11124_v23 }
 0x21b   : > { %v2821_v16 = vpack.c.bf16 %v11099_v10, %v2790_v24  ;;  %v11119_v24 = vld [vmem:[#allocation2 + $0x57] sm:$0xff] }
 0x21c   : > { %12774 = vst [vmem:[#allocation58_spill] sm:$0xff] %v11119_v24 }
 0x220   : > { %8886 = vmatmul.mubr.msk.bf16.gmra.mrb[28].mxu0 %vm1088_vm0, %v2497_v28  ;;  %v2794_v28 = vmul.f32 %v10546_v21, %v11112_v5  ;;  %v11132_v21 = vld [vmem:[#allocation2 + $0x67] sm:$0xff]  ;;  %v11138_v5 = vld [vmem:[#allocation2 + $0x77] sm:$0xff] }
 0x221   : > { %8893 = vmatprep.mubr.msk.bf16.mxu0 %vm1088_vm0, %v2820_v46  ;;  %v2822_v46 = vpack.c.bf16 %v11106_v11, %v2792_v51  ;;  %v11126_v51 = vld [vmem:[#allocation2 + $0x4f] sm:$0xff]  ;;  %v2798_v11 = vmul.f32 %v10586_v37, %v11132_v21 }
 0x228   : > { %8894 = vmatmul.mubr.msk.bf16.vlgmr.msra.gmra.mrb[0].mxu0 %vm1088_vm0, %v2821_v16  ;;  %v2796_v16 = vmul.f32 %v10571_v40, %v11119_v24  ;;  %v11142_v24 = vld [vmem:[#allocation2 + $0x6f] sm:$0xff] }
 0x229   : > { %8926 = vmatpush3.bf16.msra.mxu0 %v10950_v33  ;;  %8897 = vmatprep.mubr.msk.bf16.mxu0 %vm1088_vm0, %v2822_v46  ;;  %v2823_v33 = vpack.c.bf16 %v11126_v51, %v2794_v28  ;;  %v2825_v28 = vpack.c.bf16 %v11142_v24, %v2798_v11  ;;  %v2806_v11 = vmul.f32 %v10666_v39, %v10704_v52 }
 0x22a   : > { %8927 = vmatprep.subr.bf16.mxu0 %v10066_v26  ;;  %v2824_v46 = vpack.c.bf16 %v11124_v23, %v2796_v16  ;;  %v2816_v52 = vmul.f32 %v10793_v38, %v10814_v54  ;;  %v3125_v54 = vld [vmem:[#allocation2 + $0x110] sm:$0xff] }
 0x22d   : > { %8928 = vmatpush3.bf16.msra.mxu0 %v10066_v26  ;;  %v2800_v26 = vmul.f32 %v10599_v0, %v11138_v5 }
 0x22e   : > { %8961 = vmatprep.subr.bf16.mxu0 %v10067_v35 }
 0x22f   : > { %v2826_v16 = vpack.c.bf16 %v11140_v3, %v2800_v26  ;;  %v2808_v26 = vmul.f32 %v10700_v25, %v10719_v2  ;;  %v2834_v2 = vpack.c.bf16 %v10818_v48, %v2816_v52  ;;  %v12777_v48 = vld [vmem:[#allocation17_spill] sm:$0xff] }
 0x230   : > { %8898 = vmatmul.mubr.msk.bf16.gmra.mrb[4].mxu0 %vm1088_vm0, %v2823_v33  ;;  %v2802_v33 = vmul.f32 %v10618_v30, %v10658_v34 }
 0x231   : > { %8901 = vmatprep.mubr.msk.bf16.mxu0 %vm1088_vm0, %v2824_v46  ;;  %v2804_v46 = vmul.f32 %v10656_v36, %v10668_v44  ;;  %v2830_v34 = vpack.c.bf16 %v10726_v47, %v2808_v26  ;;  %v11182_v47 = vld [vmem:[#allocation2 + $0x107] sm:$0xff] }
 0x232   : > { %v2827_v37 = vpack.c.bf16 %v10663_v42, %v2802_v33  ;;  %v2810_v42 = vmul.f32 %v10717_v17, %v10751_v29  ;;  %v11184_v29 = vld [vmem:[#allocation2 + $0x10f] sm:$0xff] }
 0x233   : > { %v2828_v23 = vpack.c.bf16 %v10676_v50, %v2804_v46  ;;  %v2814_v50 = vmul.f32 %v10759_v43, %v10798_v8  ;;  %v10069_v8 = vld [vmem:[%s12516_s3 + $0x60] sm:$0xff]  }
 0x234   : > { %v12786_v46 = vld [vmem:[#allocation25_spill] sm:$0xff] }
 0x238   : > { %8902 = vmatmul.mubr.msk.bf16.gmra.mrb[8].mxu0 %vm1088_vm0, %v2825_v28  ;;  %v2829_v28 = vpack.c.bf16 %v10708_v12, %v2806_v11  ;;  %v2833_v12 = vpack.c.bf16 %v10802_v62, %v2814_v50  ;;  %v3124_v62 = vld [vmem:[#allocation2 + $0x108] sm:$0xff]  ;;  %v12791_v50 = vld [vmem:[#allocation32_spill] sm:$0xff] }
 0x239   : > { %8905 = vmatprep.mubr.msk.bf16.mxu0 %vm1088_vm0, %v2826_v16  ;;  %v12785_v16 = vld [vmem:[#allocation26_spill] sm:$0xff] }
 0x23a   : > { %v12787_v11 = vld [vmem:[#allocation22_spill] sm:$0xff] }
 0x23b   : > { %v3439_v26 = vmul.f32 %v12787_v11, %v12786_v46 }
 0x240   : > { %8906 = vmatmul.mubr.msk.bf16.gmra.mrb[12].mxu0 %vm1088_vm0, %v2827_v37  ;;  %v2831_v37 = vpack.c.bf16 %v10756_v53, %v2810_v42  ;;  %v2818_v53 = vmul.f32 %v10812_v41, %v11182_v47  ;;  %v12789_v42 = vld [vmem:[#allocation24_spill] sm:$0xff] }
 0x241   : > { %8909 = vmatprep.mubr.msk.bf16.mxu0 %vm1088_vm0, %v2828_v23  ;;  %v2812_v23 = vmul.f32 %v10749_v27, %v10761_v56 }
 0x242   : > { %v2835_v56 = vpack.c.bf16 %v11184_v29, %v2818_v53 }
 0x243   : > { %v2832_v44 = vpack.c.bf16 %v10769_v60, %v2812_v23  ;;  %v10068_v60 = vld [vmem:[%s12516_s3 + $0x58] sm:$0xff]  }
 0x248   : > { %8910 = vmatmul.mubr.msk.bf16.gmra.mrb[16].mxu0 %vm1088_vm0, %v2829_v28  ;;  %v10071_v28 = vld [vmem:[%s12516_s3 + $0x70] sm:$0xff]  }
 0x249   : > { %8913 = vmatprep.mubr.msk.bf16.mxu0 %vm1088_vm0, %v2830_v34  ;;  %v12788_v34 = vld [vmem:[#allocation29_spill] sm:$0xff] }
 0x24a   : > { %v3441_v23 = vmul.f32 %v12789_v42, %v12788_v34 }
 0x24c   : > { %v3468_v52 = vpack.c.bf16 %v3441_v23, %v12791_v50  ;;  %v12807_v23 = vld [vmem:[#allocation45_spill] sm:$0xff]  ;;  %v12808_v50 = vld [vmem:[#allocation48_spill] sm:$0xff] }
 0x250   : > { %8914 = vmatmul.mubr.msk.bf16.gmra.mrb[20].mxu0 %vm1088_vm0, %v2831_v37  ;;  %v12790_v37 = vld [vmem:[#allocation27_spill] sm:$0xff] }
 0x251   : > { %8917 = vmatprep.mubr.msk.bf16.mxu0 %vm1088_vm0, %v2832_v44  ;;  %v3467_v44 = vpack.c.bf16 %v3439_v26, %v12790_v37  ;;  %v12806_v26 = vld [vmem:[#allocation42_spill] sm:$0xff] }
 0x252   : > { %v3453_v34 = vmul.f32 %v12806_v26, %v11038_v59 }
 0x258   : > { %8918 = vmatmul.mubr.msk.bf16.gmra.mrb[24].mxu0 %vm1088_vm0, %v2833_v12  ;;  %v12792_v12 = vld [vmem:[#allocation31_spill] sm:$0xff] }
 0x259   : > { %8921 = vmatprep.mubr.msk.bf16.mxu0 %vm1088_vm0, %v2834_v2  ;;  %v12793_v2 = vld [vmem:[#allocation28_spill] sm:$0xff] }
 0x25a   : > { %v3443_v53 = vmul.f32 %v12793_v2, %v12792_v12 }
 0x260   : > { %8922 = vmatmul.mubr.msk.bf16.gmra.mrb[28].mxu0 %vm1088_vm0, %v2835_v56  ;;  %v12794_v56 = vld [vmem:[#allocation35_spill] sm:$0xff] }
 0x261   : > { %8929 = vmatprep.mubr.msk.bf16.mxu0 %vm1088_vm0, %v10826_v63  ;;  %v12778_v63 = vld [vmem:[#allocation14_spill] sm:$0xff] }
 0x268   : > { %8930 = vmatmul.mubr.msk.bf16.vlgmr.msra.gmra.mrb[0].mxu0 %vm1088_vm0, %v10832_v20  ;;  %v3433_v20 = vmul.f32 %v12778_v63, %v12777_v48 }
 0x269   : > { %8962 = vmatpush3.bf16.msra.mxu0 %v10067_v35  ;;  %8933 = vmatprep.mubr.msk.bf16.mxu0 %vm1088_vm0, %v10844_v32  ;;  %v12776_v35 = vld [vmem:[#allocation15_spill] sm:$0xff]  ;;  %v11228_v32 = vpack.c.bf16 %v3125_v54, %v3124_v62  ;;  %v12797_v54 = vld [vmem:[#allocation38_spill] sm:$0xff] }
 0x26a   : > { %8963 = vmatprep.subr.bf16.mxu0 %v10068_v60 }
 0x26d   : > { %8964 = vmatpush3.bf16.msra.mxu0 %v10068_v60  ;;  %v12795_v60 = vld [vmem:[#allocation30_spill] sm:$0xff] }
 0x26e   : > { %8997 = vmatprep.subr.bf16.mxu0 %v10069_v8 }
 0x270   : > { %8934 = vmatmul.mubr.msk.bf16.gmra.mrb[4].mxu0 %vm1088_vm0, %v10847_v58  ;;  %v12779_v58 = vld [vmem:[#allocation20_spill] sm:$0xff] }
 0x271   : > { %8937 = vmatprep.mubr.msk.bf16.mxu0 %vm1088_vm0, %v10853_v15  ;;  %v3464_v15 = vpack.c.bf16 %v3433_v20, %v12779_v58  ;;  %v12798_v20 = vld [vmem:[#allocation37_spill] sm:$0xff]  ;;  %v12799_v58 = vld [vmem:[#allocation34_spill] sm:$0xff] }
 0x278   : > { %8938 = vmatmul.mubr.msk.bf16.gmra.mrb[8].mxu0 %vm1088_vm0, %v10855_v1  ;;  %v12780_v1 = vld [vmem:[#allocation19_spill] sm:$0xff] }
 0x279   : > { %8941 = vmatprep.mubr.msk.bf16.mxu0 %vm1088_vm0, %v10861_v57  ;;  %v12781_v57 = vld [vmem:[#allocation16_spill] sm:$0xff] }
 0x280   : > { %8942 = vmatmul.mubr.msk.bf16.gmra.mrb[12].mxu0 %vm1088_vm0, %v10863_v13  ;;  %v3435_v13 = vmul.f32 %v12781_v57, %v12780_v1  ;;  %v12800_v1 = vld [vmem:[#allocation41_spill] sm:$0xff] }
 0x281   : > { %8945 = vmatprep.mubr.msk.bf16.mxu0 %vm1088_vm0, %v10869_v19  ;;  %v12782_v19 = vld [vmem:[#allocation23_spill] sm:$0xff] }
 0x288   : > { %8946 = vmatmul.mubr.msk.bf16.gmra.mrb[16].mxu0 %vm1088_vm0, %v10871_v55  ;;  %v12783_v55 = vld [vmem:[#allocation18_spill] sm:$0xff] }
 0x289   : > { %8949 = vmatprep.mubr.msk.bf16.mxu0 %vm1088_vm0, %v10878_v61  ;;  %v3437_v61 = vmul.f32 %v12783_v55, %v12782_v19 }
 0x28b   : > { %v3466_v33 = vpack.c.bf16 %v3437_v61, %v12785_v16  ;;  %v12802_v61 = vld [vmem:[#allocation39_spill] sm:$0xff] }
 0x28c   : > { %v12804_v16 = vld [vmem:[#allocation43_spill] sm:$0xff] }
 0x290   : > { %8950 = vmatmul.mubr.msk.bf16.gmra.mrb[20].mxu0 %vm1088_vm0, %v10880_v31  ;;  %v12784_v31 = vld [vmem:[#allocation21_spill] sm:$0xff] }
 0x291   : > { %8953 = vmatprep.mubr.msk.bf16.mxu0 %vm1088_vm0, %v10888_v45  ;;  %v3465_v45 = vpack.c.bf16 %v3435_v13, %v12784_v31  ;;  %v12801_v13 = vld [vmem:[#allocation36_spill] sm:$0xff] }
 0x292   : > { %v3449_v19 = vmul.f32 %v12801_v13, %v12800_v1 }
 0x298   : > { %8954 = vmatmul.mubr.msk.bf16.gmra.mrb[24].mxu0 %vm1088_vm0, %v10890_v9  ;;  %v10070_v9 = vld [vmem:[%s12516_s3 + $0x68] sm:$0xff]  }
 0x299   : > { %8957 = vmatprep.mubr.msk.bf16.mxu0 %vm1088_vm0, %v12776_v35  ;;  %v12796_v35 = vld [vmem:[#allocation33_spill] sm:$0xff] }
 0x29a   : > { %v3469_v62 = vpack.c.bf16 %v3443_v53, %v12796_v35  ;;  %v12810_v53 = vld [vmem:[#allocation47_spill] sm:$0xff] }
 0x2a0   : > { %8958 = vmatmul.mubr.msk.bf16.gmra.mrb[28].mxu0 %vm1088_vm0, %v11228_v32 }
 0x2a1   : > { %8965 = vmatprep.mubr.msk.bf16.mxu0 %vm1088_vm0, %v3464_v15  ;;  %v3447_v15 = vmul.f32 %v12799_v58, %v12798_v20  ;;  %v12813_v20 = vld [vmem:[#allocation54_spill] sm:$0xff] }
 0x2a3   : > { %v3471_v31 = vpack.c.bf16 %v3447_v15, %v12802_v61  ;;  %v12814_v15 = vld [vmem:[#allocation51_spill] sm:$0xff] }
 0x2a4   : > { %v3461_v1 = vmul.f32 %v12814_v15, %v12813_v20 }
 0x2a8   : > { %8966 = vmatmul.mubr.msk.bf16.vlgmr.msra.gmra.mrb[0].mxu0 %vm1088_vm0, %v3465_v45  ;;  %v12803_v45 = vld [vmem:[#allocation44_spill] sm:$0xff] }
 0x2a9   : > { %8998 = vmatpush3.bf16.msra.mxu0 %v10069_v8  ;;  %8969 = vmatprep.mubr.msk.bf16.mxu0 %vm1088_vm0, %v3466_v33  ;;  %v3445_v8 = vmul.f32 %v12795_v60, %v12794_v56  ;;  %v12805_v33 = vld [vmem:[#allocation40_spill] sm:$0xff]  ;;  %v3457_v56 = vmul.f32 %v12810_v53, %v11061_v49 }
 0x2aa   : > { %8999 = vmatprep.subr.bf16.mxu0 %v10070_v9  ;;  %v3451_v46 = vmul.f32 %v12805_v33, %v12804_v16 }
 0x2ab   : > { %v3470_v48 = vpack.c.bf16 %v3445_v8, %v12797_v54  ;;  %v12811_v8 = vld [vmem:[#allocation49_spill] sm:$0xff]  ;;  %v12812_v54 = vld [vmem:[#allocation50_spill] sm:$0xff] }
 0x2ac   : > { %v3473_v37 = vpack.c.bf16 %v3451_v46, %v12807_v23 }
 0x2ad   : > { %9000 = vmatpush3.bf16.msra.mxu0 %v10070_v9  ;;  %v3472_v9 = vpack.c.bf16 %v3449_v19, %v12803_v45  ;;  %v12815_v19 = vld [vmem:[#allocation52_spill] sm:$0xff] }
 0x2ae   : > { %9033 = vmatprep.subr.bf16.mxu0 %v10071_v28  ;;  %v11294_v45 = vld [vmem:[#allocation2 + $0x111] sm:$0xff] }
 0x2b0   : > { %8970 = vmatmul.mubr.msk.bf16.gmra.mrb[4].mxu0 %vm1088_vm0, %v3467_v44  ;;  %v3474_v44 = vpack.c.bf16 %v3453_v34, %v11052_v6  ;;  %v11300_v34 = vld [vmem:[#allocation2 + $0x109] sm:$0xff] }
 0x2b1   : > { %8973 = vmatprep.mubr.msk.bf16.mxu0 %vm1088_vm0, %v3468_v52  ;;  %v12809_v52 = vld [vmem:[#allocation46_spill] sm:$0xff] }
 0x2b2   : > { %v3455_v12 = vmul.f32 %v12809_v52, %v12808_v50 }
 0x2b4   : > { %v3475_v35 = vpack.c.bf16 %v3455_v12, %v12811_v8 }
 0x2b8   : > { %8974 = vmatmul.mubr.msk.bf16.gmra.mrb[8].mxu0 %vm1088_vm0, %v3469_v62  ;;  %v3476_v62 = vpack.c.bf16 %v3457_v56, %v11074_v4  ;;  %v12817_v56 = vld [vmem:[#allocation55_spill] sm:$0xff] }
 0x2b9   : > { %8977 = vmatprep.mubr.msk.bf16.mxu0 %vm1088_vm0, %v3470_v48  ;;  %v3459_v48 = vmul.f32 %v12812_v54, %v11067_v18 }
 0x2bb   : > { %v3477_v61 = vpack.c.bf16 %v3459_v48, %v12815_v19  ;;  %v12819_v48 = vld [vmem:[#allocation57_spill] sm:$0xff] }
 0x2c0   : > { %8978 = vmatmul.mubr.msk.bf16.gmra.mrb[12].mxu0 %vm1088_vm0, %v3471_v31  ;;  %v3478_v31 = vpack.c.bf16 %v3461_v1, %v11089_v7  ;;  %v12820_v1 = vld [vmem:[#allocation6_spill] sm:$0xff] }
 0x2c1   : > { %8981 = vmatprep.mubr.msk.bf16.mxu0 %vm1088_vm0, %v3472_v9  ;;  %v12816_v9 = vld [vmem:[#allocation53_spill] sm:$0xff] }
 0x2c2   : > { %v3463_v46 = vmul.f32 %v12816_v9, %v11294_v45 }
 0x2c8   : > { %8982 = vmatmul.mubr.msk.bf16.gmra.mrb[16].mxu0 %vm1088_vm0, %v3473_v37  ;;  %v3770_v37 = vmul.f32 %v10314_v22, %v11097_v14  ;;  %v10072_v14 = vld [vmem:[%s12516_s3 + $0x78] sm:$0xff]  }
 0x2c9   : > { %8985 = vmatprep.mubr.msk.bf16.mxu0 %vm1088_vm0, %v3474_v44  ;;  %v3479_v44 = vpack.c.bf16 %v3463_v46, %v11300_v34 }
 0x2ca   : > { %v3802_v12 = vpack.c.bf16 %v11099_v10, %v3770_v37  ;;  %v11322_v10 = vld [vmem:[%s12516_s3 + $0x80] sm:$0xff]   ;;  %v3778_v37 = vmul.f32 %v10571_v40, %v11132_v21 }
 0x2d0   : > { %8986 = vmatmul.mubr.msk.bf16.gmra.mrb[20].mxu0 %vm1088_vm0, %v3475_v35  ;;  %v12818_v35 = vld [vmem:[#allocation5_spill] sm:$0xff] }
 0x2d1   : > { %8989 = vmatprep.mubr.msk.bf16.mxu0 %vm1088_vm0, %v3476_v62  ;;  %v3772_v62 = vmul.f32 %v12818_v35, %v12817_v56 }
 0x2d8   : > { %8990 = vmatmul.mubr.msk.bf16.gmra.mrb[24].mxu0 %vm1088_vm0, %v3477_v61  ;;  %v3774_v61 = vmul.f32 %v12820_v1, %v12819_v48  ;;  %v12825_v48 = vld [vmem:[#allocation9_spill] sm:$0xff] }
 0x2d9   : > { %8993 = vmatprep.mubr.msk.bf16.mxu0 %vm1088_vm0, %v3478_v31  ;;  %v12821_v31 = vld [vmem:[#allocation56_spill] sm:$0xff] }
 0x2da   : > { %v3803_v9 = vpack.c.bf16 %v12821_v31, %v3772_v62  ;;  %v3804_v46 = vpack.c.bf16 %v11126_v51, %v3774_v61  ;;  %v12824_v62 = vld [vmem:[#allocation59_spill] sm:$0xff]  ;;  %v3780_v61 = vmul.f32 %v12825_v48, %v11138_v5 }
 0x2db   : > { %v3751_v31 = vld [vmem:[#allocation2 + $0x8f] sm:$0xff] }
 0x2e0   : > { %8994 = vmatmul.mubr.msk.bf16.gmra.mrb[28].mxu0 %vm1088_vm0, %v3479_v44  ;;  %v12822_v44 = vld [vmem:[#allocation58_spill] sm:$0xff] }
 0x2e1   : > { %9001 = vmatprep.mubr.msk.bf16.mxu0 %vm1088_vm0, %v3802_v12  ;;  %v12823_v12 = vld [vmem:[#allocation7_spill] sm:$0xff] }
 0x2e2   : > { %v3776_v56 = vmul.f32 %v12823_v12, %v12822_v44  ;;  %v3754_v44 = vld [vmem:[#allocation2 + $0xa7] sm:$0xff] }
 0x2e4   : > { %v3805_v51 = vpack.c.bf16 %v12824_v62, %v3776_v56  ;;  %v3786_v56 = vmul.f32 %v10656_v36, %v3754_v44  ;;  %v3762_v44 = vld [vmem:[#allocation2 + $0xe7] sm:$0xff] }
 0x2e8   : > { %9002 = vmatmul.mubr.msk.bf16.vlgmr.msra.gmra.mrb[0].mxu0 %vm1088_vm0, %v3803_v9  ;;  %v3750_v9 = vld [vmem:[#allocation2 + $0x87] sm:$0xff] }
 0x2e9   : > { %9034 = vmatpush3.bf16.msra.mxu0 %v10071_v28  ;;  %9005 = vmatprep.mubr.msk.bf16.mxu0 %vm1088_vm0, %v3804_v46  ;;  %v3806_v28 = vpack.c.bf16 %v11142_v24, %v3778_v37  ;;  %v3782_v21 = vmul.f32 %v10599_v0, %v3750_v9  ;;  %v3807_v46 = vpack.c.bf16 %v11140_v3, %v3780_v61  ;;  %v3752_v24 = vld [vmem:[#allocation2 + $0x97] sm:$0xff]  ;;  %v3753_v37 = vld [vmem:[#allocation2 + $0x9f] sm:$0xff]  ;;  %v3758_v9 = vld [vmem:[#allocation2 + $0xc7] sm:$0xff] }
 0x2ea   : > { %9035 = vmatprep.subr.bf16.mxu0 %v10072_v14  ;;  %v3784_v62 = vmul.f32 %v10618_v30, %v3752_v24  ;;  %v3756_v3 = vld [vmem:[#allocation2 + $0xb7] sm:$0xff]  ;;  %v3757_v61 = vld [vmem:[#allocation2 + $0xbf] sm:$0xff] }
 0x2eb   : > { %v3760_v24 = vld [vmem:[#allocation2 + $0xd7] sm:$0xff] }
 0x2ed   : > { %9036 = vmatpush3.bf16.msra.mxu0 %v10072_v14  ;;  %v3808_v14 = vpack.c.bf16 %v3751_v31, %v3782_v21  ;;  %v3788_v31 = vmul.f32 %v10666_v39, %v3756_v3  ;;  %v3759_v21 = vld [vmem:[#allocation2 + $0xcf] sm:$0xff]  ;;  %v3764_v3 = vld [vmem:[#allocation2 + $0xf7] sm:$0xff] }
 0x2ee   : > { %9069 = vmatprep.subr.bf16.mxu0 %v11322_v10 }
 0x2f0   : > { %9006 = vmatmul.mubr.msk.bf16.gmra.mrb[4].mxu0 %vm1088_vm0, %v3805_v51  ;;  %v3809_v51 = vpack.c.bf16 %v3753_v37, %v3784_v62  ;;  %v3761_v37 = vld [vmem:[#allocation2 + $0xdf] sm:$0xff]  ;;  %v3792_v62 = vmul.f32 %v10717_v17, %v3760_v24  ;;  %v4077_v24 = vld [vmem:[#allocation2 + $0x30] sm:$0xff] }
 0x2f1   : > { %9009 = vmatprep.mubr.msk.bf16.mxu0 %vm1088_vm0, %v3806_v28  ;;  %v3755_v28 = vld [vmem:[#allocation2 + $0xaf] sm:$0xff] }
 0x2f2   : > { %v3810_v5 = vpack.c.bf16 %v3755_v28, %v3786_v56  ;;  %v3794_v56 = vmul.f32 %v10749_v27, %v3762_v44  ;;  %v3763_v28 = vld [vmem:[#allocation2 + $0xef] sm:$0xff]  ;;  %v3769_v44 = vld [vmem:[#allocation2 + $0x11f] sm:$0xff] }
 0x2f8   : > { %9010 = vmatmul.mubr.msk.bf16.gmra.mrb[8].mxu0 %vm1088_vm0, %v3807_v46  ;;  %v3790_v46 = vmul.f32 %v10700_v25, %v3758_v9  ;;  %v3765_v9 = vld [vmem:[#allocation2 + $0xff] sm:$0xff] }
 0x2f9   : > { %9013 = vmatprep.mubr.msk.bf16.mxu0 %vm1088_vm0, %v3808_v14  ;;  %v3811_v14 = vpack.c.bf16 %v3757_v61, %v3788_v31  ;;  %v3796_v61 = vmul.f32 %v10759_v43, %v3764_v3  ;;  %v10074_v3 = vld [vmem:[%s12516_s3 + $0x88] sm:$0xff]  }
 0x2fa   : > { %v3812_v0 = vpack.c.bf16 %v3759_v21, %v3790_v46  ;;  %v3768_v46 = vld [vmem:[#allocation2 + $0x117] sm:$0xff] }
 0x2fb   : > { %v3815_v31 = vpack.c.bf16 %v3765_v9, %v3796_v61  ;;  %v4083_v61 = vld [vmem:[#allocation2 + $0x60] sm:$0xff] }
 0x300   : > { %9014 = vmatmul.mubr.msk.bf16.gmra.mrb[12].mxu0 %vm1088_vm0, %v3809_v51  ;;  %v3813_v51 = vpack.c.bf16 %v3761_v37, %v3792_v62 }
 0x301   : > { %9017 = vmatprep.mubr.msk.bf16.mxu0 %vm1088_vm0, %v3810_v5  ;;  %v3814_v5 = vpack.c.bf16 %v3763_v28, %v3794_v56  ;;  %v4076_v56 = vld [vmem:[#allocation2 + $0x28] sm:$0xff]  ;;  %v4079_v28 = vld [vmem:[#allocation2 + $0x40] sm:$0xff] }
 0x302   : > { %v4108_v62 = vpack.c.bf16 %v4077_v24, %v4076_v56  ;;  %v4089_v24 = vld [vmem:[#allocation2 + $0x90] sm:$0xff] }
 0x308   : > { %9018 = vmatmul.mubr.msk.bf16.gmra.mrb[16].mxu0 %vm1088_vm0, %v3811_v14  ;;  %v3800_v14 = vmul.f32 %v10812_v41, %v3768_v46  ;;  %v4085_v46 = vld [vmem:[#allocation2 + $0x70] sm:$0xff] }
 0x309   : > { %9021 = vmatprep.mubr.msk.bf16.mxu0 %vm1088_vm0, %v3812_v0  ;;  %v3798_v0 = vmul.f32 %v10793_v38, %v11182_v47  ;;  %v4078_v47 = vld [vmem:[#allocation2 + $0x38] sm:$0xff] }
 0x30a   : > { %v3817_v37 = vpack.c.bf16 %v3769_v44, %v3800_v14  ;;  %v4087_v44 = vld [vmem:[#allocation2 + $0x80] sm:$0xff] }
 0x30b   : > { %v3816_v21 = vpack.c.bf16 %v11184_v29, %v3798_v0  ;;  %v4109_v29 = vpack.c.bf16 %v4079_v28, %v4078_v47  ;;  %v4084_v0 = vld [vmem:[#allocation2 + $0x68] sm:$0xff]  ;;  %v4091_v47 = vld [vmem:[#allocation2 + $0xa0] sm:$0xff]  ;;  %v4090_v28 = vld [vmem:[#allocation2 + $0x98] sm:$0xff] }
 0x30c   : > { %v4112_v14 = vpack.c.bf16 %v4085_v46, %v4084_v0  ;;  %v4094_v0 = vld [vmem:[#allocation2 + $0xb8] sm:$0xff] }
 0x310   : > { %9022 = vmatmul.mubr.msk.bf16.gmra.mrb[20].mxu0 %vm1088_vm0, %v3813_v51  ;;  %v4080_v51 = vld [vmem:[#allocation2 + $0x48] sm:$0xff] }
 0x311   : > { %9025 = vmatprep.mubr.msk.bf16.mxu0 %vm1088_vm0, %v3814_v5  ;;  %v4081_v5 = vld [vmem:[#allocation2 + $0x50] sm:$0xff] }
 0x312   : > { %v4110_v9 = vpack.c.bf16 %v4081_v5, %v4080_v51  ;;  %v4092_v51 = vld [vmem:[#allocation2 + $0xa8] sm:$0xff]  ;;  %v4093_v5 = vld [vmem:[#allocation2 + $0xb0] sm:$0xff] }
 0x318   : > { %9026 = vmatmul.mubr.msk.bf16.gmra.mrb[24].mxu0 %vm1088_vm0, %v3815_v31  ;;  %v4082_v31 = vld [vmem:[#allocation2 + $0x58] sm:$0xff] }
 0x319   : > { %9029 = vmatprep.mubr.msk.bf16.mxu0 %vm1088_vm0, %v3816_v21  ;;  %v4111_v21 = vpack.c.bf16 %v4083_v61, %v4082_v31  ;;  %v4097_v61 = vld [vmem:[#allocation2 + $0xd0] sm:$0xff] }
 0x320   : > { %9030 = vmatmul.mubr.msk.bf16.gmra.mrb[28].mxu0 %vm1088_vm0, %v3817_v37  ;;  %v4086_v37 = vld [vmem:[#allocation2 + $0x78] sm:$0xff] }
 0x321   : > { %9037 = vmatprep.mubr.msk.bf16.mxu0 %vm1088_vm0, %v4108_v62  ;;  %v4113_v56 = vpack.c.bf16 %v4087_v44, %v4086_v37  ;;  %v4088_v62 = vld [vmem:[#allocation2 + $0x88] sm:$0xff] }
 0x322   : > { %v4100_v44 = vld [vmem:[#allocation2 + $0xe8] sm:$0xff] }
 0x328   : > { %9038 = vmatmul.mubr.msk.bf16.vlgmr.msra.gmra.mrb[0].mxu0 %vm1088_vm0, %v4109_v29  ;;  %v4115_v29 = vpack.c.bf16 %v4091_v47, %v4090_v28  ;;  %v4102_v47 = vld [vmem:[#allocation2 + $0xf8] sm:$0xff] }
 0x329   : > { %9070 = vmatpush3.bf16.msra.mxu0 %v11322_v10  ;;  %9041 = vmatprep.mubr.msk.bf16.mxu0 %vm1088_vm0, %v4110_v9  ;;  %v4114_v10 = vpack.c.bf16 %v4089_v24, %v4088_v62  ;;  %v4095_v9 = vld [vmem:[#allocation2 + $0xc0] sm:$0xff]  ;;  %v4098_v24 = vld [vmem:[#allocation2 + $0xd8] sm:$0xff] }
 0x32a   : > { %9071 = vmatprep.subr.bf16.mxu0 %v10074_v3  ;;  %v4117_v31 = vpack.c.bf16 %v4095_v9, %v4094_v0  ;;  %v4383_v28 = vld [vmem:[#allocation2 + $0x31] sm:$0xff] }
 0x32d   : > { %9072 = vmatpush3.bf16.msra.mxu0 %v10074_v3  ;;  %v4116_v3 = vpack.c.bf16 %v4093_v5, %v4092_v51  ;;  %v4107_v5 = vld [vmem:[#allocation2 + $0x120] sm:$0xff] }
 0x330   : > { %9042 = vmatmul.mubr.msk.bf16.gmra.mrb[4].mxu0 %vm1088_vm0, %v4111_v21  ;;  %v4096_v21 = vld [vmem:[#allocation2 + $0xc8] sm:$0xff] }
 0x331   : > { %9045 = vmatprep.mubr.msk.bf16.mxu0 %vm1088_vm0, %v4112_v14  ;;  %v4118_v46 = vpack.c.bf16 %v4097_v61, %v4096_v21  ;;  %v4099_v14 = vld [vmem:[#allocation2 + $0xe0] sm:$0xff]  ;;  %v4382_v61 = vld [vmem:[#allocation2 + $0x29] sm:$0xff]  ;;  %v4387_v21 = vld [vmem:[#allocation2 + $0x51] sm:$0xff] }
 0x332   : > { %v4119_v37 = vpack.c.bf16 %v4099_v14, %v4098_v24  ;;  %v4419_v14 = vmul.f32 %v12783_v55, %v4387_v21 }
 0x338   : > { %9046 = vmatmul.mubr.msk.bf16.gmra.mrb[8].mxu0 %vm1088_vm0, %v4113_v56  ;;  %v4101_v56 = vld [vmem:[#allocation2 + $0xf0] sm:$0xff] }
 0x339   : > { %9049 = vmatprep.mubr.msk.bf16.mxu0 %vm1088_vm0, %v4114_v10  ;;  %v4120_v62 = vpack.c.bf16 %v4101_v56, %v4100_v44  ;;  %v4103_v10 = vld [vmem:[#allocation2 + $0x100] sm:$0xff] }
 0x33a   : > { %v4121_v51 = vpack.c.bf16 %v4103_v10, %v4102_v47  ;;  %v4384_v44 = vld [vmem:[#allocation2 + $0x39] sm:$0xff]  ;;  %v4389_v56 = vld [vmem:[#allocation2 + $0x61] sm:$0xff] }
 0x33b   : > { %v4421_v10 = vmul.f32 %v12787_v11, %v4389_v56 }
 0x340   : > { %9050 = vmatmul.mubr.msk.bf16.gmra.mrb[12].mxu0 %vm1088_vm0, %v4115_v29  ;;  %v4106_v29 = vld [vmem:[#allocation2 + $0x118] sm:$0xff] }
 0x341   : > { %9053 = vmatprep.mubr.msk.bf16.mxu0 %vm1088_vm0, %v4116_v3  ;;  %v4415_v3 = vmul.f32 %v12778_v63, %v4383_v28  ;;  %v4123_v9 = vpack.c.bf16 %v4107_v5, %v4106_v29  ;;  %v4390_v29 = vld [vmem:[#allocation2 + $0x69] sm:$0xff] }
 0x343   : > { %v4446_v0 = vpack.c.bf16 %v4415_v3, %v4382_v61  ;;  %v4393_v3 = vld [vmem:[#allocation2 + $0x81] sm:$0xff] }
 0x344   : > { %v4425_v61 = vmul.f32 %v12793_v2, %v4393_v3 }
 0x348   : > { %9054 = vmatmul.mubr.msk.bf16.gmra.mrb[16].mxu0 %vm1088_vm0, %v4117_v31  ;;  %v4385_v31 = vld [vmem:[#allocation2 + $0x41] sm:$0xff] }
 0x349   : > { %9057 = vmatprep.mubr.msk.bf16.mxu0 %vm1088_vm0, %v4118_v46  ;;  %v4417_v46 = vmul.f32 %v12781_v57, %v4385_v31  ;;  %v4392_v31 = vld [vmem:[#allocation2 + $0x79] sm:$0xff] }
 0x34a   : > { %v4451_v21 = vpack.c.bf16 %v4425_v61, %v4392_v31  ;;  %v11443_v31 = vld [vmem:[%s12517_s4] ss:$0 sm:$0xff] }
 0x34b   : > { %v4447_v24 = vpack.c.bf16 %v4417_v46, %v4384_v44  ;;  %v4394_v46 = vld [vmem:[#allocation2 + $0x89] sm:$0xff]  ;;  %v4397_v44 = vld [vmem:[#allocation2 + $0xa1] sm:$0xff] }
 0x350   : > { %9058 = vmatmul.mubr.msk.bf16.gmra.mrb[20].mxu0 %vm1088_vm0, %v4119_v37 }
 0x351   : > { %9061 = vmatprep.mubr.msk.bf16.mxu0 %vm1088_vm0, %v4120_v62  ;;  %v4391_v62 = vld [vmem:[#allocation2 + $0x71] sm:$0xff] }
 0x352   : > { %v4423_v47 = vmul.f32 %v12789_v42, %v4391_v62 }
 0x354   : > { %v4450_v5 = vpack.c.bf16 %v4423_v47, %v4390_v29  ;;  %v4435_v47 = vmul.f32 %v12806_v26, %v12808_v50  ;;  %v4443_v50 = vmul.f32 %v12814_v15, %v11294_v45  ;;  %v4855_v45 = vld [vmem:[#allocation2 + $0x7] sm:$0xff] }
 0x355   : > { %v4887_v61 = vmul.f32 %v10314_v22, %v4855_v45 }
 0x358   : > { %9062 = vmatmul.mubr.msk.bf16.gmra.mrb[24].mxu0 %vm1088_vm0, %v4121_v51  ;;  %v4388_v51 = vld [vmem:[#allocation2 + $0x59] sm:$0xff] }
 0x359   : > { %9065 = vmatprep.mubr.msk.bf16.mxu0 %vm1088_vm0, %v11228_v32  ;;  %v4386_v32 = vld [vmem:[#allocation2 + $0x49] sm:$0xff]  ;;  %v4449_v28 = vpack.c.bf16 %v4421_v10, %v4388_v51  ;;  %v4433_v10 = vmul.f32 %v12805_v33, %v11038_v59 }
 0x35a   : > { %v4448_v37 = vpack.c.bf16 %v4419_v14, %v4386_v32  ;;  %v4431_v32 = vmul.f32 %v12801_v13, %v12804_v16  ;;  %v4437_v16 = vmul.f32 %v12809_v52, %v11061_v49 }
 0x35b   : > { %v4455_v51 = vpack.c.bf16 %v4433_v10, %v11052_v6  ;;  %v4441_v6 = vmul.f32 %v12812_v54, %v12813_v20  ;;  %v10075_v20 = vld [vmem:[%s12518_s5] sm:$0xff]  }
 0x35c   : > { %v4454_v62 = vpack.c.bf16 %v4431_v32, %v12807_v23  ;;  %v4439_v23 = vmul.f32 %v12810_v53, %v11067_v18  ;;  %v4457_v29 = vpack.c.bf16 %v4437_v16, %v11074_v4  ;;  %v12826_v18 = vld [vmem:[#allocation53_spill] sm:$0xff]  ;;  %9105 = vmatprep.subr.bf16.mxu1 %v10075_v20 }
 0x35d   : > { %v4459_v49 = vpack.c.bf16 %v4441_v6, %v11089_v7  ;;  %v10076_v7 = vld [vmem:[%s12518_s5 + $0x8] sm:$0xff]   ;;  %9106 = vmatpush3.bf16.msra.mxu1 %v10075_v20 }
 0x35e   : > { %v4458_v59 = vpack.c.bf16 %v4439_v23, %v12815_v19  ;;  %v4412_v19 = vld [vmem:[#allocation2 + $0x119] sm:$0xff]  ;;  %9107 = vmatprep.subr.bf16.mxu1 %v10076_v7 }
 0x360   : > { %9066 = vmatmul.mubr.msk.bf16.gmra.mrb[28].mxu0 %vm1088_vm0, %v4123_v9  ;;  %v4395_v9 = vld [vmem:[#allocation2 + $0x91] sm:$0xff] }
 0x361   : > { %9073 = vmatprep.mubr.msk.bf16.mxu0 %vm1088_vm0, %v4446_v0  ;;  %v4427_v0 = vmul.f32 %v12795_v60, %v4395_v9  ;;  %9108 = vmatpush3.bf16.msra.mxu1 %v10076_v7  ;;  %v11435_v9 = vld [vmem:[%s12518_s5 + $0x10] sm:$0xff]  }
 0x362   : > { %9141 = vmatprep.subr.bf16.mxu1 %v11435_v9 }
 0x363   : > { %v4452_v14 = vpack.c.bf16 %v4427_v0, %v4394_v46 }
 0x368   : > { %9074 = vmatmul.mubr.msk.bf16.vlgmr.msra.gmra.mrb[0].mxu0 %vm1088_vm0, %v4447_v24  ;;  %v4429_v24 = vmul.f32 %v12799_v58, %v4397_v44 }
 0x369   : > { %9077 = vmatprep.mubr.msk.bf16.mxu0 %vm1088_vm0, %v4448_v37  ;;  %v4396_v37 = vld [vmem:[#allocation2 + $0x99] sm:$0xff] }
 0x36a   : > { %v4453_v56 = vpack.c.bf16 %v4429_v24, %v4396_v37 }
 0x370   : > { %9078 = vmatmul.mubr.msk.bf16.gmra.mrb[4].mxu0 %vm1088_vm0, %v4449_v28  ;;  %v4456_v28 = vpack.c.bf16 %v4435_v47, %v12811_v8  ;;  %v4413_v8 = vld [vmem:[#allocation2 + $0x121] sm:$0xff] }
 0x371   : > { %9081 = vmatprep.mubr.msk.bf16.mxu0 %vm1088_vm0, %v4450_v5  ;;  %v4460_v5 = vpack.c.bf16 %v4443_v50, %v11300_v34  ;;  %v4445_v4 = vmul.f32 %v12826_v18, %v4413_v8  ;;  %v4856_v34 = vld [vmem:[#allocation2 + $0xf] sm:$0xff] }
 0x372   : > { %v4919_v0 = vpack.c.bf16 %v4856_v34, %v4887_v61  ;;  %v5192_v18 = vld [vmem:[#allocation2 + $0x8] sm:$0xff] }
 0x373   : > { %v4461_v3 = vpack.c.bf16 %v4445_v4, %v4412_v19 }
 0x374   : > { %9109 = vmatprep.mubr.msk.bf16.mxu1 %vm1088_vm0, %v4919_v0 }
 0x378   : > { %9082 = vmatmul.mubr.msk.bf16.gmra.mrb[8].mxu0 %vm1088_vm0, %v4451_v21 }
 0x379   : > { %9085 = vmatprep.mubr.msk.bf16.mxu0 %vm1088_vm0, %v4452_v14 }
 0x380   : > { %9086 = vmatmul.mubr.msk.bf16.gmra.mrb[12].mxu0 %vm1088_vm0, %v4453_v56 }
 0x381   : > { %9089 = vmatprep.mubr.msk.bf16.mxu0 %vm1088_vm0, %v4454_v62 }
 0x388   : > { %9090 = vmatmul.mubr.msk.bf16.gmra.mrb[16].mxu0 %vm1088_vm0, %v4455_v51 }
 0x389   : > { %9093 = vmatprep.mubr.msk.bf16.mxu0 %vm1088_vm0, %v4456_v28 }
 0x390   : > { %9094 = vmatmul.mubr.msk.bf16.gmra.mrb[20].mxu0 %vm1088_vm0, %v4457_v29 }
 0x391   : > { %9097 = vmatprep.mubr.msk.bf16.mxu0 %vm1088_vm0, %v4458_v59 }
 0x398   : > { %9098 = vmatmul.mubr.msk.bf16.gmra.mrb[24].mxu0 %vm1088_vm0, %v4459_v49 }
 0x399   : > { %9101 = vmatprep.mubr.msk.bf16.mxu0 %vm1088_vm0, %v4460_v5 }
 0x3a0   : > { %9102 = vmatmul.mubr.msk.bf16.gmra.mrb[28].mxu0 %vm1088_vm0, %v4461_v3 }
 0x43b   : > { %v9075_v21 = vpop.f32.mrb[0].mxu0 }
 0x43c   : > { %v9429_v46 = vadd.f32 %v9075_v21, %v11443_v31  ;;  %v4561_v14 = vpop.f32.mrb[1].mxu0 }
 0x43d   : > { %v9430_v44 = vadd.f32 %v11443_v31, %v4561_v14  ;;  %v9076_v24 = vpop.f32.mrb[2].mxu0 }
 0x43e   : > { %vm4722_vm5 = vcmp.gt.f32.partialorder %v9429_v46, 0.0  ;;  %v4754_v32 = vmul.f32 0.2, %v9429_v46  ;;  %v9431_v37 = vadd.f32 %v9076_v24, %v11443_v31  ;;  %v4564_v56 = vpop.f32.mrb[3].mxu0 }
 0x43f   : > { %vm4720_vm6 = vcmp.gt.f32.partialorder %v9430_v44, 0.0  ;;  %v4752_v62 = vmul.f32 0.2, %v9430_v44  ;;  %v9432_v10 = vadd.f32 %v11443_v31, %v4564_v56 }
 0x440   : > { %v4786_v47 = vsel %vm4722_vm5, %v9429_v46, %v4754_v32  ;;  %vm4723_vm7 = vcmp.gt.f32.partialorder %v9431_v37, 0.0  ;;  %v4755_v51 = vmul.f32 0.2, %v9431_v37 }
 0x441   : > { %4818 = vst.msk [vmem:[#allocation2 + $0x28] sm:$0xff] %vm1088_vm0, %v4786_v47  ;;  %v4784_v28 = vsel %vm4720_vm6, %v9430_v44, %v4752_v62  ;;  %vm4721_vm8 = vcmp.gt.f32.partialorder %v9432_v10, 0.0  ;;  %v4753_v16 = vmul.f32 0.2, %v9432_v10 }
 0x442   : > { %4816 = vst.msk [vmem:[#allocation2 + $0x18] sm:$0xff] %vm1088_vm0, %v4784_v28  ;;  %v4787_v23 = vsel %vm4723_vm7, %v9431_v37, %v4755_v51  ;;  %v10078_v51 = vld [vmem:[%s12518_s5 + $0x18] sm:$0xff]  }
 0x443   : > { %4819 = vst.msk [vmem:[#allocation2 + $0x30] sm:$0xff] %vm1088_vm0, %v4787_v23  ;;  %v4785_v29 = vsel %vm4721_vm8, %v9432_v10, %v4753_v16  ;;  %v9079_v59 = vpop.f32.mrb[4].mxu0 }
 0x444   : > { %4817 = vst.msk [vmem:[#allocation2 + $0x20] sm:$0xff] %vm1088_vm0, %v4785_v29  ;;  %v9433_v6 = vadd.f32 %v9079_v59, %v11443_v31  ;;  %v4577_v50 = vpop.f32.mrb[5].mxu0 }
 0x445   : > { %v9434_v8 = vadd.f32 %v11443_v31, %v4577_v50  ;;  %v9080_v49 = vpop.f32.mrb[6].mxu0 }
 0x446   : > { %vm4726_vm9 = vcmp.gt.f32.partialorder %v9433_v6, 0.0  ;;  %v4758_v5 = vmul.f32 0.2, %v9433_v6  ;;  %v9435_v4 = vadd.f32 %v9080_v49, %v11443_v31  ;;  %v4580_v19 = vpop.f32.mrb[7].mxu0 }
 0x447   : > { %vm4724_vm10 = vcmp.gt.f32.partialorder %v9434_v8, 0.0  ;;  %v4756_v3 = vmul.f32 0.2, %v9434_v8  ;;  %v9436_v20 = vadd.f32 %v11443_v31, %v4580_v19 }
 0x448   : > { %v4790_v7 = vsel %vm4726_vm9, %v9433_v6, %v4758_v5  ;;  %vm4727_vm11 = vcmp.gt.f32.partialorder %v9435_v4, 0.0  ;;  %v4759_v45 = vmul.f32 0.2, %v9435_v4 }
 0x449   : > { %4822 = vst.msk [vmem:[#allocation2 + $0x48] sm:$0xff] %vm1088_vm0, %v4790_v7  ;;  %v4788_v34 = vsel %vm4724_vm10, %v9434_v8, %v4756_v3  ;;  %vm4725_vm12 = vcmp.gt.f32.partialorder %v9436_v20, 0.0  ;;  %v4757_v61 = vmul.f32 0.2, %v9436_v20  ;;  %v4857_v0 = vld [vmem:[#allocation2 + $0x17] sm:$0xff] }
 0x44a   : > { %4820 = vst.msk [vmem:[#allocation2 + $0x38] sm:$0xff] %vm1088_vm0, %v4788_v34  ;;  %v4791_v21 = vsel %vm4727_vm11, %v9435_v4, %v4759_v45  ;;  %v4889_v46 = vmul.f32 %v12818_v35, %v4857_v0  ;;  %v11461_v14 = vmul.f32 %v10314_v22, %v4857_v0  ;;  %v11474_v23 = vld [vmem:[#allocation2 + $0x2f] sm:$0xff] }
 0x44b   : > { %4823 = vst.msk [vmem:[#allocation2 + $0x50] sm:$0xff] %vm1088_vm0, %v4791_v21  ;;  %v4789_v44 = vsel %vm4725_vm12, %v9436_v20, %v4757_v61  ;;  %v9083_v24 = vpop.f32.mrb[8].mxu0  ;;  %v11464_v32 = vld [vmem:[#allocation2 + $0x1f] sm:$0xff]  ;;  %v4859_v37 = vld [vmem:[#allocation2 + $0x27] sm:$0xff]  ;;  %12829 = vst [vmem:[#allocation14_spill] sm:$0xff] %v11474_v23 }
 0x44c   : > { %12827 = vst [vmem:[#allocation15_spill] sm:$0xff] %v11461_v14  ;;  %12828 = vst [vmem:[#allocation17_spill] sm:$0xff] %v11464_v32  ;;  %v9437_v56 = vadd.f32 %v9083_v24, %v11443_v31  ;;  %v4593_v62 = vpop.f32.mrb[9].mxu0  ;;  %v4920_v10 = vpack.c.bf16 %v11464_v32, %v4889_v46  ;;  %v4891_v47 = vmul.f32 %v12820_v1, %v4859_v37  ;;  %v11481_v49 = vld [vmem:[#allocation2 + $0x21] sm:$0xff]  ;;  %v11501_v46 = vld [vmem:[#allocation2 + $0x19] sm:$0xff] }
 0x44d   : > { %4821 = vst.msk [vmem:[#allocation2 + $0x40] sm:$0xff] %vm1088_vm0, %v4789_v44  ;;  %v9438_v28 = vadd.f32 %v11443_v31, %v4593_v62  ;;  %v9084_v16 = vpop.f32.mrb[10].mxu0  ;;  %12830 = vst [vmem:[#allocation20_spill] sm:$0xff] %v11481_v49  ;;  %v11489_v20 = vld [vmem:[%s12518_s5 + $0x20] sm:$0xff]   ;;  %v11492_v7 = vmul.f32 %v12818_v35, %v4859_v37  ;;  %v11497_v61 = vmul.f32 %v12778_v63, %v11481_v49 }
 0x44e   : > { %vm4730_vm13 = vcmp.gt.f32.partialorder %v9437_v56, 0.0  ;;  %v4762_v59 = vmul.f32 0.2, %v9437_v56  ;;  %v9439_v6 = vadd.f32 %v9084_v16, %v11443_v31  ;;  %v4596_v50 = vpop.f32.mrb[11].mxu0  ;;  %9110 = vmatmul.mubr.msk.bf16.vlgmr.msra.gmra.mrb[0].mxu1 %vm1088_vm0, %v4920_v10  ;;  %v4921_v8 = vpack.c.bf16 %v11474_v23, %v4891_v47  ;;  %12833 = vst [vmem:[#allocation23_spill] sm:$0xff] %v11501_v46  ;;  %v5193_v46 = vld [vmem:[#allocation2 + $0x10] sm:$0xff] }
 0x44f   : > { %vm4728_vm14 = vcmp.gt.f32.partialorder %v9438_v28, 0.0  ;;  %v4760_v5 = vmul.f32 0.2, %v9438_v28  ;;  %v9440_v4 = vadd.f32 %v11443_v31, %v4596_v50  ;;  %9142 = vmatpush3.bf16.msra.mxu1 %v11435_v9  ;;  %12831 = vst [vmem:[#allocation19_spill] sm:$0xff] %v11492_v7  ;;  %12832 = vst [vmem:[#allocation16_spill] sm:$0xff] %v11497_v61 }
 0x450   : > { %v4794_v19 = vsel %vm4730_vm13, %v9437_v56, %v4762_v59  ;;  %vm4731_vm15 = vcmp.gt.f32.partialorder %v9439_v6, 0.0  ;;  %v4763_v3 = vmul.f32 0.2, %v9439_v6  ;;  %9113 = vmatprep.mubr.msk.bf16.mxu1 %vm1088_vm0, %v4921_v8  ;;  %9143 = vmatprep.subr.bf16.mxu1 %v10078_v51 }
 0x451   : > { %4826 = vst.msk [vmem:[#allocation2 + $0x68] sm:$0xff] %vm1088_vm0, %v4794_v19  ;;  %v4792_v45 = vsel %vm4728_vm14, %v9438_v28, %v4760_v5  ;;  %vm4729_vm1 = vcmp.gt.f32.partialorder %v9440_v4, 0.0  ;;  %v4761_v34 = vmul.f32 0.2, %v9440_v4  ;;  %v4861_v9 = vld [vmem:[#allocation2 + $0x37] sm:$0xff]  ;;  %v12841_v5 = vld [vmem:[#allocation10_spill] sm:$0xff] }
 0x452   : > { %4824 = vst.msk [vmem:[#allocation2 + $0x58] sm:$0xff] %vm1088_vm0, %v4792_v45  ;;  %v4795_v0 = vsel %vm4731_vm15, %v9439_v6, %v4763_v3  ;;  %v4893_v21 = vmul.f32 %v12823_v12, %v4861_v9  ;;  %v11509_v10 = vmul.f32 %v12820_v1, %v4861_v9  ;;  %v11519_v8 = vld [vmem:[#allocation2 + $0x4f] sm:$0xff] }
 0x453   : > { %4827 = vst.msk [vmem:[#allocation2 + $0x70] sm:$0xff] %vm1088_vm0, %v4795_v0  ;;  %v4793_v24 = vsel %vm4729_vm1, %v9440_v4, %v4761_v34  ;;  %v9087_v37 = vpop.f32.mrb[12].mxu0  ;;  %9144 = vmatpush3.bf16.msra.mxu1 %v10078_v51  ;;  %12836 = vst [vmem:[#allocation26_spill] sm:$0xff] %v11519_v8  ;;  %v11526_v34 = vld [vmem:[#allocation2 + $0x31] sm:$0xff] }
 0x454   : > { %v11506_v56 = vld [vmem:[#allocation2 + $0x3f] sm:$0xff]  ;;  %v4863_v62 = vld [vmem:[#allocation2 + $0x47] sm:$0xff]  ;;  %12835 = vst [vmem:[#allocation21_spill] sm:$0xff] %v11509_v10  ;;  %4825 = vst.msk [vmem:[#allocation2 + $0x60] sm:$0xff] %vm1088_vm0, %v4793_v24  ;;  %v9441_v28 = vadd.f32 %v9087_v37, %v11443_v31  ;;  %v4609_v16 = vpop.f32.mrb[13].mxu0  ;;  %9177 = vmatprep.subr.bf16.mxu1 %v11489_v20 }
 0x455   : > { %12834 = vst [vmem:[#allocation18_spill] sm:$0xff] %v11506_v56  ;;  %v4922_v59 = vpack.c.bf16 %v11506_v56, %v4893_v21  ;;  %v4895_v6 = vmul.f32 %v10571_v40, %v4863_v62  ;;  %v9442_v50 = vadd.f32 %v11443_v31, %v4609_v16  ;;  %v9088_v51 = vpop.f32.mrb[14].mxu0  ;;  %v11531_v37 = vmul.f32 %v12823_v12, %v4863_v62 }
 0x456   : > { %vm4734_vm2 = vcmp.gt.f32.partialorder %v9441_v28, 0.0  ;;  %v4766_v4 = vmul.f32 0.2, %v9441_v28  ;;  %v9443_v19 = vadd.f32 %v9088_v51, %v11443_v31  ;;  %v4612_v3 = vpop.f32.mrb[15].mxu0  ;;  %v11536_v51 = vmul.f32 %v12781_v57, %v11526_v34 }
 0x457   : > { %9114 = vmatmul.mubr.msk.bf16.gmra.mrb[4].mxu1 %vm1088_vm0, %v4922_v59  ;;  %v4923_v45 = vpack.c.bf16 %v11519_v8, %v4895_v6  ;;  %vm4732_vm3 = vcmp.gt.f32.partialorder %v9442_v50, 0.0  ;;  %v4764_v9 = vmul.f32 0.2, %v9442_v50  ;;  %v9444_v0 = vadd.f32 %v11443_v31, %v4612_v3  ;;  %12837 = vst [vmem:[#allocation25_spill] sm:$0xff] %v11531_v37  ;;  %v11540_v3 = vld [vmem:[#allocation2 + $0x29] sm:$0xff] }
 0x458   : > { %v4798_v21 = vsel %vm4734_vm2, %v9441_v28, %v4766_v4  ;;  %vm4735_vm4 = vcmp.gt.f32.partialorder %v9443_v19, 0.0  ;;  %v4767_v24 = vmul.f32 0.2, %v9443_v19  ;;  %12838 = vst [vmem:[#allocation22_spill] sm:$0xff] %v11536_v51 }
 0x459   : > { %9117 = vmatprep.mubr.msk.bf16.mxu1 %vm1088_vm0, %v4923_v45  ;;  %4830 = vst.msk [vmem:[#allocation2 + $0x88] sm:$0xff] %vm1088_vm0, %v4798_v21  ;;  %v4796_v16 = vsel %vm4732_vm3, %v9442_v50, %v4764_v9  ;;  %vm4733_vm5 = vcmp.gt.f32.partialorder %v9444_v0, 0.0  ;;  %v4765_v59 = vmul.f32 0.2, %v9444_v0  ;;  %v4865_v6 = vld [vmem:[#allocation2 + $0x57] sm:$0xff] }
 0x45a   : > { %4828 = vst.msk [vmem:[#allocation2 + $0x78] sm:$0xff] %vm1088_vm0, %v4796_v16  ;;  %v4799_v28 = vsel %vm4735_vm4, %v9443_v19, %v4767_v24  ;;  %v4897_v4 = vmul.f32 %v12825_v48, %v4865_v6  ;;  %v11548_v47 = vmul.f32 %v10571_v40, %v4865_v6  ;;  %v11557_v44 = vld [vmem:[#allocation2 + $0x6f] sm:$0xff] }
 0x45b   : > { %4831 = vst.msk [vmem:[#allocation2 + $0x90] sm:$0xff] %vm1088_vm0, %v4799_v28  ;;  %v4797_v50 = vsel %vm4733_vm5, %v9444_v0, %v4765_v59  ;;  %v9091_v45 = vpop.f32.mrb[16].mxu0  ;;  %v11545_v9 = vld [vmem:[#allocation2 + $0x5f] sm:$0xff]  ;;  %v4867_v21 = vld [vmem:[#allocation2 + $0x67] sm:$0xff]  ;;  %12842 = vst [vmem:[#allocation27_spill] sm:$0xff] %v11557_v44 }
 0x45c   : > { %12839 = vst [vmem:[#allocation29_spill] sm:$0xff] %v11545_v9  ;;  %12840 = vst [vmem:[#allocation24_spill] sm:$0xff] %v11548_v47  ;;  %v9445_v24 = vadd.f32 %v9091_v45, %v11443_v31  ;;  %v4625_v16 = vpop.f32.mrb[17].mxu0  ;;  %v4924_v62 = vpack.c.bf16 %v11545_v9, %v4897_v4  ;;  %v4899_v28 = vmul.f32 %v12841_v5, %v4867_v21  ;;  %v11564_v4 = vld [vmem:[#allocation2 + $0x41] sm:$0xff] }
 0x45d   : > { %4829 = vst.msk [vmem:[#allocation2 + $0x80] sm:$0xff] %vm1088_vm0, %v4797_v50  ;;  %v9446_v0 = vadd.f32 %v11443_v31, %v4625_v16  ;;  %v9092_v59 = vpop.f32.mrb[18].mxu0  ;;  %v11569_v6 = vmul.f32 %v12825_v48, %v4867_v21  ;;  %v11574_v35 = vmul.f32 %v12783_v55, %v11564_v4 }
 0x45e   : > { %vm4738_vm6 = vcmp.gt.f32.partialorder %v9445_v24, 0.0  ;;  %v4770_v29 = vmul.f32 0.2, %v9445_v24  ;;  %v9447_v19 = vadd.f32 %v9092_v59, %v11443_v31  ;;  %v4628_v50 = vpop.f32.mrb[19].mxu0  ;;  %v4925_v45 = vpack.c.bf16 %v11557_v44, %v4899_v28 }
 0x45f   : > { %9118 = vmatmul.mubr.msk.bf16.gmra.mrb[8].mxu1 %vm1088_vm0, %v4924_v62  ;;  %vm4736_vm7 = vcmp.gt.f32.partialorder %v9446_v0, 0.0  ;;  %v4768_v40 = vmul.f32 0.2, %v9446_v0  ;;  %v9448_v16 = vadd.f32 %v11443_v31, %v4628_v50  ;;  %12843 = vst [vmem:[#allocation32_spill] sm:$0xff] %v11569_v6  ;;  %12844 = vst [vmem:[#allocation31_spill] sm:$0xff] %v11574_v35  ;;  %v11578_v50 = vld [vmem:[#allocation2 + $0x39] sm:$0xff] }
 0x460   : > { %v4802_v12 = vsel %vm4738_vm6, %v9445_v24, %v4770_v29  ;;  %vm4739_vm8 = vcmp.gt.f32.partialorder %v9447_v19, 0.0  ;;  %v4771_v1 = vmul.f32 0.2, %v9447_v19  ;;  %9121 = vmatprep.mubr.msk.bf16.mxu1 %vm1088_vm0, %v4925_v45 }
 0x461   : > { %4834 = vst.msk [vmem:[#allocation2 + $0xa8] sm:$0xff] %vm1088_vm0, %v4802_v12  ;;  %v4800_v59 = vsel %vm4736_vm7, %v9446_v0, %v4768_v40  ;;  %vm4737_vm9 = vcmp.gt.f32.partialorder %v9448_v16, 0.0  ;;  %v4769_v62 = vmul.f32 0.2, %v9448_v16  ;;  %v4869_v28 = vld [vmem:[#allocation2 + $0x77] sm:$0xff] }
 0x462   : > { %4832 = vst.msk [vmem:[#allocation2 + $0x98] sm:$0xff] %vm1088_vm0, %v4800_v59  ;;  %v4803_v29 = vsel %vm4739_vm8, %v9447_v19, %v4771_v1  ;;  %v4901_v24 = vmul.f32 %v10618_v30, %v4869_v28  ;;  %v11586_v48 = vmul.f32 %v12841_v5, %v4869_v28  ;;  %v11595_v22 = vld [vmem:[#allocation2 + $0x8f] sm:$0xff] }
 0x463   : > { %4835 = vst.msk [vmem:[#allocation2 + $0xb0] sm:$0xff] %vm1088_vm0, %v4803_v29  ;;  %v4801_v40 = vsel %vm4737_vm9, %v9448_v16, %v4769_v62  ;;  %v9095_v12 = vpop.f32.mrb[20].mxu0  ;;  %12847 = vst [vmem:[#allocation30_spill] sm:$0xff] %v11595_v22  ;;  %v11764_v7 = vld [vmem:[#allocation2 + $0x89] sm:$0xff] }
 0x464   : > { %v11583_v0 = vld [vmem:[#allocation2 + $0x7f] sm:$0xff]  ;;  %v4871_v45 = vld [vmem:[#allocation2 + $0x87] sm:$0xff]  ;;  %12846 = vst [vmem:[#allocation35_spill] sm:$0xff] %v11586_v48  ;;  %4833 = vst.msk [vmem:[#allocation2 + $0xa0] sm:$0xff] %vm1088_vm0, %v4801_v40  ;;  %v9449_v19 = vadd.f32 %v9095_v12, %v11443_v31  ;;  %v4641_v59 = vpop.f32.mrb[21].mxu0 }
 0x465   : > { %12845 = vst [vmem:[#allocation28_spill] sm:$0xff] %v11583_v0  ;;  %v4926_v21 = vpack.c.bf16 %v11583_v0, %v4901_v24  ;;  %v4903_v29 = vmul.f32 %v10656_v36, %v4871_v45  ;;  %v9450_v16 = vadd.f32 %v11443_v31, %v4641_v59  ;;  %v9096_v62 = vpop.f32.mrb[22].mxu0  ;;  %v11602_v24 = vld [vmem:[#allocation2 + $0x51] sm:$0xff]  ;;  %v11607_v28 = vmul.f32 %v10618_v30, %v4871_v45 }
 0x466   : > { %vm4742_vm10 = vcmp.gt.f32.partialorder %v9449_v19, 0.0  ;;  %v4774_v5 = vmul.f32 0.2, %v9449_v19  ;;  %v9451_v1 = vadd.f32 %v9096_v62, %v11443_v31  ;;  %v4644_v40 = vpop.f32.mrb[23].mxu0  ;;  %v11612_v48 = vmul.f32 %v12787_v11, %v11602_v24 }
 0x467   : > { %9122 = vmatmul.mubr.msk.bf16.gmra.mrb[12].mxu1 %vm1088_vm0, %v4926_v21  ;;  %v4927_v12 = vpack.c.bf16 %v11595_v22, %v4903_v29  ;;  %vm4740_vm11 = vcmp.gt.f32.partialorder %v9450_v16, 0.0  ;;  %v4772_v35 = vmul.f32 0.2, %v9450_v16  ;;  %v9452_v59 = vadd.f32 %v11443_v31, %v4644_v40  ;;  %12848 = vst [vmem:[#allocation33_spill] sm:$0xff] %v11607_v28  ;;  %v11616_v40 = vld [vmem:[#allocation2 + $0x49] sm:$0xff] }
 0x468   : > { %v4806_v51 = vsel %vm4742_vm10, %v9449_v19, %v4774_v5  ;;  %vm4743_vm12 = vcmp.gt.f32.partialorder %v9451_v1, 0.0  ;;  %v4775_v61 = vmul.f32 0.2, %v9451_v1  ;;  %12849 = vst [vmem:[#allocation38_spill] sm:$0xff] %v11612_v48 }
 0x469   : > { %9125 = vmatprep.mubr.msk.bf16.mxu1 %vm1088_vm0, %v4927_v12  ;;  %4838 = vst.msk [vmem:[#allocation2 + $0xc8] sm:$0xff] %vm1088_vm0, %v4806_v51  ;;  %v4804_v62 = vsel %vm4740_vm11, %v9450_v16, %v4772_v35  ;;  %vm4741_vm13 = vcmp.gt.f32.partialorder %v9452_v59, 0.0  ;;  %v4773_v21 = vmul.f32 0.2, %v9452_v59  ;;  %v4873_v29 = vld [vmem:[#allocation2 + $0x97] sm:$0xff] }
 0x46a   : > { %4836 = vst.msk [vmem:[#allocation2 + $0xb8] sm:$0xff] %vm1088_vm0, %v4804_v62  ;;  %v4807_v5 = vsel %vm4743_vm12, %v9451_v1, %v4775_v61  ;;  %v4905_v19 = vmul.f32 %v10666_v39, %v4873_v29  ;;  %v11624_v30 = vmul.f32 %v10656_v36, %v4873_v29  ;;  %v11633_v28 = vld [vmem:[#allocation2 + $0xaf] sm:$0xff] }
 0x46b   : > { %4839 = vst.msk [vmem:[#allocation2 + $0xd0] sm:$0xff] %vm1088_vm0, %v4807_v5  ;;  %v4805_v35 = vsel %vm4741_vm13, %v9452_v59, %v4773_v21  ;;  %v9099_v51 = vpop.f32.mrb[24].mxu0  ;;  %v11621_v16 = vld [vmem:[#allocation2 + $0x9f] sm:$0xff]  ;;  %v4875_v12 = vld [vmem:[#allocation2 + $0xa7] sm:$0xff]  ;;  %12852 = vst [vmem:[#allocation41_spill] sm:$0xff] %v11633_v28 }
 0x46c   : > { %12850 = vst [vmem:[#allocation37_spill] sm:$0xff] %v11621_v16  ;;  %12851 = vst [vmem:[#allocation34_spill] sm:$0xff] %v11624_v30  ;;  %v9453_v1 = vadd.f32 %v9099_v51, %v11443_v31  ;;  %v4657_v62 = vpop.f32.mrb[25].mxu0  ;;  %v4928_v45 = vpack.c.bf16 %v11621_v16, %v4905_v19  ;;  %v4907_v5 = vmul.f32 %v10700_v25, %v4875_v12  ;;  %v11640_v19 = vld [vmem:[#allocation2 + $0x61] sm:$0xff] }
 0x46d   : > { %4837 = vst.msk [vmem:[#allocation2 + $0xc0] sm:$0xff] %vm1088_vm0, %v4805_v35  ;;  %v9454_v59 = vadd.f32 %v11443_v31, %v4657_v62  ;;  %v9100_v21 = vpop.f32.mrb[26].mxu0  ;;  %v11645_v29 = vmul.f32 %v10666_v39, %v4875_v12  ;;  %v11652_v30 = vmul.f32 %v12789_v42, %v11640_v19 }
 0x46e   : > { %vm4746_vm14 = vcmp.gt.f32.partialorder %v9453_v1, 0.0  ;;  %v4778_v36 = vmul.f32 0.2, %v9453_v1  ;;  %v9455_v61 = vadd.f32 %v9100_v21, %v11443_v31  ;;  %v4660_v35 = vpop.f32.mrb[27].mxu0  ;;  %v4929_v51 = vpack.c.bf16 %v11633_v28, %v4907_v5 }
 0x46f   : > { %9126 = vmatmul.mubr.msk.bf16.gmra.mrb[16].mxu1 %vm1088_vm0, %v4928_v45  ;;  %vm4744_vm15 = vcmp.gt.f32.partialorder %v9454_v59, 0.0  ;;  %v4776_v48 = vmul.f32 0.2, %v9454_v59  ;;  %v9456_v62 = vadd.f32 %v11443_v31, %v4660_v35  ;;  %12853 = vst [vmem:[#allocation36_spill] sm:$0xff] %v11645_v29  ;;  %12854 = vst [vmem:[#allocation39_spill] sm:$0xff] %v11652_v30  ;;  %v11657_v35 = vld [vmem:[#allocation2 + $0x59] sm:$0xff] }
 0x470   : > { %v4810_v22 = vsel %vm4746_vm14, %v9453_v1, %v4778_v36  ;;  %vm4747_vm1 = vcmp.gt.f32.partialorder %v9455_v61, 0.0  ;;  %v4779_v0 = vmul.f32 0.2, %v9455_v61  ;;  %9129 = vmatprep.mubr.msk.bf16.mxu1 %vm1088_vm0, %v4929_v51 }
 0x471   : > { %4842 = vst.msk [vmem:[#allocation2 + $0xe8] sm:$0xff] %vm1088_vm0, %v4810_v22  ;;  %v4808_v21 = vsel %vm4744_vm15, %v9454_v59, %v4776_v48  ;;  %vm4745_vm2 = vcmp.gt.f32.partialorder %v9456_v62, 0.0  ;;  %v4777_v45 = vmul.f32 0.2, %v9456_v62  ;;  %v11648_v5 = vld [vmem:[#allocation2 + $0xb7] sm:$0xff] }
 0x472   : > { %4840 = vst.msk [vmem:[#allocation2 + $0xd8] sm:$0xff] %vm1088_vm0, %v4808_v21  ;;  %v4811_v36 = vsel %vm4747_vm1, %v9455_v61, %v4779_v0  ;;  %v4909_v1 = vmul.f32 %v10717_v17, %v11648_v5  ;;  %v11668_v21 = vmul.f32 %v10700_v25, %v11648_v5  ;;  %v11678_v28 = vld [vmem:[#allocation2 + $0xcf] sm:$0xff] }
 0x473   : > { %4843 = vst.msk [vmem:[#allocation2 + $0xf0] sm:$0xff] %vm1088_vm0, %v4811_v36  ;;  %v4809_v48 = vsel %vm4745_vm2, %v9456_v62, %v4777_v45  ;;  %v9103_v12 = vpop.f32.mrb[28].mxu0 }
 0x474   : > { %v11662_v59 = vld [vmem:[#allocation2 + $0xbf] sm:$0xff]  ;;  %v11664_v51 = vld [vmem:[#allocation2 + $0xc7] sm:$0xff]  ;;  %12855 = vst [vmem:[#allocation44_spill] sm:$0xff] %v11668_v21  ;;  %4841 = vst.msk [vmem:[#allocation2 + $0xe0] sm:$0xff] %vm1088_vm0, %v4809_v48  ;;  %v9457_v61 = vadd.f32 %v9103_v12, %v11443_v31  ;;  %v4673_v22 = vpop.f32.mrb[29].mxu0 }
 0x475   : > { %v4930_v36 = vpack.c.bf16 %v11662_v59, %v4909_v1  ;;  %v4911_v62 = vmul.f32 %v10749_v27, %v11664_v51  ;;  %v9458_v45 = vadd.f32 %v11443_v31, %v4673_v22  ;;  %v9104_v29 = vpop.f32.mrb[30].mxu0  ;;  %v11685_v12 = vld [vmem:[#allocation2 + $0x71] sm:$0xff]  ;;  %v11691_v16 = vmul.f32 %v10717_v17, %v11664_v51  ;;  %v11696_v21 = vld [vmem:[#allocation2 + $0x69] sm:$0xff]  ;;  %v11779_v49 = vld [vmem:[#allocation2 + $0xb9] sm:$0xff] }
 0x476   : > { %vm4750_vm3 = vcmp.gt.f32.partialorder %v9457_v61, 0.0  ;;  %v4782_v0 = vmul.f32 0.2, %v9457_v61  ;;  %v9459_v48 = vadd.f32 %v9104_v29, %v11443_v31  ;;  %v4676_v30 = vpop.f32.mrb[31].mxu0  ;;  %12857 = vst [vmem:[#allocation42_spill] sm:$0xff] %v11696_v21  ;;  %12869 = vst [vmem:[#allocation58_spill] sm:$0xff] %v11779_v49 }
 0x477   : > { %9130 = vmatmul.mubr.msk.bf16.gmra.mrb[20].mxu1 %vm1088_vm0, %v4930_v36  ;;  %v4931_v1 = vpack.c.bf16 %v11678_v28, %v4911_v62  ;;  %vm4748_vm4 = vcmp.gt.f32.partialorder %v9458_v45, 0.0  ;;  %v4780_v6 = vmul.f32 0.2, %v9458_v45  ;;  %v9460_v22 = vadd.f32 %v11443_v31, %v4676_v30  ;;  %12856 = vst [vmem:[#allocation43_spill] sm:$0xff] %v11691_v16 }
 0x478   : > { %v4814_v44 = vsel %vm4750_vm3, %v9457_v61, %v4782_v0  ;;  %vm4751_vm5 = vcmp.gt.f32.partialorder %v9459_v48, 0.0  ;;  %v4783_v47 = vmul.f32 0.2, %v9459_v48  ;;  %v11700_v30 = vmul.f32 %v12793_v2, %v11685_v12  ;;  %v11705_v61 = vld [vmem:[#allocation2 + $0x81] sm:$0xff] }
 0x479   : > { %9133 = vmatprep.mubr.msk.bf16.mxu1 %vm1088_vm0, %v4931_v1  ;;  %4846 = vst.msk [vmem:[#allocation2 + $0x108] sm:$0xff] %vm1088_vm0, %v4814_v44  ;;  %v4812_v29 = vsel %vm4748_vm4, %v9458_v45, %v4780_v6  ;;  %vm4749_vm6 = vcmp.gt.f32.partialorder %v9460_v22, 0.0  ;;  %v4781_v36 = vmul.f32 0.2, %v9460_v22  ;;  %v11694_v62 = vld [vmem:[#allocation2 + $0xd7] sm:$0xff]  ;;  %v11709_v6 = vld [vmem:[#allocation2 + $0xa1] sm:$0xff] }
 0x47a   : > { %12858 = vst [vmem:[#allocation45_spill] sm:$0xff] %v11700_v30  ;;  %4844 = vst.msk [vmem:[#allocation2 + $0xf8] sm:$0xff] %vm1088_vm0, %v4812_v29  ;;  %v4815_v31 = vsel %vm4751_vm5, %v9459_v48, %v4783_v47  ;;  %v4913_v0 = vmul.f32 %v10759_v43, %v11694_v62  ;;  %v11707_v44 = vld [vmem:[#allocation2 + $0x91] sm:$0xff]  ;;  %v11722_v48 = vmul.f32 %v10749_v27, %v11694_v62  ;;  %v11748_v29 = vld [vmem:[#allocation2 + $0x79] sm:$0xff] }
 0x47b   : > { %4847 = vst.msk [vmem:[#allocation2 + $0x110] sm:$0xff] %vm1088_vm0, %v4815_v31  ;;  %v4813_v1 = vsel %vm4749_vm6, %v9460_v22, %v4781_v36  ;;  %v11714_v9 = vld [vmem:[#allocation2 + $0xdf] sm:$0xff]  ;;  %v11716_v37 = vld [vmem:[#allocation2 + $0xe7] sm:$0xff]  ;;  %v11718_v47 = vld [vmem:[#allocation2 + $0xb1] sm:$0xff]  ;;  %v11754_v56 = vmul.f32 %v12799_v58, %v11707_v44  ;;  %v11758_v8 = vmul.f32 %v12801_v13, %v11709_v6 }
 0x47c   : > { %12859 = vst [vmem:[#allocation48_spill] sm:$0xff] %v11722_v48  ;;  %4845 = vst.msk [vmem:[#allocation2 + $0x100] sm:$0xff] %vm1088_vm0, %v4813_v1  ;;  %v4932_v45 = vpack.c.bf16 %v11714_v9, %v4913_v0  ;;  %v4915_v22 = vmul.f32 %v10793_v38, %v11716_v37  ;;  %v11730_v36 = vld [vmem:[#allocation2 + $0xc1] sm:$0xff]  ;;  %v11732_v31 = vld [vmem:[#allocation2 + $0xef] sm:$0xff]  ;;  %v11740_v10 = vmul.f32 %v10759_v43, %v11716_v37 }
 0x47d   : > { %v11734_v16 = vld [vmem:[#allocation2 + $0xd1] sm:$0xff]  ;;  %v11744_v1 = vmul.f32 %v12795_v60, %v11705_v61  ;;  %12862 = vst [vmem:[#allocation50_spill] sm:$0xff] %v11748_v29  ;;  %v11750_v30 = vld [vmem:[#allocation2 + $0xe1] sm:$0xff]  ;;  %12863 = vst [vmem:[#allocation54_spill] sm:$0xff] %v11754_v56  ;;  %v11762_v48 = vmul.f32 %v12805_v33, %v11718_v47  ;;  %v11776_v32 = vmul.f32 %v12806_v26, %v11730_v36 }
 0x47e   : > { %12860 = vst [vmem:[#allocation46_spill] sm:$0xff] %v11740_v10  ;;  %v4933_v0 = vpack.c.bf16 %v11732_v31, %v4915_v22  ;;  %12864 = vst [vmem:[#allocation51_spill] sm:$0xff] %v11758_v8  ;;  %v11768_v22 = vld [vmem:[#allocation2 + $0xa9] sm:$0xff]  ;;  %v11789_v14 = vmul.f32 %v12809_v52, %v11734_v16  ;;  %v11799_v33 = vmul.f32 %v12810_v53, %v11750_v30  ;;  %v11802_v8 = vld [vmem:[#allocation2 + $0xd9] sm:$0xff] }
 0x47f   : > { %12861 = vst [vmem:[#allocation49_spill] sm:$0xff] %v11744_v1  ;;  %9134 = vmatmul.mubr.msk.bf16.gmra.mrb[24].mxu1 %vm1088_vm0, %v4932_v45  ;;  %12865 = vst [vmem:[#allocation52_spill] sm:$0xff] %v11762_v48  ;;  %v11766_v45 = vld [vmem:[#allocation2 + $0x99] sm:$0xff]  ;;  %v11791_v10 = vld [vmem:[#allocation2 + $0xc9] sm:$0xff]  ;;  %v11840_v48 = vmul.f32 %v10666_v39, %v11648_v5 }
 0x480   : > { %12866 = vst [vmem:[#allocation55_spill] sm:$0xff] %v11766_v45  ;;  %12867 = vst [vmem:[#allocation57_spill] sm:$0xff] %v11768_v22  ;;  %9137 = vmatprep.mubr.msk.bf16.mxu1 %vm1088_vm0, %v4933_v0  ;;  %v5224_v22 = vpack.c.bf16 %v5193_v46, %v5192_v18  ;;  %v11818_v53 = vld [vmem:[#allocation2 + $0xe9] sm:$0xff]  ;;  %v5195_v29 = vld [vmem:[#allocation2 + $0x20] sm:$0xff] }
 0x481   : > { %12868 = vst [vmem:[#allocation56_spill] sm:$0xff] %v11776_v32  ;;  %12870 = vst [vmem:[#allocation59_spill] sm:$0xff] %v11789_v14  ;;  %v4885_v1 = vld [vmem:[#allocation2 + $0xf7] sm:$0xff]  ;;  %v10080_v39 = vld [vmem:[%s12518_s5 + $0x28] sm:$0xff]  }
 0x482   : > { %v11793_v0 = vld [vmem:[#allocation2 + $0xf1] sm:$0xff]  ;;  %12871 = vst [vmem:[#allocation60_spill] sm:$0xff] %v11799_v33  ;;  %v4917_v21 = vmul.f32 %v10812_v41, %v4885_v1  ;;  %v11805_v23 = vmul.f32 %v10793_v38, %v4885_v1  ;;  %12877 = vst [vmem:[#allocation66_spill] sm:$0xff] %v11840_v48  ;;  %v12905_v48 = vld [vmem:[#allocation47_spill] sm:$0xff] }
 0x483   : > { %v11809_v56 = vld [vmem:[#allocation2 + $0xff] sm:$0xff]  ;;  %v11815_v32 = vmul.f32 %v12812_v54, %v11793_v0  ;;  %v5197_v14 = vld [vmem:[#allocation2 + $0x30] sm:$0xff]  ;;  %v11836_v45 = vld [vmem:[#allocation2 + $0x107] sm:$0xff] }
 0x484   : > { %12872 = vst [vmem:[#allocation61_spill] sm:$0xff] %v11805_v23  ;;  %12873 = vst [vmem:[#allocation62_spill] sm:$0xff] %v11809_v56  ;;  %v4934_v41 = vpack.c.bf16 %v11809_v56, %v4917_v21  ;;  %v11820_v49 = vld [vmem:[#allocation2 + $0x101] sm:$0xff]  ;;  %v11831_v46 = vld [vmem:[#allocation2 + $0xf9] sm:$0xff]  ;;  %v11854_v21 = vmul.f32 %v10749_v27, %v11716_v37  ;;  %v11924_v37 = vmul.f32 %v12793_v2, %v11705_v61 }
 0x485   : > { %12874 = vst [vmem:[#allocation63_spill] sm:$0xff] %v11815_v32  ;;  %v11828_v18 = vmul.f32 %v12814_v15, %v11820_v49  ;;  %v5194_v33 = vld [vmem:[#allocation2 + $0x18] sm:$0xff]  ;;  %12876 = vst [vmem:[#allocation65_spill] sm:$0xff] %v11836_v45  ;;  %v11844_v32 = vmul.f32 %v10700_v25, %v11664_v51  ;;  %v5199_v23 = vld [vmem:[#allocation2 + $0x40] sm:$0xff]  ;;  %v11874_v51 = vmul.f32 %v10793_v38, %v11836_v45 }
 0x486   : > { %12881 = vst [vmem:[#allocation70_spill] sm:$0xff] %v11854_v21  ;;  %v11892_v38 = vmul.f32 %v12783_v55, %v11602_v24  ;;  %v11910_v5 = vld [vmem:[%s12518_s5 + $0x30] sm:$0xff]   ;;  %12891 = vst [vmem:[#allocation80_spill] sm:$0xff] %v11924_v37  ;;  %v11936_v25 = vmul.f32 %v12801_v13, %v11718_v47  ;;  %v11952_v21 = vmul.f32 %v12809_v52, %v11750_v30  ;;  %v12904_v45 = vld [vmem:[#allocation58_spill] sm:$0xff] }
 0x487   : > { %12875 = vst [vmem:[#allocation64_spill] sm:$0xff] %v11828_v18  ;;  %9138 = vmatmul.mubr.msk.bf16.gmra.mrb[28].mxu1 %vm1088_vm0, %v4934_v41  ;;  %12878 = vst [vmem:[#allocation67_spill] sm:$0xff] %v11844_v32  ;;  %v11848_v41 = vmul.f32 %v10717_v17, %v11694_v62  ;;  %v5196_v18 = vld [vmem:[#allocation2 + $0x28] sm:$0xff]  ;;  %v11878_v62 = vmul.f32 %v12778_v63, %v11526_v34  ;;  %v5203_v56 = vld [vmem:[#allocation2 + $0x60] sm:$0xff] }
 0x488   : > { %9145 = vmatprep.mubr.msk.bf16.mxu1 %vm1088_vm0, %v5224_v22  ;;  %v11850_v22 = vpack.c.bf16 %v5195_v29, %v5194_v33  ;;  %v11866_v33 = vmul.f32 %v10759_v43, %v4885_v1  ;;  %v11868_v27 = vpack.c.bf16 %v5197_v14, %v5196_v18  ;;  %12884 = vst [vmem:[#allocation73_spill] sm:$0xff] %v11874_v51  ;;  %v5198_v29 = vld [vmem:[#allocation2 + $0x38] sm:$0xff]  ;;  %v11882_v17 = vld [vmem:[#allocation2 + $0x10f] sm:$0xff]  ;;  %12888 = vst [vmem:[#allocation77_spill] sm:$0xff] %v11892_v38 }
 0x489   : > { %12879 = vst [vmem:[#allocation68_spill] sm:$0xff] %v11848_v41  ;;  %12885 = vst [vmem:[#allocation74_spill] sm:$0xff] %v11878_v62  ;;  %v11888_v14 = vmul.f32 %v12781_v57, %v11564_v4  ;;  %v11896_v1 = vmul.f32 %v12787_v11, %v11640_v19  ;;  %v11901_v18 = vpack.c.bf16 %v5199_v23, %v5198_v29  ;;  %v5201_v23 = vld [vmem:[#allocation2 + $0x50] sm:$0xff]  ;;  %v12896_v38 = vld [vmem:[#allocation42_spill] sm:$0xff] }
 0x48a   : > { %12880 = vst [vmem:[#allocation69_spill] sm:$0xff] %v11850_v22  ;;  %12882 = vst [vmem:[#allocation71_spill] sm:$0xff] %v11866_v33  ;;  %v11920_v29 = vmul.f32 %v12789_v42, %v11685_v12  ;;  %v11928_v43 = vmul.f32 %v12795_v60, %v11707_v44  ;;  %v12897_v62 = vld [vmem:[#allocation40_spill] sm:$0xff]  ;;  %v11948_v33 = vmul.f32 %v12806_v26, %v11734_v16  ;;  %v12901_v41 = vld [vmem:[#allocation50_spill] sm:$0xff] }
 0x48b   : > { %12883 = vst [vmem:[#allocation72_spill] sm:$0xff] %v11868_v27  ;;  %12886 = vst [vmem:[#allocation75_spill] sm:$0xff] %v11882_v17  ;;  %v11944_v51 = vmul.f32 %v12897_v62, %v11730_v36  ;;  %v5200_v17 = vld [vmem:[#allocation2 + $0x48] sm:$0xff]  ;;  %v5207_v32 = vld [vmem:[#allocation2 + $0x80] sm:$0xff] }
 0x48c   : > { %12887 = vst [vmem:[#allocation76_spill] sm:$0xff] %v11888_v14  ;;  %12889 = vst [vmem:[#allocation78_spill] sm:$0xff] %v11896_v1  ;;  %v11938_v1 = vld [vmem:[#allocation2 + $0x111] sm:$0xff]  ;;  %v12902_v14 = vld [vmem:[#allocation55_spill] sm:$0xff] }
 0x48d   : > { %12890 = vst [vmem:[#allocation79_spill] sm:$0xff] %v11920_v29  ;;  %12892 = vst [vmem:[#allocation81_spill] sm:$0xff] %v11928_v43  ;;  %v11971_v43 = vmul.f32 %v12905_v48, %v11793_v0  ;;  %v11973_v29 = vpack.c.bf16 %v5201_v23, %v5200_v17  ;;  %v5206_v17 = vld [vmem:[#allocation2 + $0x78] sm:$0xff]  ;;  %v5208_v23 = vld [vmem:[#allocation2 + $0x88] sm:$0xff] }
 0x48e   : > { %12894 = vst [vmem:[#allocation83_spill] sm:$0xff] %v11936_v25  ;;  %12895 = vst [vmem:[#allocation84_spill] sm:$0xff] %v11938_v1  ;;  %v11981_v25 = vmul.f32 %v12814_v15, %v11938_v1 }
 0x48f   : > { %9146 = vmatmul.mubr.msk.bf16.vlgmr.msra.gmra.mrb[0].mxu1 %vm1088_vm0, %v11850_v22  ;;  %12898 = vst [vmem:[#allocation42_spill] sm:$0xff] %v11944_v51  ;;  %12899 = vst [vmem:[#allocation40_spill] sm:$0xff] %v11948_v33  ;;  %v11977_v22 = vmul.f32 %v12812_v54, %v11820_v49  ;;  %v5202_v33 = vld [vmem:[#allocation2 + $0x58] sm:$0xff] }
 0x490   : > { %9178 = vmatpush3.bf16.msra.mxu1 %v11489_v20  ;;  %9149 = vmatprep.mubr.msk.bf16.mxu1 %vm1088_vm0, %v11868_v27  ;;  %v11932_v20 = vmul.f32 %v12799_v58, %v11709_v6  ;;  %12900 = vst [vmem:[#allocation85_spill] sm:$0xff] %v11952_v21  ;;  %v12903_v27 = vld [vmem:[#allocation57_spill] sm:$0xff]  ;;  %12906 = vst [vmem:[#allocation50_spill] sm:$0xff] %v11971_v43  ;;  %v5205_v21 = vld [vmem:[#allocation2 + $0x70] sm:$0xff]  ;;  %v11995_v51 = vpack.c.bf16 %v5203_v56, %v5202_v33 }
 0x491   : > { %9179 = vmatprep.subr.bf16.mxu1 %v10080_v39  ;;  %12907 = vst [vmem:[#allocation55_spill] sm:$0xff] %v11977_v22  ;;  %12908 = vst [vmem:[#allocation57_spill] sm:$0xff] %v11981_v25  ;;  %v5209_v43 = vld [vmem:[#allocation2 + $0x90] sm:$0xff]  ;;  %v12003_v22 = vpack.c.bf16 %v5207_v32, %v5206_v17  ;;  %v5211_v56 = vld [vmem:[#allocation2 + $0xa0] sm:$0xff] }
 0x492   : > { %12893 = vst [vmem:[#allocation82_spill] sm:$0xff] %v11932_v20  ;;  %v5204_v20 = vld [vmem:[#allocation2 + $0x68] sm:$0xff]  ;;  %v12005_v25 = vpack.c.bf16 %v5209_v43, %v5208_v23  ;;  %v5210_v33 = vld [vmem:[#allocation2 + $0x98] sm:$0xff]  ;;  %v5215_v32 = vld [vmem:[#allocation2 + $0xc0] sm:$0xff] }
 0x493   : > { %v11997_v37 = vpack.c.bf16 %v5205_v21, %v5204_v20  ;;  %12911 = vst [vmem:[#allocation86_spill] sm:$0xff] %v12003_v22  ;;  %v5213_v21 = vld [vmem:[#allocation2 + $0xb0] sm:$0xff]  ;;  %v12011_v20 = vpack.c.bf16 %v5211_v56, %v5210_v33  ;;  %v5214_v17 = vld [vmem:[#allocation2 + $0xb8] sm:$0xff] }
 0x494   : > { %9180 = vmatpush3.bf16.msra.mxu1 %v10080_v39  ;;  %v11985_v39 = vld [vmem:[#allocation2 + $0x109] sm:$0xff]  ;;  %12912 = vst [vmem:[#allocation87_spill] sm:$0xff] %v12005_v25  ;;  %v12019_v23 = vpack.c.bf16 %v5215_v32, %v5214_v17  ;;  %v5499_v32 = vld [vmem:[#allocation2 + $0x11] sm:$0xff] }
 0x495   : > { %9213 = vmatprep.subr.bf16.mxu1 %v11910_v5  ;;  %12909 = vst [vmem:[#allocation58_spill] sm:$0xff] %v11985_v39  ;;  %12910 = vst [vmem:[#allocation47_spill] sm:$0xff] %v11997_v37  ;;  %v5212_v39 = vld [vmem:[#allocation2 + $0xa8] sm:$0xff]  ;;  %v5217_v43 = vld [vmem:[#allocation2 + $0xd0] sm:$0xff] }
 0x496   : > { %12913 = vst [vmem:[#allocation88_spill] sm:$0xff] %v12011_v20  ;;  %v12013_v1 = vpack.c.bf16 %v5213_v21, %v5212_v39  ;;  %12915 = vst [vmem:[#allocation90_spill] sm:$0xff] %v12019_v23  ;;  %v5219_v39 = vld [vmem:[#allocation2 + $0xe0] sm:$0xff]  ;;  %v5221_v56 = vld [vmem:[#allocation2 + $0xf0] sm:$0xff] }
 0x497   : > { %9150 = vmatmul.mubr.msk.bf16.gmra.mrb[4].mxu1 %vm1088_vm0, %v11901_v18  ;;  %v5218_v21 = vld [vmem:[#allocation2 + $0xd8] sm:$0xff]  ;;  %v5498_v17 = vld [vmem:[#allocation2 + $0x9] sm:$0xff] }
 0x498   : > { %9153 = vmatprep.mubr.msk.bf16.mxu1 %vm1088_vm0, %v11973_v29  ;;  %12914 = vst [vmem:[#allocation89_spill] sm:$0xff] %v12013_v1  ;;  %v12027_v33 = vpack.c.bf16 %v5219_v39, %v5218_v21  ;;  %v12919_v21 = vld [vmem:[#allocation23_spill] sm:$0xff] }
 0x49f   : > { %9154 = vmatmul.mubr.msk.bf16.gmra.mrb[8].mxu1 %vm1088_vm0, %v11995_v51 }
 0x4a0   : > { %9157 = vmatprep.mubr.msk.bf16.mxu1 %vm1088_vm0, %v11997_v37 }
 0x4a7   : > { %9158 = vmatmul.mubr.msk.bf16.gmra.mrb[12].mxu1 %vm1088_vm0, %v12003_v22 }
 0x4a8   : > { %9161 = vmatprep.mubr.msk.bf16.mxu1 %vm1088_vm0, %v12005_v25  ;;  %v5216_v25 = vld [vmem:[#allocation2 + $0xc8] sm:$0xff] }
 0x4a9   : > { %v12021_v22 = vpack.c.bf16 %v5217_v43, %v5216_v25  ;;  %v5223_v25 = vld [vmem:[#allocation2 + $0x100] sm:$0xff]  ;;  %v5531_v43 = vmul.f32 %v12778_v63, %v5499_v32  ;;  %v10082_v63 = vld [vmem:[%s12518_s5 + $0x38] sm:$0xff]   ;;  %v5547_v32 = vmul.f32 %v12801_v13, %v11707_v44  ;;  %v5553_v13 = vmul.f32 %v12809_v52, %v11730_v36 }
 0x4ab   : > { %12916 = vst [vmem:[#allocation91_spill] sm:$0xff] %v12021_v22  ;;  %v5562_v37 = vpack.c.bf16 %v5531_v43, %v5498_v17  ;;  %v5573_v44 = vpack.c.bf16 %v5553_v13, %v12904_v45  ;;  %v12921_v43 = vld [vmem:[#allocation17_spill] sm:$0xff]  ;;  %v12925_v17 = vld [vmem:[#allocation19_spill] sm:$0xff] }
 0x4ac   : > { %v12948_v13 = vld [vmem:[#allocation41_spill] sm:$0xff] }
 0x4af   : > { %9162 = vmatmul.mubr.msk.bf16.gmra.mrb[16].mxu1 %vm1088_vm0, %v12011_v20 }
 0x4b0   : > { %9165 = vmatprep.mubr.msk.bf16.mxu1 %vm1088_vm0, %v12013_v1  ;;  %v5220_v1 = vld [vmem:[#allocation2 + $0xe8] sm:$0xff] }
 0x4b1   : > { %v12029_v20 = vpack.c.bf16 %v5221_v56, %v5220_v1  ;;  %v12918_v1 = vld [vmem:[#allocation20_spill] sm:$0xff]  ;;  %v5535_v56 = vmul.f32 %v12783_v55, %v11526_v34  ;;  %v10083_v55 = vld [vmem:[%s12518_s5 + $0x40] sm:$0xff]   ;;  %v5539_v34 = vmul.f32 %v12789_v42, %v11602_v24  ;;  %v5545_v24 = vmul.f32 %v12799_v58, %v11705_v61 }
 0x4b2   : > { %v5533_v39 = vmul.f32 %v12781_v57, %v12918_v1  ;;  %v5537_v57 = vmul.f32 %v12787_v11, %v11564_v4  ;;  %v5541_v11 = vmul.f32 %v12793_v2, %v11640_v19  ;;  %v5543_v4 = vmul.f32 %v12795_v60, %v11685_v12 }
 0x4b3   : > { %12917 = vst [vmem:[#allocation92_spill] sm:$0xff] %v12029_v20  ;;  %v5570_v2 = vpack.c.bf16 %v5547_v32, %v11764_v7  ;;  %v5549_v60 = vmul.f32 %v12897_v62, %v11709_v6  ;;  %v5551_v19 = vmul.f32 %v12806_v26, %v11718_v47  ;;  %v5555_v61 = vmul.f32 %v12905_v48, %v11734_v16  ;;  %v12920_v16 = vld [vmem:[#allocation53_spill] sm:$0xff] }
 0x4b4   : > { %v5568_v42 = vpack.c.bf16 %v5543_v4, %v12896_v38  ;;  %v5557_v26 = vmul.f32 %v12812_v54, %v11750_v30  ;;  %v5559_v47 = vmul.f32 %v12814_v15, %v11793_v0  ;;  %v5561_v48 = vmul.f32 %v12920_v16, %v11820_v49  ;;  %v12922_v54 = vld [vmem:[#allocation15_spill] sm:$0xff]  ;;  %v12924_v0 = vld [vmem:[#allocation14_spill] sm:$0xff]  ;;  %v12937_v4 = vld [vmem:[#allocation32_spill] sm:$0xff] }
 0x4b5   : > { %v5571_v12 = vpack.c.bf16 %v5549_v60, %v12902_v14  ;;  %v5572_v58 = vpack.c.bf16 %v5551_v19, %v12903_v27  ;;  %v5574_v6 = vpack.c.bf16 %v5555_v61, %v11791_v10  ;;  %v12923_v30 = vpack.c.bf16 %v12921_v43, %v12922_v54  ;;  %v10084_v15 = vld [vmem:[%s12518_s5 + $0x48] sm:$0xff]   ;;  %v12945_v19 = vld [vmem:[#allocation37_spill] sm:$0xff]  ;;  %v12949_v61 = vld [vmem:[#allocation36_spill] sm:$0xff] }
 0x4b6   : > { %v5575_v62 = vpack.c.bf16 %v5557_v26, %v11802_v8  ;;  %v5576_v52 = vpack.c.bf16 %v5559_v47, %v11818_v53  ;;  %v5577_v36 = vpack.c.bf16 %v5561_v48, %v11831_v46  ;;  %v12926_v1 = vpack.c.bf16 %v12924_v0, %v12925_v17  ;;  %v12927_v49 = vld [vmem:[#allocation18_spill] sm:$0xff]  ;;  %v12953_v47 = vld [vmem:[#allocation43_spill] sm:$0xff]  ;;  %v12962_v0 = vld [vmem:[#allocation65_spill] sm:$0xff] }
 0x4b7   : > { %9166 = vmatmul.mubr.msk.bf16.gmra.mrb[20].mxu1 %vm1088_vm0, %v12019_v23  ;;  %v12959_v54 = vld [vmem:[#allocation62_spill] sm:$0xff]  ;;  %v12963_v17 = vld [vmem:[#allocation13_spill] sm:$0xff] }
 0x4b8   : > { %9169 = vmatprep.mubr.msk.bf16.mxu1 %vm1088_vm0, %v12021_v22  ;;  %v5222_v22 = vld [vmem:[#allocation2 + $0xf8] sm:$0xff] }
 0x4b9   : > { %v12036_v23 = vpack.c.bf16 %v5223_v25, %v5222_v22  ;;  %v5564_v22 = vpack.c.bf16 %v5535_v56, %v11540_v3  ;;  %v5569_v25 = vpack.c.bf16 %v5545_v24, %v12901_v41  ;;  %v12940_v24 = vld [vmem:[#allocation35_spill] sm:$0xff] }
 0x4bf   : > { %9170 = vmatmul.mubr.msk.bf16.gmra.mrb[24].mxu1 %vm1088_vm0, %v12027_v33 }
 0x4c0   : > { %9173 = vmatprep.mubr.msk.bf16.mxu1 %vm1088_vm0, %v12029_v20  ;;  %v5563_v20 = vpack.c.bf16 %v5533_v39, %v12919_v21  ;;  %v12928_v39 = vld [vmem:[#allocation21_spill] sm:$0xff] }
 0x4c1   : > { %v12929_v56 = vpack.c.bf16 %v12927_v49, %v12928_v39  ;;  %v12964_v49 = vld [vmem:[#allocation75_spill] sm:$0xff] }
 0x4c7   : > { %9174 = vmatmul.mubr.msk.bf16.gmra.mrb[28].mxu1 %vm1088_vm0, %v12036_v23 }
 0x4c8   : > { %9181 = vmatprep.mubr.msk.bf16.mxu1 %vm1088_vm0, %v5562_v37  ;;  %v5565_v37 = vpack.c.bf16 %v5537_v57, %v11578_v50  ;;  %v12931_v57 = vld [vmem:[#allocation25_spill] sm:$0xff] }
 0x4cf   : > { %9182 = vmatmul.mubr.msk.bf16.vlgmr.msra.gmra.mrb[0].mxu1 %vm1088_vm0, %v5563_v20  ;;  %v5566_v20 = vpack.c.bf16 %v5539_v34, %v11616_v40 }
 0x4d0   : > { %9214 = vmatpush3.bf16.msra.mxu1 %v11910_v5  ;;  %9185 = vmatprep.mubr.msk.bf16.mxu1 %vm1088_vm0, %v5564_v22  ;;  %v5567_v5 = vpack.c.bf16 %v5541_v11, %v11657_v35  ;;  %v12930_v22 = vld [vmem:[#allocation26_spill] sm:$0xff]  ;;  %v12936_v11 = vld [vmem:[#allocation27_spill] sm:$0xff] }
 0x4d1   : > { %9215 = vmatprep.subr.bf16.mxu1 %v10082_v63  ;;  %v12932_v34 = vpack.c.bf16 %v12930_v22, %v12931_v57  ;;  %v10086_v22 = vld [vmem:[%s12518_s5 + $0x58] sm:$0xff]  }
 0x4d2   : > { %v12966_v57 = vld [vmem:[#allocation72_spill] sm:$0xff] }
 0x4d4   : > { %9216 = vmatpush3.bf16.msra.mxu1 %v10082_v63  ;;  %v10085_v63 = vld [vmem:[%s12518_s5 + $0x50] sm:$0xff]  }
 0x4d5   : > { %9249 = vmatprep.subr.bf16.mxu1 %v10083_v55 }
 0x4d7   : > { %9186 = vmatmul.mubr.msk.bf16.gmra.mrb[4].mxu1 %vm1088_vm0, %v5565_v37  ;;  %v12933_v37 = vld [vmem:[#allocation29_spill] sm:$0xff] }
 0x4d8   : > { %9189 = vmatprep.mubr.msk.bf16.mxu1 %vm1088_vm0, %v5566_v20  ;;  %v12934_v20 = vld [vmem:[#allocation24_spill] sm:$0xff] }
 0x4df   : > { %9190 = vmatmul.mubr.msk.bf16.gmra.mrb[8].mxu1 %vm1088_vm0, %v5567_v5  ;;  %v12938_v5 = vpack.c.bf16 %v12936_v11, %v12937_v4  ;;  %v12971_v11 = vld [vmem:[#allocation89_spill] sm:$0xff]  ;;  %v12972_v4 = vld [vmem:[#allocation90_spill] sm:$0xff] }
 0x4e0   : > { %9193 = vmatprep.mubr.msk.bf16.mxu1 %vm1088_vm0, %v5568_v42  ;;  %v12939_v42 = vld [vmem:[#allocation28_spill] sm:$0xff] }
 0x4e1   : > { %v12941_v32 = vpack.c.bf16 %v12939_v42, %v12940_v24  ;;  %v12974_v42 = vld [vmem:[#allocation92_spill] sm:$0xff] }
 0x4e2   : > { %v6205_v24 = vld [vmem:[#allocation2 + $0x110] sm:$0xff] }
 0x4e7   : > { %9194 = vmatmul.mubr.msk.bf16.gmra.mrb[12].mxu1 %vm1088_vm0, %v5569_v25  ;;  %v12942_v25 = vld [vmem:[#allocation30_spill] sm:$0xff] }
 0x4e8   : > { %9197 = vmatprep.mubr.msk.bf16.mxu1 %vm1088_vm0, %v5570_v2  ;;  %v12943_v2 = vld [vmem:[#allocation33_spill] sm:$0xff] }
 0x4e9   : > { %v12944_v60 = vpack.c.bf16 %v12942_v25, %v12943_v2  ;;  %v12975_v2 = vld [vmem:[#allocation16_spill] sm:$0xff] }
 0x4ef   : > { %9198 = vmatmul.mubr.msk.bf16.gmra.mrb[16].mxu1 %vm1088_vm0, %v5571_v12  ;;  %v12946_v12 = vld [vmem:[#allocation34_spill] sm:$0xff] }
 0x4f0   : > { %9201 = vmatprep.mubr.msk.bf16.mxu1 %vm1088_vm0, %v5572_v58  ;;  %v12947_v58 = vpack.c.bf16 %v12945_v19, %v12946_v12  ;;  %v10088_v19 = vld [vmem:[%s12518_s5 + $0x68] sm:$0xff]  }
 0x4f1   : > { %v12977_v12 = vld [vmem:[#allocation22_spill] sm:$0xff] }
 0x4f7   : > { %9202 = vmatmul.mubr.msk.bf16.gmra.mrb[20].mxu1 %vm1088_vm0, %v5573_v44  ;;  %v12950_v44 = vpack.c.bf16 %v12948_v13, %v12949_v61  ;;  %v12979_v13 = vld [vmem:[#allocation31_spill] sm:$0xff] }
 0x4f8   : > { %9205 = vmatprep.mubr.msk.bf16.mxu1 %vm1088_vm0, %v5574_v6  ;;  %v12951_v6 = vld [vmem:[#allocation44_spill] sm:$0xff]  ;;  %v12980_v61 = vpack.c.bf16 %v12979_v13, %v11578_v50 }
 0x4f9   : > { %v12952_v26 = vpack.c.bf16 %v11662_v59, %v12951_v6 }
 0x4ff   : > { %9206 = vmatmul.mubr.msk.bf16.gmra.mrb[24].mxu1 %vm1088_vm0, %v5575_v62  ;;  %v12954_v62 = vpack.c.bf16 %v11678_v28, %v12953_v47 }
 0x500   : > { %9209 = vmatprep.mubr.msk.bf16.mxu1 %vm1088_vm0, %v5576_v52  ;;  %v12955_v52 = vld [vmem:[#allocation48_spill] sm:$0xff] }
 0x501   : > { %v12956_v48 = vpack.c.bf16 %v11714_v9, %v12955_v52 }
 0x507   : > { %9210 = vmatmul.mubr.msk.bf16.gmra.mrb[28].mxu1 %vm1088_vm0, %v5577_v36  ;;  %v12957_v36 = vld [vmem:[#allocation46_spill] sm:$0xff] }
 0x508   : > { %9217 = vmatprep.mubr.msk.bf16.mxu1 %vm1088_vm0, %v12923_v30  ;;  %v12958_v43 = vpack.c.bf16 %v11732_v31, %v12957_v36  ;;  %v12960_v30 = vld [vmem:[#allocation61_spill] sm:$0xff] }
 0x50f   : > { %9218 = vmatmul.mubr.msk.bf16.vlgmr.msra.gmra.mrb[0].mxu1 %vm1088_vm0, %v12926_v1  ;;  %v5898_v1 = vmul.f32 %v12963_v17, %v12962_v0 }
 0x510   : > { %9250 = vmatpush3.bf16.msra.mxu1 %v10083_v55  ;;  %9221 = vmatprep.mubr.msk.bf16.mxu1 %vm1088_vm0, %v12929_v56  ;;  %v12935_v55 = vpack.c.bf16 %v12933_v37, %v12934_v20  ;;  %v12965_v56 = vld [vmem:[#allocation69_spill] sm:$0xff]  ;;  %v12967_v37 = vld [vmem:[#allocation47_spill] sm:$0xff] }
 0x511   : > { %9251 = vmatprep.subr.bf16.mxu1 %v10084_v15  ;;  %v5915_v39 = vpack.c.bf16 %v12964_v49, %v5898_v1  ;;  %v12969_v20 = vld [vmem:[#allocation87_spill] sm:$0xff]  ;;  %v12993_v1 = vld [vmem:[#allocation52_spill] sm:$0xff] }
 0x514   : > { %9252 = vmatpush3.bf16.msra.mxu1 %v10084_v15  ;;  %v12961_v15 = vpack.c.bf16 %v12959_v54, %v12960_v30 }
 0x515   : > { %9285 = vmatprep.subr.bf16.mxu1 %v10085_v63 }
 0x517   : > { %9222 = vmatmul.mubr.msk.bf16.gmra.mrb[4].mxu1 %vm1088_vm0, %v12932_v34  ;;  %v10087_v34 = vld [vmem:[%s12518_s5 + $0x60] sm:$0xff]  }
 0x518   : > { %9225 = vmatprep.mubr.msk.bf16.mxu1 %vm1088_vm0, %v12935_v55  ;;  %v12970_v55 = vld [vmem:[#allocation88_spill] sm:$0xff] }
 0x51f   : > { %9226 = vmatmul.mubr.msk.bf16.gmra.mrb[8].mxu1 %vm1088_vm0, %v12938_v5  ;;  %v12973_v5 = vld [vmem:[#allocation91_spill] sm:$0xff] }
 0x520   : > { %9229 = vmatprep.mubr.msk.bf16.mxu1 %vm1088_vm0, %v12941_v32  ;;  %v6204_v32 = vld [vmem:[#allocation2 + $0x108] sm:$0xff] }
 0x521   : > { %v12214_v25 = vpack.c.bf16 %v6205_v24, %v6204_v32  ;;  %v12999_v32 = vld [vmem:[#allocation60_spill] sm:$0xff] }
 0x527   : > { %9230 = vmatmul.mubr.msk.bf16.gmra.mrb[12].mxu1 %vm1088_vm0, %v12944_v60  ;;  %v12976_v60 = vpack.c.bf16 %v12975_v2, %v12919_v21  ;;  %v10089_v21 = vld [vmem:[%s12518_s5 + $0x70] sm:$0xff]   ;;  %v13000_v2 = vpack.c.bf16 %v12999_v32, %v11802_v8 }
 0x528   : > { %9233 = vmatprep.mubr.msk.bf16.mxu1 %vm1088_vm0, %v12947_v58  ;;  %v12978_v58 = vpack.c.bf16 %v12977_v12, %v11540_v3  ;;  %v6818_v12 = vld [vmem:[#allocation2 + $0x27] sm:$0xff]  ;;  %v6824_v32 = vld [vmem:[#allocation2 + $0x57] sm:$0xff] }
 0x52f   : > { %9234 = vmatmul.mubr.msk.bf16.gmra.mrb[16].mxu1 %vm1088_vm0, %v12950_v44  ;;  %v12981_v44 = vld [vmem:[#allocation38_spill] sm:$0xff] }
 0x530   : > { %9237 = vmatprep.mubr.msk.bf16.mxu1 %vm1088_vm0, %v12952_v26  ;;  %v12982_v6 = vpack.c.bf16 %v12981_v44, %v11616_v40  ;;  %v12983_v26 = vld [vmem:[#allocation39_spill] sm:$0xff] }
 0x531   : > { %v12984_v47 = vpack.c.bf16 %v12983_v26, %v11657_v35 }
 0x537   : > { %9238 = vmatmul.mubr.msk.bf16.gmra.mrb[20].mxu1 %vm1088_vm0, %v12954_v62  ;;  %v12985_v62 = vld [vmem:[#allocation45_spill] sm:$0xff] }
 0x538   : > { %9241 = vmatprep.mubr.msk.bf16.mxu1 %vm1088_vm0, %v12956_v48  ;;  %v12986_v52 = vpack.c.bf16 %v12985_v62, %v12896_v38  ;;  %v12987_v48 = vld [vmem:[#allocation49_spill] sm:$0xff] }
 0x539   : > { %v12988_v36 = vpack.c.bf16 %v12987_v48, %v12901_v41 }
 0x53f   : > { %9242 = vmatmul.mubr.msk.bf16.gmra.mrb[24].mxu1 %vm1088_vm0, %v12958_v43  ;;  %v12989_v43 = vld [vmem:[#allocation54_spill] sm:$0xff] }
 0x540   : > { %9245 = vmatprep.mubr.msk.bf16.mxu1 %vm1088_vm0, %v12961_v15  ;;  %v12990_v30 = vpack.c.bf16 %v12989_v43, %v11764_v7  ;;  %v12991_v15 = vld [vmem:[#allocation51_spill] sm:$0xff] }
 0x541   : > { %v12992_v0 = vpack.c.bf16 %v12991_v15, %v12902_v14  ;;  %v6822_v43 = vld [vmem:[#allocation2 + $0x47] sm:$0xff] }
 0x547   : > { %9246 = vmatmul.mubr.msk.bf16.gmra.mrb[28].mxu1 %vm1088_vm0, %v5915_v39  ;;  %v12994_v39 = vpack.c.bf16 %v12993_v1, %v12903_v27  ;;  %v13009_v1 = vld [vmem:[#allocation6_spill] sm:$0xff] }
 0x548   : > { %9253 = vmatprep.mubr.msk.bf16.mxu1 %vm1088_vm0, %v12965_v56  ;;  %v12995_v56 = vld [vmem:[#allocation56_spill] sm:$0xff] }
 0x54f   : > { %9254 = vmatmul.mubr.msk.bf16.vlgmr.msra.gmra.mrb[0].mxu1 %vm1088_vm0, %v12966_v57 }
 0x550   : > { %9286 = vmatpush3.bf16.msra.mxu1 %v10085_v63  ;;  %9257 = vmatprep.mubr.msk.bf16.mxu1 %vm1088_vm0, %v11901_v18  ;;  %v12968_v63 = vld [vmem:[#allocation86_spill] sm:$0xff] }
 0x551   : > { %9287 = vmatprep.subr.bf16.mxu1 %v10086_v22 }
 0x554   : > { %9288 = vmatpush3.bf16.msra.mxu1 %v10086_v22  ;;  %v12996_v22 = vpack.c.bf16 %v12995_v56, %v12904_v45 }
 0x555   : > { %9321 = vmatprep.subr.bf16.mxu1 %v10087_v34 }
 0x557   : > { %9258 = vmatmul.mubr.msk.bf16.gmra.mrb[4].mxu1 %vm1088_vm0, %v11973_v29 }
 0x558   : > { %9261 = vmatprep.mubr.msk.bf16.mxu1 %vm1088_vm0, %v11995_v51 }
 0x55f   : > { %9262 = vmatmul.mubr.msk.bf16.gmra.mrb[8].mxu1 %vm1088_vm0, %v12967_v37 }
 0x560   : > { %9265 = vmatprep.mubr.msk.bf16.mxu1 %vm1088_vm0, %v12968_v63 }
 0x567   : > { %9266 = vmatmul.mubr.msk.bf16.gmra.mrb[12].mxu1 %vm1088_vm0, %v12969_v20 }
 0x568   : > { %9269 = vmatprep.mubr.msk.bf16.mxu1 %vm1088_vm0, %v12970_v55 }
 0x56f   : > { %9270 = vmatmul.mubr.msk.bf16.gmra.mrb[16].mxu1 %vm1088_vm0, %v12971_v11 }
 0x570   : > { %9273 = vmatprep.mubr.msk.bf16.mxu1 %vm1088_vm0, %v12972_v4 }
 0x577   : > { %9274 = vmatmul.mubr.msk.bf16.gmra.mrb[20].mxu1 %vm1088_vm0, %v12973_v5 }
 0x578   : > { %9277 = vmatprep.mubr.msk.bf16.mxu1 %vm1088_vm0, %v12027_v33 }
 0x57f   : > { %9278 = vmatmul.mubr.msk.bf16.gmra.mrb[24].mxu1 %vm1088_vm0, %v12974_v42 }
 0x580   : > { %9281 = vmatprep.mubr.msk.bf16.mxu1 %vm1088_vm0, %v12036_v23 }
 0x587   : > { %9282 = vmatmul.mubr.msk.bf16.gmra.mrb[28].mxu1 %vm1088_vm0, %v12214_v25 }
 0x588   : > { %9289 = vmatprep.mubr.msk.bf16.mxu1 %vm1088_vm0, %v12976_v60  ;;  %v13001_v60 = vld [vmem:[#allocation63_spill] sm:$0xff] }
 0x58f   : > { %9290 = vmatmul.mubr.msk.bf16.vlgmr.msra.gmra.mrb[0].mxu1 %vm1088_vm0, %v12978_v58  ;;  %v13003_v58 = vld [vmem:[#allocation64_spill] sm:$0xff] }
 0x590   : > { %9322 = vmatpush3.bf16.msra.mxu1 %v10087_v34  ;;  %9293 = vmatprep.mubr.msk.bf16.mxu1 %vm1088_vm0, %v12980_v61  ;;  %v12997_v34 = vld [vmem:[#allocation59_spill] sm:$0xff]  ;;  %v13004_v13 = vpack.c.bf16 %v13003_v58, %v11831_v46  ;;  %v13005_v61 = vld [vmem:[#allocation84_spill] sm:$0xff]  ;;  %v6825_v58 = vld [vmem:[#allocation2 + $0x5f] sm:$0xff] }
 0x591   : > { %9323 = vmatprep.subr.bf16.mxu1 %v10088_v19  ;;  %v12998_v24 = vpack.c.bf16 %v12997_v34, %v11791_v10  ;;  %v6543_v44 = vmul.f32 %v12920_v16, %v13005_v61  ;;  %v10090_v34 = vld [vmem:[%s12518_s5 + $0x78] sm:$0xff]  }
 0x594   : > { %9324 = vmatpush3.bf16.msra.mxu1 %v10088_v19  ;;  %v13002_v19 = vpack.c.bf16 %v13001_v60, %v11818_v53  ;;  %v13010_v60 = vld [vmem:[#allocation7_spill] sm:$0xff] }
 0x595   : > { %9357 = vmatprep.subr.bf16.mxu1 %v10089_v21 }
 0x597   : > { %9294 = vmatmul.mubr.msk.bf16.gmra.mrb[4].mxu1 %vm1088_vm0, %v12982_v6  ;;  %v13006_v6 = vld [vmem:[#allocation4_spill] sm:$0xff] }
 0x598   : > { %9297 = vmatprep.mubr.msk.bf16.mxu1 %vm1088_vm0, %v12984_v47  ;;  %v6850_v26 = vmul.f32 %v13006_v6, %v6818_v12  ;;  %v13007_v47 = vld [vmem:[#allocation58_spill] sm:$0xff]  ;;  %v6827_v6 = vld [vmem:[#allocation2 + $0x6f] sm:$0xff] }
 0x599   : > { %v6559_v62 = vpack.c.bf16 %v6543_v44, %v13007_v47  ;;  %v10091_v12 = vld [vmem:[%s12518_s5 + $0x80] sm:$0xff]  }
 0x59f   : > { %9298 = vmatmul.mubr.msk.bf16.gmra.mrb[8].mxu1 %vm1088_vm0, %v12986_v52  ;;  %v6819_v52 = vld [vmem:[#allocation2 + $0x2f] sm:$0xff] }
 0x5a0   : > { %9301 = vmatprep.mubr.msk.bf16.mxu1 %vm1088_vm0, %v12988_v36  ;;  %v6882_v48 = vpack.c.bf16 %v6819_v52, %v6850_v26  ;;  %v6820_v36 = vld [vmem:[#allocation2 + $0x37] sm:$0xff] }
 0x5a1   : > { %v13012_v52 = vld [vmem:[#allocation9_spill] sm:$0xff] }
 0x5a7   : > { %9302 = vmatmul.mubr.msk.bf16.gmra.mrb[12].mxu1 %vm1088_vm0, %v12990_v30  ;;  %v13008_v30 = vld [vmem:[#allocation5_spill] sm:$0xff] }
 0x5a8   : > { %9305 = vmatprep.mubr.msk.bf16.mxu1 %vm1088_vm0, %v12992_v0  ;;  %v6852_v15 = vmul.f32 %v13008_v30, %v6820_v36  ;;  %v6821_v0 = vld [vmem:[#allocation2 + $0x3f] sm:$0xff] }
 0x5a9   : > { %v6829_v36 = vld [vmem:[#allocation2 + $0x7f] sm:$0xff] }
 0x5aa   : > { %v6883_v56 = vpack.c.bf16 %v6821_v0, %v6852_v15  ;;  %v6831_v0 = vld [vmem:[#allocation2 + $0x8f] sm:$0xff] }
 0x5af   : > { %9306 = vmatmul.mubr.msk.bf16.gmra.mrb[16].mxu1 %vm1088_vm0, %v12994_v39  ;;  %v6854_v39 = vmul.f32 %v13009_v1, %v6822_v43  ;;  %v13013_v43 = vld [vmem:[#allocation10_spill] sm:$0xff] }
 0x5b0   : > { %9309 = vmatprep.mubr.msk.bf16.mxu1 %vm1088_vm0, %v12996_v22  ;;  %v6823_v22 = vld [vmem:[#allocation2 + $0x4f] sm:$0xff] }
 0x5b7   : > { %9310 = vmatmul.mubr.msk.bf16.gmra.mrb[20].mxu1 %vm1088_vm0, %v12998_v24  ;;  %v6884_v24 = vpack.c.bf16 %v6823_v22, %v6854_v39  ;;  %v6832_v39 = vld [vmem:[#allocation2 + $0x97] sm:$0xff]  ;;  %v13014_v22 = vld [vmem:[#allocation11_spill] sm:$0xff] }
 0x5b8   : > { %9313 = vmatprep.mubr.msk.bf16.mxu1 %vm1088_vm0, %v13000_v2  ;;  %v6826_v2 = vld [vmem:[#allocation2 + $0x67] sm:$0xff] }
 0x5bf   : > { %9314 = vmatmul.mubr.msk.bf16.gmra.mrb[24].mxu1 %vm1088_vm0, %v13002_v19  ;;  %v6856_v19 = vmul.f32 %v13010_v60, %v6824_v32  ;;  %v13015_v32 = vld [vmem:[#allocation12_spill] sm:$0xff] }
 0x5c0   : > { %9317 = vmatprep.mubr.msk.bf16.mxu1 %vm1088_vm0, %v13004_v13  ;;  %v13011_v13 = vld [vmem:[#allocation8_spill] sm:$0xff] }
 0x5c1   : > { %v6858_v61 = vmul.f32 %v13011_v13, %v6826_v2  ;;  %v6885_v44 = vpack.c.bf16 %v6825_v58, %v6856_v19  ;;  %v6835_v19 = vld [vmem:[#allocation2 + $0xaf] sm:$0xff]  ;;  %v13016_v13 = vld [vmem:[#allocation66_spill] sm:$0xff] }
 0x5c3   : > { %v6886_v26 = vpack.c.bf16 %v6827_v6, %v6858_v61  ;;  %v13017_v61 = vpack.c.bf16 %v11662_v59, %v13016_v13  ;;  %v13024_v59 = vld [vmem:[#allocation71_spill] sm:$0xff] }
 0x5c7   : > { %9318 = vmatmul.mubr.msk.bf16.gmra.mrb[28].mxu1 %vm1088_vm0, %v6559_v62  ;;  %v6828_v62 = vld [vmem:[#allocation2 + $0x77] sm:$0xff] }
 0x5c8   : > { %9325 = vmatprep.mubr.msk.bf16.mxu1 %vm1088_vm0, %v6882_v48  ;;  %v6860_v48 = vmul.f32 %v13012_v52, %v6828_v62 }
 0x5ca   : > { %v6887_v15 = vpack.c.bf16 %v6829_v36, %v6860_v48  ;;  %v6848_v48 = vld [vmem:[#allocation2 + $0x117] sm:$0xff]  ;;  %v13025_v36 = vpack.c.bf16 %v12959_v54, %v13024_v59  ;;  %v13028_v54 = vld [vmem:[#allocation74_spill] sm:$0xff] }
 0x5cf   : > { %9326 = vmatmul.mubr.msk.bf16.vlgmr.msra.gmra.mrb[0].mxu1 %vm1088_vm0, %v6883_v56  ;;  %v6834_v56 = vld [vmem:[#allocation2 + $0xa7] sm:$0xff] }
 0x5d0   : > { %9358 = vmatpush3.bf16.msra.mxu1 %v10089_v21  ;;  %9329 = vmatprep.mubr.msk.bf16.mxu1 %vm1088_vm0, %v6884_v24  ;;  %v6830_v21 = vld [vmem:[#allocation2 + $0x87] sm:$0xff]  ;;  %v6833_v24 = vld [vmem:[#allocation2 + $0x9f] sm:$0xff]  ;;  %v6866_v2 = vmul.f32 %v13015_v32, %v6834_v56 }
 0x5d1   : > { %9359 = vmatprep.subr.bf16.mxu1 %v10090_v34  ;;  %v6862_v30 = vmul.f32 %v13013_v43, %v6830_v21  ;;  %v13022_v21 = vld [vmem:[#allocation70_spill] sm:$0xff]  ;;  %v13056_v56 = vld [vmem:[#allocation57_spill] sm:$0xff] }
 0x5d2   : > { %v6890_v58 = vpack.c.bf16 %v6835_v19, %v6866_v2  ;;  %v13023_v52 = vpack.c.bf16 %v11732_v31, %v13022_v21  ;;  %v10092_v31 = vld [vmem:[%s12518_s5 + $0x88] sm:$0xff]  }
 0x5d3   : > { %v6888_v1 = vpack.c.bf16 %v6831_v0, %v6862_v30  ;;  %v6849_v30 = vld [vmem:[#allocation2 + $0x11f] sm:$0xff] }
 0x5d4   : > { %9360 = vmatpush3.bf16.msra.mxu1 %v10090_v34  ;;  %v6864_v34 = vmul.f32 %v13014_v22, %v6832_v39  ;;  %v13052_v0 = vld [vmem:[#allocation50_spill] sm:$0xff]  ;;  %v13054_v39 = vld [vmem:[#allocation55_spill] sm:$0xff]  ;;  %v13057_v22 = vpack.c.bf16 %v13056_v56, %v13007_v47 }
 0x5d5   : > { %9393 = vmatprep.subr.bf16.mxu1 %v10091_v12 }
 0x5d6   : > { %v6889_v60 = vpack.c.bf16 %v6833_v24, %v6864_v34 }
 0x5d7   : > { %9330 = vmatmul.mubr.msk.bf16.gmra.mrb[4].mxu1 %vm1088_vm0, %v6885_v44  ;;  %v13018_v44 = vld [vmem:[#allocation67_spill] sm:$0xff] }
 0x5d8   : > { %9333 = vmatprep.mubr.msk.bf16.mxu1 %vm1088_vm0, %v6886_v26  ;;  %v13019_v6 = vpack.c.bf16 %v11678_v28, %v13018_v44  ;;  %v13020_v26 = vld [vmem:[#allocation68_spill] sm:$0xff]  ;;  %v13026_v28 = vld [vmem:[#allocation73_spill] sm:$0xff] }
 0x5d9   : > { %v13021_v62 = vpack.c.bf16 %v11714_v9, %v13020_v26  ;;  %v13027_v43 = vpack.c.bf16 %v12964_v49, %v13026_v28  ;;  %v6880_v9 = vmul.f32 %v12963_v17, %v6848_v48  ;;  %v13029_v17 = vpack.c.bf16 %v13028_v54, %v11540_v3 }
 0x5df   : > { %9334 = vmatmul.mubr.msk.bf16.gmra.mrb[8].mxu1 %vm1088_vm0, %v6887_v15  ;;  %v6897_v15 = vpack.c.bf16 %v6849_v30, %v6880_v9 }
 0x5e0   : > { %9337 = vmatprep.mubr.msk.bf16.mxu1 %vm1088_vm0, %v6888_v1  ;;  %v7493_v1 = vld [vmem:[#allocation2 + $0x121] sm:$0xff] }
 0x5e7   : > { %9338 = vmatmul.mubr.msk.bf16.gmra.mrb[12].mxu1 %vm1088_vm0, %v6889_v60 }
 0x5e8   : > { %9341 = vmatprep.mubr.msk.bf16.mxu1 %vm1088_vm0, %v6890_v58 }
 0x5ef   : > { %9342 = vmatmul.mubr.msk.bf16.gmra.mrb[16].mxu1 %vm1088_vm0, %v13017_v61 }
 0x5f0   : > { %9345 = vmatprep.mubr.msk.bf16.mxu1 %vm1088_vm0, %v13019_v6 }
 0x5f7   : > { %9346 = vmatmul.mubr.msk.bf16.gmra.mrb[20].mxu1 %vm1088_vm0, %v13021_v62 }
 0x5f8   : > { %9349 = vmatprep.mubr.msk.bf16.mxu1 %vm1088_vm0, %v13023_v52 }
 0x5ff   : > { %9350 = vmatmul.mubr.msk.bf16.gmra.mrb[24].mxu1 %vm1088_vm0, %v13025_v36 }
 0x600   : > { %9353 = vmatprep.mubr.msk.bf16.mxu1 %vm1088_vm0, %v13027_v43 }
 0x607   : > { %9354 = vmatmul.mubr.msk.bf16.gmra.mrb[28].mxu1 %vm1088_vm0, %v6897_v15 }
 0x608   : > { %9361 = vmatprep.mubr.msk.bf16.mxu1 %vm1088_vm0, %v12966_v57  ;;  %v13032_v57 = vld [vmem:[#allocation77_spill] sm:$0xff] }
 0x60f   : > { %9362 = vmatmul.mubr.msk.bf16.vlgmr.msra.gmra.mrb[0].mxu1 %vm1088_vm0, %v11901_v18  ;;  %v7187_v18 = vld [vmem:[#allocation2 + $0x120] sm:$0xff] }
 0x610   : > { %9394 = vmatpush3.bf16.msra.mxu1 %v10091_v12  ;;  %9365 = vmatprep.mubr.msk.bf16.mxu1 %vm1088_vm0, %v11973_v29  ;;  %v13050_v12 = vld [vmem:[#allocation85_spill] sm:$0xff] }
 0x611   : > { %9395 = vmatprep.subr.bf16.mxu1 %v10092_v31 }
 0x614   : > { %9396 = vmatpush3.bf16.msra.mxu1 %v10092_v31 }
 0x617   : > { %9366 = vmatmul.mubr.msk.bf16.gmra.mrb[4].mxu1 %vm1088_vm0, %v11995_v51  ;;  %v7186_v51 = vld [vmem:[#allocation2 + $0x118] sm:$0xff] }
 0x618   : > { %9369 = vmatprep.mubr.msk.bf16.mxu1 %vm1088_vm0, %v12967_v37  ;;  %v7203_v29 = vpack.c.bf16 %v7187_v18, %v7186_v51  ;;  %v13034_v37 = vld [vmem:[#allocation78_spill] sm:$0xff] }
 0x61f   : > { %9370 = vmatmul.mubr.msk.bf16.gmra.mrb[8].mxu1 %vm1088_vm0, %v12968_v63  ;;  %v13035_v63 = vpack.c.bf16 %v13034_v37, %v11657_v35 }
 0x620   : > { %9373 = vmatprep.mubr.msk.bf16.mxu1 %vm1088_vm0, %v12969_v20  ;;  %v13036_v20 = vld [vmem:[#allocation79_spill] sm:$0xff] }
 0x621   : > { %v13037_v3 = vpack.c.bf16 %v13036_v20, %v12896_v38 }
 0x627   : > { %9374 = vmatmul.mubr.msk.bf16.gmra.mrb[12].mxu1 %vm1088_vm0, %v12970_v55  ;;  %v13038_v55 = vld [vmem:[#allocation80_spill] sm:$0xff] }
 0x628   : > { %9377 = vmatprep.mubr.msk.bf16.mxu1 %vm1088_vm0, %v12971_v11  ;;  %v13040_v11 = vld [vmem:[#allocation81_spill] sm:$0xff] }
 0x62f   : > { %9378 = vmatmul.mubr.msk.bf16.gmra.mrb[16].mxu1 %vm1088_vm0, %v12972_v4  ;;  %v13042_v4 = vld [vmem:[#allocation82_spill] sm:$0xff] }
 0x630   : > { %9381 = vmatprep.mubr.msk.bf16.mxu1 %vm1088_vm0, %v12973_v5  ;;  %v13043_v35 = vpack.c.bf16 %v13042_v4, %v12902_v14  ;;  %v13044_v5 = vld [vmem:[#allocation83_spill] sm:$0xff]  ;;  %v13051_v14 = vpack.c.bf16 %v13050_v12, %v11802_v8  ;;  %v7492_v8 = vld [vmem:[#allocation2 + $0x119] sm:$0xff] }
 0x631   : > { %v13045_v38 = vpack.c.bf16 %v13044_v5, %v12903_v27  ;;  %v13053_v27 = vpack.c.bf16 %v13052_v0, %v11818_v53  ;;  %v12437_v53 = vld [vmem:[%s12519_s6] ss:$0 sm:$0xff] }
 0x637   : > { %9382 = vmatmul.mubr.msk.bf16.gmra.mrb[20].mxu1 %vm1088_vm0, %v12027_v33  ;;  %v13030_v33 = vld [vmem:[#allocation76_spill] sm:$0xff] }
 0x638   : > { %9385 = vmatprep.mubr.msk.bf16.mxu1 %vm1088_vm0, %v12974_v42  ;;  %v13031_v49 = vpack.c.bf16 %v13030_v33, %v11578_v50  ;;  %v13039_v50 = vpack.c.bf16 %v13038_v55, %v12901_v41  ;;  %v13046_v42 = vld [vmem:[#allocation42_spill] sm:$0xff] }
 0x639   : > { %v13047_v41 = vpack.c.bf16 %v13046_v42, %v12904_v45  ;;  %v13055_v45 = vpack.c.bf16 %v13054_v39, %v11831_v46 }
 0x63f   : > { %9386 = vmatmul.mubr.msk.bf16.gmra.mrb[24].mxu1 %vm1088_vm0, %v12036_v23  ;;  %v13033_v23 = vpack.c.bf16 %v13032_v57, %v11616_v40  ;;  %v13041_v40 = vpack.c.bf16 %v13040_v11, %v11764_v7 }
 0x640   : > { %9389 = vmatprep.mubr.msk.bf16.mxu1 %vm1088_vm0, %v12214_v25  ;;  %v13048_v25 = vld [vmem:[#allocation40_spill] sm:$0xff] }
 0x641   : > { %v13049_v7 = vpack.c.bf16 %v13048_v25, %v11791_v10  ;;  %v7525_v10 = vmul.f32 %v12920_v16, %v7493_v1 }
 0x643   : > { %v7541_v34 = vpack.c.bf16 %v7525_v10, %v7492_v8 }
 0x647   : > { %9390 = vmatmul.mubr.msk.bf16.gmra.mrb[28].mxu1 %vm1088_vm0, %v7203_v29 }
 0x648   : > { %9397 = vmatprep.mubr.msk.bf16.mxu1 %vm1088_vm0, %v13029_v17 }
 0x64f   : > { %9398 = vmatmul.mubr.msk.bf16.vlgmr.msra.gmra.mrb[0].mxu1 %vm1088_vm0, %v13031_v49 }
 0x650   : > { %9401 = vmatprep.mubr.msk.bf16.mxu1 %vm1088_vm0, %v13033_v23 }
 0x657   : > { %9402 = vmatmul.mubr.msk.bf16.gmra.mrb[4].mxu1 %vm1088_vm0, %v13035_v63 }
 0x658   : > { %9405 = vmatprep.mubr.msk.bf16.mxu1 %vm1088_vm0, %v13037_v3 }
 0x65f   : > { %9406 = vmatmul.mubr.msk.bf16.gmra.mrb[8].mxu1 %vm1088_vm0, %v13039_v50 }
 0x660   : > { %9409 = vmatprep.mubr.msk.bf16.mxu1 %vm1088_vm0, %v13041_v40 }
 0x667   : > { %9410 = vmatmul.mubr.msk.bf16.gmra.mrb[12].mxu1 %vm1088_vm0, %v13043_v35 }
 0x668   : > { %9413 = vmatprep.mubr.msk.bf16.mxu1 %vm1088_vm0, %v13045_v38 }
 0x66f   : > { %9414 = vmatmul.mubr.msk.bf16.gmra.mrb[16].mxu1 %vm1088_vm0, %v13047_v41 }
 0x670   : > { %9417 = vmatprep.mubr.msk.bf16.mxu1 %vm1088_vm0, %v13049_v7 }
 0x677   : > { %9418 = vmatmul.mubr.msk.bf16.gmra.mrb[20].mxu1 %vm1088_vm0, %v13051_v14 }
 0x678   : > { %9421 = vmatprep.mubr.msk.bf16.mxu1 %vm1088_vm0, %v13053_v27 }
 0x67f   : > { %9422 = vmatmul.mubr.msk.bf16.gmra.mrb[24].mxu1 %vm1088_vm0, %v13055_v45 }
 0x680   : > { %9425 = vmatprep.mubr.msk.bf16.mxu1 %vm1088_vm0, %v13057_v22 }
 0x687   : > { %9426 = vmatmul.mubr.msk.bf16.gmra.mrb[28].mxu1 %vm1088_vm0, %v7541_v34 }
 0x722   : > { %v9399_v24 = vpop.f32.mrb[0].mxu1 }
 0x723   : > { %v9461_v46 = vadd.f32 %v9399_v24, %v12437_v53  ;;  %v7641_v32 = vpop.f32.mrb[1].mxu1 }
 0x724   : > { %v9462_v16 = vadd.f32 %v12437_v53, %v7641_v32  ;;  %v9400_v2 = vpop.f32.mrb[2].mxu1 }
 0x725   : > { %v9463_v47 = vadd.f32 %v9400_v2, %v12437_v53  ;;  %v7644_v60 = vpop.f32.mrb[3].mxu1  ;;  %v7834_v19 = vmul.f32 0.2, %v9461_v46  ;;  %vm7802_vm8 = vcmp.gt.f32.partialorder %v9461_v46, 0.0 }
 0x726   : > { %vm7800_vm7 = vcmp.gt.f32.partialorder %v9462_v16, 0.0  ;;  %v7832_v58 = vmul.f32 0.2, %v9462_v16  ;;  %v9464_v13 = vadd.f32 %v12437_v53, %v7644_v60 }
 0x727   : > { %v7835_v44 = vmul.f32 0.2, %v9463_v47  ;;  %vm7803_vm10 = vcmp.gt.f32.partialorder %v9463_v47, 0.0  ;;  %v7866_v26 = vsel %vm7802_vm8, %v9461_v46, %v7834_v19 }
 0x728   : > { %v7864_v61 = vsel %vm7800_vm7, %v9462_v16, %v7832_v58  ;;  %vm7801_vm9 = vcmp.gt.f32.partialorder %v9464_v13, 0.0  ;;  %v7833_v6 = vmul.f32 0.2, %v9464_v13  ;;  %v7899_v15 = vsel %vm1088_vm0, %v7866_v26, 0.0 }
 0x729   : > { %v7896_v52 = vsel %vm1088_vm0, %v7864_v61, 0.0  ;;  %v7867_v28 = vsel %vm7803_vm10, %v9463_v47, %v7835_v44 }
 0x72a   : > { %v7865_v62 = vsel %vm7801_vm9, %v9464_v13, %v7833_v6  ;;  %v9403_v21 = vpop.f32.mrb[4].mxu1  ;;  %v7901_v17 = vsel %vm1088_vm0, %v7867_v28, 0.0 }
 0x72b   : > { %v7897_v48 = vsel %vm1088_vm0, %v7865_v62, 0.0  ;;  %v9465_v59 = vadd.f32 %v9403_v21, %v12437_v53  ;;  %v7657_v36 = vpop.f32.mrb[5].mxu1 }
 0x72c   : > { %v7898_v43 = vadd.f32 %v7897_v48, %v7896_v52  ;;  %v9466_v9 = vadd.f32 %v12437_v53, %v7657_v36  ;;  %v9404_v30 = vpop.f32.mrb[6].mxu1 }
 0x72d   : > { %v9467_v31 = vadd.f32 %v9404_v30, %v12437_v53  ;;  %v7660_v51 = vpop.f32.mrb[7].mxu1  ;;  %vm7806_vm12 = vcmp.gt.f32.partialorder %v9465_v59, 0.0  ;;  %v7838_v33 = vmul.f32 0.2, %v9465_v59 }
 0x72e   : > { %v7900_v18 = vadd.f32 %v7899_v15, %v7898_v43  ;;  %vm7804_vm11 = vcmp.gt.f32.partialorder %v9466_v9, 0.0  ;;  %v7836_v29 = vmul.f32 0.2, %v9466_v9  ;;  %v9468_v54 = vadd.f32 %v12437_v53, %v7660_v51 }
 0x72f   : > { %v7839_v23 = vmul.f32 0.2, %v9467_v31  ;;  %vm7807_vm14 = vcmp.gt.f32.partialorder %v9467_v31, 0.0  ;;  %v7870_v55 = vsel %vm7806_vm12, %v9465_v59, %v7838_v33 }
 0x730   : > { %v7868_v49 = vsel %vm7804_vm11, %v9466_v9, %v7836_v29  ;;  %v7902_v57 = vadd.f32 %v7901_v17, %v7900_v18  ;;  %vm7805_vm13 = vcmp.gt.f32.partialorder %v9468_v54, 0.0  ;;  %v7837_v63 = vmul.f32 0.2, %v9468_v54 }
 0x731   : > { %v7903_v37 = vsel %vm1088_vm0, %v7868_v49, 0.0  ;;  %v7871_v4 = vsel %vm7807_vm14, %v9467_v31, %v7839_v23  ;;  %v7907_v7 = vsel %vm1088_vm0, %v7870_v55, 0.0 }
 0x732   : > { %v7904_v20 = vadd.f32 %v7903_v37, %v7902_v57  ;;  %v9407_v3 = vpop.f32.mrb[8].mxu1  ;;  %v7869_v50 = vsel %vm7805_vm13, %v9468_v54, %v7837_v63  ;;  %v7909_v0 = vsel %vm1088_vm0, %v7871_v4, 0.0 }
 0x733   : > { %v9469_v11 = vadd.f32 %v9407_v3, %v12437_v53  ;;  %v7673_v40 = vpop.f32.mrb[9].mxu1  ;;  %v7905_v35 = vsel %vm1088_vm0, %v7869_v50, 0.0 }
 0x734   : > { %v9470_v5 = vadd.f32 %v12437_v53, %v7673_v40  ;;  %v9408_v38 = vpop.f32.mrb[10].mxu1  ;;  %v7906_v42 = vadd.f32 %v7905_v35, %v7904_v20 }
 0x735   : > { %v9471_v41 = vadd.f32 %v9408_v38, %v12437_v53  ;;  %v7676_v25 = vpop.f32.mrb[11].mxu1  ;;  %vm7810_vm1 = vcmp.gt.f32.partialorder %v9469_v11, 0.0  ;;  %v7842_v1 = vmul.f32 0.2, %v9469_v11 }
 0x736   : > { %vm7808_vm15 = vcmp.gt.f32.partialorder %v9470_v5, 0.0  ;;  %v7840_v12 = vmul.f32 0.2, %v9470_v5  ;;  %v9472_v14 = vadd.f32 %v12437_v53, %v7676_v25  ;;  %v7908_v27 = vadd.f32 %v7907_v7, %v7906_v42 }
 0x737   : > { %v7843_v45 = vmul.f32 0.2, %v9471_v41  ;;  %vm7811_vm3 = vcmp.gt.f32.partialorder %v9471_v41, 0.0  ;;  %v7874_v24 = vsel %vm7810_vm1, %v9469_v11, %v7842_v1 }
 0x738   : > { %v7872_v39 = vsel %vm7808_vm15, %v9470_v5, %v7840_v12  ;;  %vm7809_vm2 = vcmp.gt.f32.partialorder %v9472_v14, 0.0  ;;  %v7841_v10 = vmul.f32 0.2, %v9472_v14  ;;  %v7910_v56 = vadd.f32 %v7909_v0, %v7908_v27 }
 0x739   : > { %v7911_v22 = vsel %vm1088_vm0, %v7872_v39, 0.0  ;;  %v7875_v47 = vsel %vm7811_vm3, %v9471_v41, %v7843_v45  ;;  %v7915_v44 = vsel %vm1088_vm0, %v7874_v24, 0.0 }
 0x73a   : > { %v7873_v8 = vsel %vm7809_vm2, %v9472_v14, %v7841_v10  ;;  %v9411_v34 = vpop.f32.mrb[12].mxu1  ;;  %v7912_v46 = vadd.f32 %v7911_v22, %v7910_v56  ;;  %v7917_v62 = vsel %vm1088_vm0, %v7875_v47, 0.0 }
 0x73b   : > { %v7913_v32 = vsel %vm1088_vm0, %v7873_v8, 0.0  ;;  %v9473_v16 = vadd.f32 %v9411_v34, %v12437_v53  ;;  %v7689_v2 = vpop.f32.mrb[13].mxu1 }
 0x73c   : > { %v9474_v60 = vadd.f32 %v12437_v53, %v7689_v2  ;;  %v9412_v19 = vpop.f32.mrb[14].mxu1  ;;  %v7914_v58 = vadd.f32 %v7913_v32, %v7912_v46 }
 0x73d   : > { %v9475_v13 = vadd.f32 %v9412_v19, %v12437_v53  ;;  %v7692_v61 = vpop.f32.mrb[15].mxu1  ;;  %vm7814_vm5 = vcmp.gt.f32.partialorder %v9473_v16, 0.0  ;;  %v7846_v52 = vmul.f32 0.2, %v9473_v16 }
 0x73e   : > { %vm7812_vm4 = vcmp.gt.f32.partialorder %v9474_v60, 0.0  ;;  %v7844_v6 = vmul.f32 0.2, %v9474_v60  ;;  %v9476_v26 = vadd.f32 %v12437_v53, %v7692_v61  ;;  %v7916_v21 = vadd.f32 %v7915_v44, %v7914_v58 }
 0x73f   : > { %v7847_v59 = vmul.f32 0.2, %v9475_v13  ;;  %vm7815_vm7 = vcmp.gt.f32.partialorder %v9475_v13, 0.0  ;;  %v7878_v15 = vsel %vm7814_vm5, %v9473_v16, %v7846_v52 }
 0x740   : > { %v7876_v48 = vsel %vm7812_vm4, %v9474_v60, %v7844_v6  ;;  %vm7813_vm6 = vcmp.gt.f32.partialorder %v9476_v26, 0.0  ;;  %v7845_v36 = vmul.f32 0.2, %v9476_v26  ;;  %v7918_v28 = vadd.f32 %v7917_v62, %v7916_v21 }
 0x741   : > { %v7919_v43 = vsel %vm1088_vm0, %v7876_v48, 0.0  ;;  %v7879_v54 = vsel %vm7815_vm7, %v9475_v13, %v7847_v59  ;;  %v7923_v37 = vsel %vm1088_vm0, %v7878_v15, 0.0 }
 0x742   : > { %v7877_v9 = vsel %vm7813_vm6, %v9476_v26, %v7845_v36  ;;  %v9415_v30 = vpop.f32.mrb[16].mxu1  ;;  %v7920_v31 = vadd.f32 %v7919_v43, %v7918_v28  ;;  %v7925_v3 = vsel %vm1088_vm0, %v7879_v54, 0.0 }
 0x743   : > { %v7921_v51 = vsel %vm1088_vm0, %v7877_v9, 0.0  ;;  %v9477_v18 = vadd.f32 %v9415_v30, %v12437_v53  ;;  %v7705_v29 = vpop.f32.mrb[17].mxu1 }
 0x744   : > { %v9478_v17 = vadd.f32 %v12437_v53, %v7705_v29  ;;  %v9416_v33 = vpop.f32.mrb[18].mxu1  ;;  %v7922_v49 = vadd.f32 %v7921_v51, %v7920_v31 }
 0x745   : > { %v9479_v57 = vadd.f32 %v9416_v33, %v12437_v53  ;;  %v7708_v23 = vpop.f32.mrb[19].mxu1  ;;  %vm7818_vm9 = vcmp.gt.f32.partialorder %v9477_v18, 0.0  ;;  %v7850_v50 = vmul.f32 0.2, %v9477_v18 }
 0x746   : > { %vm7816_vm8 = vcmp.gt.f32.partialorder %v9478_v17, 0.0  ;;  %v7848_v63 = vmul.f32 0.2, %v9478_v17  ;;  %v9480_v20 = vadd.f32 %v12437_v53, %v7708_v23  ;;  %v7924_v55 = vadd.f32 %v7923_v37, %v7922_v49 }
 0x747   : > { %v7851_v40 = vmul.f32 0.2, %v9479_v57  ;;  %vm7819_vm11 = vcmp.gt.f32.partialorder %v9479_v57, 0.0  ;;  %v7882_v41 = vsel %vm7818_vm9, %v9477_v18, %v7850_v50  ;;  %vm7969_vm9 = vcmask 253952  }
 0x748   : > { %v7880_v11 = vsel %vm7816_vm8, %v9478_v17, %v7848_v63  ;;  %vm7817_vm10 = vcmp.gt.f32.partialorder %v9480_v20, 0.0  ;;  %v7849_v4 = vmul.f32 0.2, %v9480_v20  ;;  %v7926_v35 = vadd.f32 %v7925_v3, %v7924_v55 }
 0x749   : > { %v7927_v5 = vsel %vm1088_vm0, %v7880_v11, 0.0  ;;  %v7883_v0 = vsel %vm7819_vm11, %v9479_v57, %v7851_v40  ;;  %v7931_v56 = vsel %vm1088_vm0, %v7882_v41, 0.0 }
 0x74a   : > { %v7881_v38 = vsel %vm7817_vm10, %v9480_v20, %v7849_v4  ;;  %v9419_v42 = vpop.f32.mrb[20].mxu1  ;;  %v7928_v25 = vadd.f32 %v7927_v5, %v7926_v35  ;;  %v7933_v34 = vsel %vm1088_vm0, %v7883_v0, 0.0 }
 0x74b   : > { %v7929_v7 = vsel %vm1088_vm0, %v7881_v38, 0.0  ;;  %v9481_v12 = vadd.f32 %v9419_v42, %v12437_v53  ;;  %v7721_v14 = vpop.f32.mrb[21].mxu1 }
 0x74c   : > { %v9482_v27 = vadd.f32 %v12437_v53, %v7721_v14  ;;  %v9420_v1 = vpop.f32.mrb[22].mxu1  ;;  %v7930_v39 = vadd.f32 %v7929_v7, %v7928_v25 }
 0x74d   : > { %v9483_v45 = vadd.f32 %v9420_v1, %v12437_v53  ;;  %v7724_v10 = vpop.f32.mrb[23].mxu1  ;;  %vm7822_vm13 = vcmp.gt.f32.partialorder %v9481_v12, 0.0  ;;  %v7854_v46 = vmul.f32 0.2, %v9481_v12 }
 0x74e   : > { %vm7820_vm12 = vcmp.gt.f32.partialorder %v9482_v27, 0.0  ;;  %v7852_v22 = vmul.f32 0.2, %v9482_v27  ;;  %v9484_v8 = vadd.f32 %v12437_v53, %v7724_v10  ;;  %v7932_v24 = vadd.f32 %v7931_v56, %v7930_v39 }
 0x74f   : > { %v7855_v16 = vmul.f32 0.2, %v9483_v45  ;;  %vm7823_vm15 = vcmp.gt.f32.partialorder %v9483_v45, 0.0  ;;  %v7886_v13 = vsel %vm7822_vm13, %v9481_v12, %v7854_v46 }
 0x750   : > { %v7884_v32 = vsel %vm7820_vm12, %v9482_v27, %v7852_v22  ;;  %vm7821_vm14 = vcmp.gt.f32.partialorder %v9484_v8, 0.0  ;;  %v7853_v2 = vmul.f32 0.2, %v9484_v8  ;;  %v7934_v47 = vadd.f32 %v7933_v34, %v7932_v24 }
 0x751   : > { %v7935_v60 = vsel %vm1088_vm0, %v7884_v32, 0.0  ;;  %v7887_v62 = vsel %vm7823_vm15, %v9483_v45, %v7855_v16  ;;  %v7939_v28 = vsel %vm1088_vm0, %v7886_v13, 0.0 }
 0x752   : > { %v7885_v19 = vsel %vm7821_vm14, %v9484_v8, %v7853_v2  ;;  %v9423_v58 = vpop.f32.mrb[24].mxu1  ;;  %v7936_v61 = vadd.f32 %v7935_v60, %v7934_v47  ;;  %v7941_v30 = vsel %vm1088_vm0, %v7887_v62, 0.0 }
 0x753   : > { %v7937_v44 = vsel %vm1088_vm0, %v7885_v19, 0.0  ;;  %v9485_v6 = vadd.f32 %v9423_v58, %v12437_v53  ;;  %v7737_v26 = vpop.f32.mrb[25].mxu1  ;;  %v7967_v19 = vld [vmem:[%s12520_s7] sm:$0x1] }
 0x754   : > { %v9486_v21 = vadd.f32 %v12437_v53, %v7737_v26  ;;  %v9424_v52 = vpop.f32.mrb[26].mxu1  ;;  %v7938_v48 = vadd.f32 %v7937_v44, %v7936_v61  ;;  %v7973_v44 = vld [vmem:[#allocation3] sm:$0x1] }
 0x755   : > { %v9487_v59 = vadd.f32 %v9424_v52, %v12437_v53  ;;  %v7740_v36 = vpop.f32.mrb[27].mxu1  ;;  %vm7826_vm2 = vcmp.gt.f32.partialorder %v9485_v6, 0.0  ;;  %v7858_v31 = vmul.f32 0.2, %v9485_v6 }
 0x756   : > { %vm7824_vm1 = vcmp.gt.f32.partialorder %v9486_v21, 0.0  ;;  %v7856_v43 = vmul.f32 0.2, %v9486_v21  ;;  %v9488_v9 = vadd.f32 %v12437_v53, %v7740_v36  ;;  %v7940_v15 = vadd.f32 %v7939_v28, %v7938_v48 }
 0x757   : > { %v7859_v18 = vmul.f32 0.2, %v9487_v59  ;;  %vm7827_vm4 = vcmp.gt.f32.partialorder %v9487_v59, 0.0  ;;  %v7890_v57 = vsel %vm7826_vm2, %v9485_v6, %v7858_v31 }
 0x758   : > { %v7888_v51 = vsel %vm7824_vm1, %v9486_v21, %v7856_v43  ;;  %vm7825_vm3 = vcmp.gt.f32.partialorder %v9488_v9, 0.0  ;;  %v7857_v29 = vmul.f32 0.2, %v9488_v9  ;;  %v7942_v54 = vadd.f32 %v7941_v30, %v7940_v15 }
 0x759   : > { %v7943_v17 = vsel %vm1088_vm0, %v7888_v51, 0.0  ;;  %v7891_v3 = vsel %vm7827_vm4, %v9487_v59, %v7859_v18  ;;  %v7947_v35 = vsel %vm1088_vm0, %v7890_v57, 0.0 }
 0x75a   : > { %v7889_v33 = vsel %vm7825_vm3, %v9488_v9, %v7857_v29  ;;  %v9427_v49 = vpop.f32.mrb[28].mxu1  ;;  %v7944_v23 = vadd.f32 %v7943_v17, %v7942_v54  ;;  %v7949_v42 = vsel %vm1088_vm0, %v7891_v3, 0.0 }
 0x75b   : > { %v7945_v37 = vsel %vm1088_vm0, %v7889_v33, 0.0  ;;  %v9489_v63 = vadd.f32 %v9427_v49, %v12437_v53  ;;  %v7753_v20 = vpop.f32.mrb[29].mxu1 }
 0x75c   : > { %v9490_v55 = vadd.f32 %v12437_v53, %v7753_v20  ;;  %v9428_v50 = vpop.f32.mrb[30].mxu1  ;;  %v7946_v11 = vadd.f32 %v7945_v37, %v7944_v23 }
 0x75d   : > { %v9491_v40 = vadd.f32 %v9428_v50, %v12437_v53  ;;  %v7756_v4 = vpop.f32.mrb[31].mxu1  ;;  %v7862_v25 = vmul.f32 0.2, %v9489_v63  ;;  %vm7830_vm6 = vcmp.gt.f32.partialorder %v9489_v63, 0.0 }
 0x75e   : > { %vm7828_vm5 = vcmp.gt.f32.partialorder %v9490_v55, 0.0  ;;  %v7860_v5 = vmul.f32 0.2, %v9490_v55  ;;  %v9492_v38 = vadd.f32 %v12437_v53, %v7756_v4  ;;  %v7948_v41 = vadd.f32 %v7947_v35, %v7946_v11 }
 0x75f   : > { %v7863_v27 = vmul.f32 0.2, %v9491_v40  ;;  %vm7831_vm8 = vcmp.gt.f32.partialorder %v9491_v40, 0.0  ;;  %v7894_v39 = vsel %vm7830_vm6, %v9489_v63, %v7862_v25 }
 0x760   : > { %v7892_v7 = vsel %vm7828_vm5, %v9490_v55, %v7860_v5  ;;  %vm7829_vm7 = vcmp.gt.f32.partialorder %v9492_v38, 0.0  ;;  %v7861_v12 = vmul.f32 0.2, %v9492_v38  ;;  %v7950_v14 = vadd.f32 %v7949_v42, %v7948_v41 }
 0x761   : > { %v7951_v0 = vsel %vm1088_vm0, %v7892_v7, 0.0  ;;  %v7895_v56 = vsel %vm7831_vm8, %v9491_v40, %v7863_v27  ;;  %v7955_v22 = vsel %vm1088_vm0, %v7894_v39, 0.0 }
 0x762   : > { %v7893_v1 = vsel %vm7829_vm7, %v9492_v38, %v7861_v12  ;;  %v7952_v45 = vadd.f32 %v7951_v0, %v7950_v14  ;;  %v7957_v34 = vsel %vm1088_vm0, %v7895_v56, 0.0 }
 0x763   : > { %v7953_v10 = vsel %vm1088_vm0, %v7893_v1, 0.0  ;;  %vm7975_vm0 = vcmask 0  }
 0x764   : > { %v7954_v53 = vadd.f32 %v7953_v10, %v7952_v45 }
 0x766   : > { %v7956_v8 = vadd.f32 %v7955_v22, %v7954_v53 }
 0x768   : > { %v7958_v24 = vadd.f32 %v7957_v34, %v7956_v8 }
 0x76a   : > { %v7959_v46 = vrot.slane %v7958_v24, 4 }
 0x76c   : > { %v7960_v32 = vadd.f32 %v7959_v46, %v7958_v24 }
 0x76e   : > { %v7961_v16 = vrot.slane %v7960_v32, 2 }
 0x770   : > { %v7962_v2 = vadd.f32 %v7961_v16, %v7960_v32 }
 0x772   : > { %v7963_v47 = vrot.slane %v7962_v2, 1 }
 0x774   : > { %v7964_v60 = vadd.f32 %v7963_v47, %v7962_v2 }
 0x776   : > { %v7966_v58 = vmul.f32 0.00390625, %v7964_v60 }
 0x778   : > { %v7968_v13 = vmul.f32 %v7967_v19, %v7966_v58 }
 0x77a   : > { %v7970_v61 = vsel %vm7969_vm9, %v7968_v13, 0.0 }
 0x77b   : > { %7971 = vadd.xlane.f32.xlu1 %v7970_v61 }
 0x808   : > { %v7972_v6 = vpop.xlane.xlu1 %7971 }
 0x809   : > { %v7974_v26 = vadd.f32 %v7973_v44, %v7972_v6 }
 0x80b   : > { %7976 = vst.msk [vmem:[%s330_s22] sm:$0x1] %vm7975_vm0, %v7974_v26 }
 0x80c PF: > { %s21_s11 = sadd.s32 1, %s10100_s11  }
 0x80d   : > { %p18_p4 = scmp.ge.s32.totalorder %s21_s11, 4  }
 0x80f   :  { %20 = sbr.rel (!%p18_p4) target bundleno = 3 (0x3), region = 102 }

</bundles_post_ra>
